<compile_context>
chip_gen: v7x
topology: tpu7x:2x2x1
jax: 0.10.0
libtpu: 0.0.40
codegen_flags: <defaults>
</compile_context>

<pallas_src>
import functools

import jax
import jax.numpy as jnp
from jax.experimental import pallas as pl
from jax.experimental.pallas import tpu as pltpu

_BF16 = jnp.bfloat16


# -------------------- small helpers --------------------

def _gelu(x):
    # tanh-approximate GELU (EUP tanh). TODO(synk): exact-erf GELU to bit-match nn.GELU().
    c = 0.7978845608028654  # sqrt(2/pi)
    return 0.5 * x * (1.0 + jnp.tanh(c * (x + 0.044715 * x * x * x)))


def _vmem_limit_bytes():
    """Per-generation scoped-VMEM limit: ~3/4 of physical (96 MiB on v5e/v6e, 48 MiB on v7x)."""
    cap = None
    try:
        cap = getattr(pltpu.get_tpu_info(), "vmem_capacity_bytes", None)
    except Exception:
        cap = None
    if not cap:
        cap = 64 * 1024 * 1024  # conservative fallback (fits every generation)
    return int(min(cap * 3 // 4, 96 * 1024 * 1024))


def _resup_weight_s2d(w_oihw):
    """torch Conv2d weight (O, I, 3, 3) for stride-2/pad-1 -> (16*I, O) weight of the
    equivalent dense 4-tap conv over the space-to-depth input (channel order (py, px, c);
    tap order row-major over row/col offsets (-1, 0))."""
    O, I = w_oihw.shape[0], w_oihw.shape[1]
    wt = jnp.transpose(w_oihw, (2, 3, 1, 0))            # (3, 3, I, O) indexed [ky+1, kx+1]
    w2 = jnp.zeros((2, 2, 2, 2, I, O), wt.dtype)        # (oy_idx, ox_idx, py, px, I, O)

    def _om(k):  # original tap offset k in {-1,0,1} -> (offset_idx: 0 => -1, 1 => 0, phase)
        return (0, 1) if k == -1 else (1, k)

    for ky in (-1, 0, 1):
        for kx in (-1, 0, 1):
            oy, py = _om(ky)
            ox, px = _om(kx)
            w2 = w2.at[oy, ox, py, px].set(wt[ky + 1, kx + 1])
    return w2.reshape(16 * I, O)


# -------------------- the fused kernel --------------------

def _dpcv3_kernel(x_ref, r_ref, ml_ref, mr_ref,
                  wup_ref, bup_ref,
                  gx_ref, bex_ref, gr_ref, ber_ref,
                  wx1_ref, bx1_ref, wx2_ref, bx2_ref,
                  wr1_ref, br1_ref, wr2_ref, br2_ref,
                  wc1x_ref, wc1r_ref, bc1_ref, wc2_ref, bc2_ref,
                  xo_ref, co_ref,
                  abuf_d, strip_d, abuf_h, strip_h, abuf_r, strip_r,
                  *, H, W, pad, eps):
    HW = H * W
    TRAIL = W + 1

    # Zero only the halo rows every step (interior is fully overwritten per conv); doing it
    # every step makes each grid step self-contained -> safe under megacore "parallel".
    def zero_halo(buf):
        C = buf.shape[-1]
        buf[0:pad, :] = jnp.zeros((pad, C), buf.dtype)
        buf[pad + HW:pad + HW + TRAIL, :] = jnp.zeros((TRAIL, C), buf.dtype)

    zero_halo(abuf_d)
    zero_halo(abuf_h)
    zero_halo(abuf_r)

    mask_l = ml_ref[...]   # (HW, 1) f32, 0 where x == 0      (kills left-edge row wrap)
    mask_r = mr_ref[...]   # (HW, 1) f32, 0 where x == W - 1  (kills right-edge row wrap)

    # 3x3 stride-1 taps: flat-row shift ky*W + kx; top/bottom out-of-bounds land in the zero
    # halo, left/right wrap-around is masked.
    taps9 = [(ky * W + kx, (mask_l if kx == -1 else (mask_r if kx == 1 else None)))
             for ky in (-1, 0, 1) for kx in (-1, 0, 1)]
    # res_up after space-to-depth: 4 taps with row/col offsets {-1, 0}.
    taps4 = [(oy * W + ox, (mask_l if ox == -1 else None))
             for oy in (-1, 0) for ox in (-1, 0)]

    def tap_conv(a_f32, abuf, strip, w_ref, b_ref, taps):
        """Conv as: write (HW, C) into the padded shift buffer, pack T shifted taps into a
        bf16 (HW, T*C) im2col strip, then ONE accumulating MXU dot against (T*C, Cout)."""
        C = a_f32.shape[-1]
        abuf[pad:pad + HW, :] = a_f32                       # sublane-aligned interior write
        for t, (s, m) in enumerate(taps):
            v = abuf[pad + s:pad + s + HW, :]
            if m is not None:
                v = v * m
            strip[:, t * C:(t + 1) * C] = v.astype(strip.dtype)
        return jnp.dot(strip[...], w_ref[...],
                       preferred_element_type=jnp.float32) + b_ref[...]

    def layernorm(v, g, b):
        mu = jnp.mean(v, axis=-1, keepdims=True)
        vc = v - mu
        var = jnp.mean(vc * vc, axis=-1, keepdims=True)
        return vc * jax.lax.rsqrt(var + eps) * g + b

    # ---- x branch: lnx -> conv3x3 -> GELU -> conv3x3 (hidden stays in VMEM) ----
    xln = layernorm(x_ref[0], gx_ref[...], bex_ref[...])
    xh = _gelu(tap_conv(xln, abuf_d, strip_d, wx1_ref, bx1_ref, taps9))
    x_out = tap_conv(xh, abuf_h, strip_h, wx2_ref, bx2_ref, taps9)
    xo_ref[0] = x_out.astype(xo_ref.dtype)

    # ---- res branch: res_up (stride-2 conv as 4-tap s2d conv) -> lnres -> conv -> GELU -> conv ----
    r_up = tap_conv(r_ref[0], abuf_r, strip_r, wup_ref, bup_ref, taps4)
    rln = layernorm(r_up, gr_ref[...], ber_ref[...])
    rh = _gelu(tap_conv(rln, abuf_d, strip_d, wr1_ref, br1_ref, taps9))
    r_out = tap_conv(rh, abuf_h, strip_h, wr2_ref, br2_ref, taps9)

    # ---- classifier Mlp(2*hdim -> hdim -> odim) on cat([x, res], channel) ----
    # concat folded by splitting fc1's weight; conv outputs are reused from registers.
    h = (jnp.dot(x_out.astype(_BF16), wc1x_ref[...], preferred_element_type=jnp.float32)
         + jnp.dot(r_out.astype(_BF16), wc1r_ref[...], preferred_element_type=jnp.float32)
         + bc1_ref[...])
    h = _gelu(h)
    y = jnp.dot(h.astype(_BF16), wc2_ref[...], preferred_element_type=jnp.float32) + bc2_ref[...]
    co_ref[0] = y.astype(co_ref.dtype)


# -------------------- wrapper --------------------

def dpcv3_forward(params, x, res, *, eps=1e-5):
    """
    x   : (B, H, W, dim)       channels-last (LayerNorm(dim) acts on the last dim)
    res : (B, dim//2, 2H, 2W)  NCHW (input to nn.Conv2d res_up)
    returns (x_out (B, hdim, H, W), classification (B, odim, H, W)), NCHW as in the reference.
    """
    B, H, W, dim = x.shape
    Cr = res.shape[1]
    assert Cr == dim // 2 and res.shape[2] == 2 * H and res.shape[3] == 2 * W, (x.shape, res.shape)
    hdim = params["x_fc1_w"].shape[0]
    odim = params["cls_fc2_w"].shape[0]
    HW = H * W
    PAD = ((W + 1 + 7) // 8) * 8          # sublane-aligned leading halo (>= W+1 rows)
    ROWS = PAD + HW + (W + 1)             # padded shift-buffer row count

    f32 = jnp.float32

    # Input layout prep (cheap, 1x-sized): x flattened to (B, HW, dim); res space-to-depth'd
    # so the stride-2 res_up conv becomes a dense 4-tap conv in the kernel.
    x2 = x.reshape(B, HW, dim).astype(f32)
    r2 = jnp.transpose(res.reshape(B, Cr, H, 2, W, 2),
                       (0, 2, 4, 3, 5, 1)).reshape(B, HW, 4 * Cr).astype(f32)

    xs = jnp.arange(HW, dtype=jnp.int32) % W
    mask_l = (xs != 0).astype(f32).reshape(HW, 1)
    mask_r = (xs != W - 1).astype(f32).reshape(HW, 1)

    def w9(w):  # (Cout, Cin, 3, 3) -> (9*Cin, Cout), tap order = (ky, kx) row-major
        co, ci = w.shape[0], w.shape[1]
        return jnp.transpose(w, (2, 3, 1, 0)).reshape(9 * ci, co).astype(_BF16)

    def b2(b):
        return b.reshape(1, -1).astype(f32)

    w_up = _resup_weight_s2d(params["res_up_w"]).astype(_BF16)          # (16*Cr, dim)
    w1 = params["cls_fc1_w"]                                            # (hdim, 2*hdim)
    w_c1x = jnp.transpose(w1[:, :hdim]).astype(_BF16)
    w_c1r = jnp.transpose(w1[:, hdim:]).astype(_BF16)
    w_c2 = jnp.transpose(params["cls_fc2_w"]).astype(_BF16)

    kernel = functools.partial(_dpcv3_kernel, H=H, W=W, pad=PAD, eps=eps)
    full2 = lambda b: (0, 0)
    per_b = lambda b: (b, 0, 0)

    xo, co = pl.pallas_call(
        kernel,
        out_shape=(jax.ShapeDtypeStruct((B, HW, hdim), jnp.float32),
                   jax.ShapeDtypeStruct((B, HW, odim), jnp.float32)),
        grid_spec=pltpu.PrefetchScalarGridSpec(
            num_scalar_prefetch=0,
            grid=(B,),
            in_specs=[
                pl.BlockSpec((1, HW, dim), per_b),            # x2
                pl.BlockSpec((1, HW, 4 * Cr), per_b),         # r2 (space-to-depth)
                pl.BlockSpec((HW, 1), full2),                 # mask_l
                pl.BlockSpec((HW, 1), full2),                 # mask_r
                pl.BlockSpec((16 * Cr, dim), full2),          # w_up
                pl.BlockSpec((1, dim), full2),                # b_up
                pl.BlockSpec((1, dim), full2),                # lnx gamma
                pl.BlockSpec((1, dim), full2),                # lnx beta
                pl.BlockSpec((1, dim), full2),                # lnres gamma
                pl.BlockSpec((1, dim), full2),                # lnres beta
                pl.BlockSpec((9 * dim, hdim), full2),         # x_fc1 w
                pl.BlockSpec((1, hdim), full2),               # x_fc1 b
                pl.BlockSpec((9 * hdim, hdim), full2),        # x_fc2 w
                pl.BlockSpec((1, hdim), full2),               # x_fc2 b
                pl.BlockSpec((9 * dim, hdim), full2),         # r_fc1 w
                pl.BlockSpec((1, hdim), full2),               # r_fc1 b
                pl.BlockSpec((9 * hdim, hdim), full2),        # r_fc2 w
                pl.BlockSpec((1, hdim), full2),               # r_fc2 b
                pl.BlockSpec((hdim, hdim), full2),            # cls fc1 (x half)
                pl.BlockSpec((hdim, hdim), full2),            # cls fc1 (res half)
                pl.BlockSpec((1, hdim), full2),               # cls fc1 b
                pl.BlockSpec((hdim, odim), full2),            # cls fc2 w
                pl.BlockSpec((1, odim), full2),               # cls fc2 b
            ],
            out_specs=[
                pl.BlockSpec((1, HW, hdim), per_b),
                pl.BlockSpec((1, HW, odim), per_b),
            ],
            scratch_shapes=[
                pltpu.VMEM((ROWS, dim), jnp.float32),         # padded shift buf, C = dim
                pltpu.VMEM((HW, 9 * dim), _BF16),             # im2col strip, K = 9*dim
                pltpu.VMEM((ROWS, hdim), jnp.float32),        # padded shift buf, C = hdim
                pltpu.VMEM((HW, 9 * hdim), _BF16),            # im2col strip, K = 9*hdim
                pltpu.VMEM((ROWS, 4 * Cr), jnp.float32),      # padded shift buf for res_up
                pltpu.VMEM((HW, 16 * Cr), _BF16),             # im2col strip for res_up
            ],
        ),
        compiler_params=pltpu.CompilerParams(
            dimension_semantics=("parallel",),
            vmem_limit_bytes=_vmem_limit_bytes(),
        ),
    )(x2, r2, mask_l, mask_r,
      w_up, b2(params["res_up_b"]),
      b2(params["lnx_g"]), b2(params["lnx_b"]),
      b2(params["lnres_g"]), b2(params["lnres_b"]),
      w9(params["x_fc1_w"]), b2(params["x_fc1_b"]),
      w9(params["x_fc2_w"]), b2(params["x_fc2_b"]),
      w9(params["r_fc1_w"]), b2(params["r_fc1_b"]),
      w9(params["r_fc2_w"]), b2(params["r_fc2_b"]),
      w_c1x, w_c1r, b2(params["cls_fc1_b"]),
      w_c2, b2(params["cls_fc2_b"]))

    # NCHW layouts required by the reference interface.
    # TODO(synk): fold these transposes into the kernel (write (C, HW) blocks via an in-kernel
    # XLU transpose) and/or pad output channels to a lane-dense 128.
    x_out = jnp.transpose(xo.reshape(B, H, W, hdim), (0, 3, 1, 2))
    cls = jnp.transpose(co.reshape(B, H, W, odim), (0, 3, 1, 2))
    return x_out, cls


# -------------------- parameters (deterministic, synthetic) --------------------

def init_dpcv3_params(key, dim, hdim, odim):
    ks = jax.random.split(key, 14)
    conv_w = lambda k, co, ci: jax.random.normal(k, (co, ci, 3, 3), jnp.float32) * 0.05
    lin_w = lambda k, co, ci: jax.random.normal(k, (co, ci), jnp.float32) * 0.05
    bias = lambda k, n: jax.random.normal(k, (n,), jnp.float32) * 0.02
    return {
        "lnx_g": jnp.ones((dim,), jnp.float32), "lnx_b": jnp.zeros((dim,), jnp.float32),
        "lnres_g": jnp.ones((dim,), jnp.float32), "lnres_b": jnp.zeros((dim,), jnp.float32),
        "res_up_w": conv_w(ks[0], dim, dim // 2), "res_up_b": bias(ks[1], dim),
        "x_fc1_w": conv_w(ks[2], hdim, dim), "x_fc1_b": bias(ks[3], hdim),
        "x_fc2_w": conv_w(ks[4], hdim, hdim), "x_fc2_b": bias(ks[5], hdim),
        "r_fc1_w": conv_w(ks[6], hdim, dim), "r_fc1_b": bias(ks[7], hdim),
        "r_fc2_w": conv_w(ks[8], hdim, hdim), "r_fc2_b": bias(ks[9], hdim),
        "cls_fc1_w": lin_w(ks[10], hdim, 2 * hdim), "cls_fc1_b": bias(ks[11], hdim),
        "cls_fc2_w": lin_w(ks[12], odim, hdim), "cls_fc2_b": bias(ks[13], odim),
    }


# -------------------- pure-JAX reference (same tanh-GELU; f32 everywhere) --------------------

def _ref_forward(params, x, res, *, eps=1e-5):
    def ln(v, g, b):
        mu = v.mean(-1, keepdims=True)
        va = ((v - mu) ** 2).mean(-1, keepdims=True)
        return (v - mu) / jnp.sqrt(va + eps) * g + b

    def conv(v_nhwc, w_oihw, b, stride):
        out = jax.lax.conv_general_dilated(
            v_nhwc, jnp.transpose(w_oihw, (2, 3, 1, 0)),
            window_strides=(stride, stride), padding=((1, 1), (1, 1)),
            dimension_numbers=("NHWC", "HWIO", "NHWC"))
        return out + b

    ru = conv(jnp.transpose(res, (0, 2, 3, 1)), params["res_up_w"], params["res_up_b"], 2)
    xl = ln(x, params["lnx_g"], params["lnx_b"])
    rl = ln(ru, params["lnres_g"], params["lnres_b"])
    xo = conv(_gelu(conv(xl, params["x_fc1_w"], params["x_fc1_b"], 1)),
              params["x_fc2_w"], params["x_fc2_b"], 1)
    ro = conv(_gelu(conv(rl, params["r_fc1_w"], params["r_fc1_b"], 1)),
              params["r_fc2_w"], params["r_fc2_b"], 1)
    xr = jnp.concatenate([xo, ro], axis=-1)
    h = _gelu(xr @ params["cls_fc1_w"].T + params["cls_fc1_b"])
    y = h @ params["cls_fc2_w"].T + params["cls_fc2_b"]
    return jnp.transpose(xo, (0, 3, 1, 2)), jnp.transpose(y, (0, 3, 1, 2))


if __name__ == "__main__":
    dim, hdim, odim = 32, 32, 8
    B, H, W = 2, 8, 8

    key = jax.random.PRNGKey(0)
    kp, kx, kr = jax.random.split(key, 3)
    params = init_dpcv3_params(kp, dim, hdim, odim)

    x = jax.random.normal(kx, (B, H, W, dim), jnp.float32)
    res = jax.random.normal(kr, (B, dim // 2, 2 * H, 2 * W), jnp.float32)

    fwd = jax.jit(functools.partial(dpcv3_forward, params))
    x_out, cls_out = fwd(x, res)
    jax.block_until_ready((x_out, cls_out))

    assert x_out.shape == (B, hdim, H, W), x_out.shape
    assert cls_out.shape == (B, odim, H, W), cls_out.shape

    # Numerical check vs the pure-JAX reference (bf16 MXU operands -> loose tolerance).
    xr_ref, cls_ref = jax.jit(functools.partial(_ref_forward, params))(x, res)
    jax.block_until_ready((xr_ref, cls_ref))
    err_x = float(jnp.max(jnp.abs(x_out - xr_ref)))
    err_c = float(jnp.max(jnp.abs(cls_out - cls_ref)))
    assert err_x < 0.1 and err_c < 0.1, ("numerical mismatch", err_x, err_c)

    print("KERNEL_OK")
</pallas_src>

<mosaic_0001>
module attributes {stable_mosaic.version = 11 : i64} {
  func.func @_dpcv3_kernel(%arg0: i32, %arg1: memref<1x64x32xf32, #tpu.memory_space<vmem>>, %arg2: memref<1x64x64xf32, #tpu.memory_space<vmem>>, %arg3: memref<64x1xf32, #tpu.memory_space<vmem>>, %arg4: memref<64x1xf32, #tpu.memory_space<vmem>>, %arg5: memref<256x32xbf16, #tpu.memory_space<vmem>>, %arg6: memref<1x32xf32, #tpu.memory_space<vmem>>, %arg7: memref<1x32xf32, #tpu.memory_space<vmem>>, %arg8: memref<1x32xf32, #tpu.memory_space<vmem>>, %arg9: memref<1x32xf32, #tpu.memory_space<vmem>>, %arg10: memref<1x32xf32, #tpu.memory_space<vmem>>, %arg11: memref<288x32xbf16, #tpu.memory_space<vmem>>, %arg12: memref<1x32xf32, #tpu.memory_space<vmem>>, %arg13: memref<288x32xbf16, #tpu.memory_space<vmem>>, %arg14: memref<1x32xf32, #tpu.memory_space<vmem>>, %arg15: memref<288x32xbf16, #tpu.memory_space<vmem>>, %arg16: memref<1x32xf32, #tpu.memory_space<vmem>>, %arg17: memref<288x32xbf16, #tpu.memory_space<vmem>>, %arg18: memref<1x32xf32, #tpu.memory_space<vmem>>, %arg19: memref<32x32xbf16, #tpu.memory_space<vmem>>, %arg20: memref<32x32xbf16, #tpu.memory_space<vmem>>, %arg21: memref<1x32xf32, #tpu.memory_space<vmem>>, %arg22: memref<32x8xbf16, #tpu.memory_space<vmem>>, %arg23: memref<1x8xf32, #tpu.memory_space<vmem>>, %arg24: memref<1x64x32xf32, #tpu.memory_space<vmem>>, %arg25: memref<1x64x8xf32, #tpu.memory_space<vmem>>, %arg26: memref<89x32xf32, #tpu.memory_space<vmem>>, %arg27: memref<64x288xbf16, #tpu.memory_space<vmem>>, %arg28: memref<89x32xf32, #tpu.memory_space<vmem>>, %arg29: memref<64x288xbf16, #tpu.memory_space<vmem>>, %arg30: memref<89x64xf32, #tpu.memory_space<vmem>>, %arg31: memref<64x256xbf16, #tpu.memory_space<vmem>>) attributes {dimension_semantics = [#tpu.dimension_semantics<parallel>], iteration_bounds = array<i64: 2>, scalar_prefetch = 0 : i64, scratch_operands = 6 : i64, tpu.core_type = #tpu.core_type<tc>, window_params = [{transform_indices = @transform_0, window_bounds = array<i64: 1, 64, 32>}, {transform_indices = @transform_1, window_bounds = array<i64: 1, 64, 64>}, {pipeline_mode = #tpu.pipeline_mode<synchronous>, transform_indices = @transform_2, window_bounds = array<i64: 64, 1>}, {pipeline_mode = #tpu.pipeline_mode<synchronous>, transform_indices = @transform_3, window_bounds = array<i64: 64, 1>}, {pipeline_mode = #tpu.pipeline_mode<synchronous>, transform_indices = @transform_4, window_bounds = array<i64: 256, 32>}, {pipeline_mode = #tpu.pipeline_mode<synchronous>, transform_indices = @transform_5, window_bounds = array<i64: 1, 32>}, {pipeline_mode = #tpu.pipeline_mode<synchronous>, transform_indices = @transform_6, window_bounds = array<i64: 1, 32>}, {pipeline_mode = #tpu.pipeline_mode<synchronous>, transform_indices = @transform_7, window_bounds = array<i64: 1, 32>}, {pipeline_mode = #tpu.pipeline_mode<synchronous>, transform_indices = @transform_8, window_bounds = array<i64: 1, 32>}, {pipeline_mode = #tpu.pipeline_mode<synchronous>, transform_indices = @transform_9, window_bounds = array<i64: 1, 32>}, {pipeline_mode = #tpu.pipeline_mode<synchronous>, transform_indices = @transform_10, window_bounds = array<i64: 288, 32>}, {pipeline_mode = #tpu.pipeline_mode<synchronous>, transform_indices = @transform_11, window_bounds = array<i64: 1, 32>}, {pipeline_mode = #tpu.pipeline_mode<synchronous>, transform_indices = @transform_12, window_bounds = array<i64: 288, 32>}, {pipeline_mode = #tpu.pipeline_mode<synchronous>, transform_indices = @transform_13, window_bounds = array<i64: 1, 32>}, {pipeline_mode = #tpu.pipeline_mode<synchronous>, transform_indices = @transform_14, window_bounds = array<i64: 288, 32>}, {pipeline_mode = #tpu.pipeline_mode<synchronous>, transform_indices = @transform_15, window_bounds = array<i64: 1, 32>}, {pipeline_mode = #tpu.pipeline_mode<synchronous>, transform_indices = @transform_16, window_bounds = array<i64: 288, 32>}, {pipeline_mode = #tpu.pipeline_mode<synchronous>, transform_indices = @transform_17, window_bounds = array<i64: 1, 32>}, {pipeline_mode = #tpu.pipeline_mode<synchronous>, transform_indices = @transform_18, window_bounds = array<i64: 32, 32>}, {pipeline_mode = #tpu.pipeline_mode<synchronous>, transform_indices = @transform_19, window_bounds = array<i64: 32, 32>}, {pipeline_mode = #tpu.pipeline_mode<synchronous>, transform_indices = @transform_20, window_bounds = array<i64: 1, 32>}, {pipeline_mode = #tpu.pipeline_mode<synchronous>, transform_indices = @transform_21, window_bounds = array<i64: 32, 8>}, {pipeline_mode = #tpu.pipeline_mode<synchronous>, transform_indices = @transform_22, window_bounds = array<i64: 1, 8>}, {transform_indices = @transform_23, window_bounds = array<i64: 1, 64, 32>}, {transform_indices = @transform_24, window_bounds = array<i64: 1, 64, 8>}]} {
    %cst = arith.constant 0.000000e+00 : f32
    %0 = vector.broadcast %cst : f32 to vector<16x32xf32>
    %c0 = arith.constant 0 : index
    %c0_0 = arith.constant 0 : index
    %1 = vector.load %arg26[%c0, %c0_0] : memref<89x32xf32, #tpu.memory_space<vmem>>, vector<16x32xf32>
    tpu.vector_store %arg26[%c0, %c0_0], %0 {strides = array<i32>} : memref<89x32xf32, #tpu.memory_space<vmem>>, vector<16x32xf32>,
    %cst_1 = arith.constant 0.000000e+00 : f32
    %2 = vector.broadcast %cst_1 : f32 to vector<9x32xf32>
    %c80 = arith.constant 80 : index
    %c0_2 = arith.constant 0 : index
    %3 = vector.load %arg26[%c80, %c0_2] : memref<89x32xf32, #tpu.memory_space<vmem>>, vector<9x32xf32>
    tpu.vector_store %arg26[%c80, %c0_2], %2 {strides = array<i32>} : memref<89x32xf32, #tpu.memory_space<vmem>>, vector<9x32xf32>,
    %cst_3 = arith.constant 0.000000e+00 : f32
    %4 = vector.broadcast %cst_3 : f32 to vector<16x32xf32>
    %c0_4 = arith.constant 0 : index
    %c0_5 = arith.constant 0 : index
    %5 = vector.load %arg28[%c0_4, %c0_5] : memref<89x32xf32, #tpu.memory_space<vmem>>, vector<16x32xf32>
    tpu.vector_store %arg28[%c0_4, %c0_5], %4 {strides = array<i32>} : memref<89x32xf32, #tpu.memory_space<vmem>>, vector<16x32xf32>,
    %cst_6 = arith.constant 0.000000e+00 : f32
    %6 = vector.broadcast %cst_6 : f32 to vector<9x32xf32>
    %c80_7 = arith.constant 80 : index
    %c0_8 = arith.constant 0 : index
    %7 = vector.load %arg28[%c80_7, %c0_8] : memref<89x32xf32, #tpu.memory_space<vmem>>, vector<9x32xf32>
    tpu.vector_store %arg28[%c80_7, %c0_8], %6 {strides = array<i32>} : memref<89x32xf32, #tpu.memory_space<vmem>>, vector<9x32xf32>,
    %cst_9 = arith.constant 0.000000e+00 : f32
    %8 = vector.broadcast %cst_9 : f32 to vector<16x64xf32>
    %c0_10 = arith.constant 0 : index
    %c0_11 = arith.constant 0 : index
    %9 = vector.load %arg30[%c0_10, %c0_11] : memref<89x64xf32, #tpu.memory_space<vmem>>, vector<16x64xf32>
    tpu.vector_store %arg30[%c0_10, %c0_11], %8 {strides = array<i32>} : memref<89x64xf32, #tpu.memory_space<vmem>>, vector<16x64xf32>,
    %cst_12 = arith.constant 0.000000e+00 : f32
    %10 = vector.broadcast %cst_12 : f32 to vector<9x64xf32>
    %c80_13 = arith.constant 80 : index
    %c0_14 = arith.constant 0 : index
    %11 = vector.load %arg30[%c80_13, %c0_14] : memref<89x64xf32, #tpu.memory_space<vmem>>, vector<9x64xf32>
    tpu.vector_store %arg30[%c80_13, %c0_14], %10 {strides = array<i32>} : memref<89x64xf32, #tpu.memory_space<vmem>>, vector<9x64xf32>,
    %c0_15 = arith.constant 0 : index
    %c0_16 = arith.constant 0 : index
    %12 = vector.load %arg3[%c0_15, %c0_16] : memref<64x1xf32, #tpu.memory_space<vmem>>, vector<64x1xf32>
    %c0_17 = arith.constant 0 : index
    %c0_18 = arith.constant 0 : index
    %13 = vector.load %arg4[%c0_17, %c0_18] : memref<64x1xf32, #tpu.memory_space<vmem>>, vector<64x1xf32>
    %c0_19 = arith.constant 0 : index
    %c0_20 = arith.constant 0 : index
    %c0_21 = arith.constant 0 : index
    %14 = vector.load %arg1[%c0_19, %c0_20, %c0_21] : memref<1x64x32xf32, #tpu.memory_space<vmem>>, vector<1x64x32xf32>
    %15 = vector.shape_cast %14 : vector<1x64x32xf32> to vector<64x32xf32>
    %c0_22 = arith.constant 0 : index
    %c0_23 = arith.constant 0 : index
    %16 = vector.load %arg7[%c0_22, %c0_23] : memref<1x32xf32, #tpu.memory_space<vmem>>, vector<1x32xf32>
    %c0_24 = arith.constant 0 : index
    %c0_25 = arith.constant 0 : index
    %17 = vector.load %arg8[%c0_24, %c0_25] : memref<1x32xf32, #tpu.memory_space<vmem>>, vector<1x32xf32>
    %cst_26 = arith.constant dense<0.000000e+00> : vector<64xf32>
    %18 = vector.multi_reduction <add>, %15, %cst_26 [1] : vector<64x32xf32> to vector<64xf32>
    %19 = vector.shape_cast %18 : vector<64xf32> to vector<64x1xf32>
    %cst_27 = arith.constant 3.200000e+01 : f32
    %20 = vector.broadcast %cst_27 : f32 to vector<64x1xf32>
    %21 = arith.divf %19, %20 : vector<64x1xf32>
    %22 = vector.broadcast %21 : vector<64x1xf32> to vector<64x32xf32>
    %23 = arith.subf %15, %22 : vector<64x32xf32>
    %24 = arith.mulf %23, %23 : vector<64x32xf32>
    %cst_28 = arith.constant dense<0.000000e+00> : vector<64xf32>
    %25 = vector.multi_reduction <add>, %24, %cst_28 [1] : vector<64x32xf32> to vector<64xf32>
    %26 = vector.shape_cast %25 : vector<64xf32> to vector<64x1xf32>
    %cst_29 = arith.constant 3.200000e+01 : f32
    %27 = vector.broadcast %cst_29 : f32 to vector<64x1xf32>
    %28 = arith.divf %26, %27 : vector<64x1xf32>
    %cst_30 = arith.constant 9.99999974E-6 : f32
    %29 = vector.broadcast %cst_30 : f32 to vector<64x1xf32>
    %30 = arith.addf %28, %29 : vector<64x1xf32>
    %31 = math.rsqrt %30 : vector<64x1xf32>
    %32 = vector.broadcast %31 : vector<64x1xf32> to vector<64x32xf32>
    %33 = arith.mulf %23, %32 : vector<64x32xf32>
    %34 = vector.broadcast %16 : vector<1x32xf32> to vector<64x32xf32>
    %35 = arith.mulf %33, %34 : vector<64x32xf32>
    %36 = vector.broadcast %17 : vector<1x32xf32> to vector<64x32xf32>
    %37 = arith.addf %35, %36 : vector<64x32xf32>
    %c16 = arith.constant 16 : index
    %c0_31 = arith.constant 0 : index
    %38 = vector.load %arg26[%c16, %c0_31] : memref<89x32xf32, #tpu.memory_space<vmem>>, vector<64x32xf32>
    tpu.vector_store %arg26[%c16, %c0_31], %37 {strides = array<i32>} : memref<89x32xf32, #tpu.memory_space<vmem>>, vector<64x32xf32>,
    %c7 = arith.constant 7 : index
    %c0_32 = arith.constant 0 : index
    %39 = vector.load %arg26[%c7, %c0_32] : memref<89x32xf32, #tpu.memory_space<vmem>>, vector<64x32xf32>
    %40 = vector.broadcast %12 : vector<64x1xf32> to vector<64x32xf32>
    %41 = arith.mulf %39, %40 : vector<64x32xf32>
    %42 = arith.truncf %41 : vector<64x32xf32> to vector<64x32xbf16>
    %c0_33 = arith.constant 0 : index
    %c0_34 = arith.constant 0 : index
    %43 = vector.load %arg27[%c0_33, %c0_34] : memref<64x288xbf16, #tpu.memory_space<vmem>>, vector<64x32xbf16>
    tpu.vector_store %arg27[%c0_33, %c0_34], %42 {strides = array<i32>} : memref<64x288xbf16, #tpu.memory_space<vmem>>, vector<64x32xbf16>,
    %c8 = arith.constant 8 : index
    %c0_35 = arith.constant 0 : index
    %44 = vector.load %arg26[%c8, %c0_35] : memref<89x32xf32, #tpu.memory_space<vmem>>, vector<64x32xf32>
    %45 = arith.truncf %44 : vector<64x32xf32> to vector<64x32xbf16>
    %c0_36 = arith.constant 0 : index
    %c32 = arith.constant 32 : index
    %46 = vector.load %arg27[%c0_36, %c32] : memref<64x288xbf16, #tpu.memory_space<vmem>>, vector<64x32xbf16>
    tpu.vector_store %arg27[%c0_36, %c32], %45 {strides = array<i32>} : memref<64x288xbf16, #tpu.memory_space<vmem>>, vector<64x32xbf16>,
    %c9 = arith.constant 9 : index
    %c0_37 = arith.constant 0 : index
    %47 = vector.load %arg26[%c9, %c0_37] : memref<89x32xf32, #tpu.memory_space<vmem>>, vector<64x32xf32>
    %48 = vector.broadcast %13 : vector<64x1xf32> to vector<64x32xf32>
    %49 = arith.mulf %47, %48 : vector<64x32xf32>
    %50 = arith.truncf %49 : vector<64x32xf32> to vector<64x32xbf16>
    %c0_38 = arith.constant 0 : index
    %c64 = arith.constant 64 : index
    %51 = vector.load %arg27[%c0_38, %c64] : memref<64x288xbf16, #tpu.memory_space<vmem>>, vector<64x32xbf16>
    tpu.vector_store %arg27[%c0_38, %c64], %50 {strides = array<i32>} : memref<64x288xbf16, #tpu.memory_space<vmem>>, vector<64x32xbf16>,
    %c15 = arith.constant 15 : index
    %c0_39 = arith.constant 0 : index
    %52 = vector.load %arg26[%c15, %c0_39] : memref<89x32xf32, #tpu.memory_space<vmem>>, vector<64x32xf32>
    %53 = vector.broadcast %12 : vector<64x1xf32> to vector<64x32xf32>
    %54 = arith.mulf %52, %53 : vector<64x32xf32>
    %55 = arith.truncf %54 : vector<64x32xf32> to vector<64x32xbf16>
    %c0_40 = arith.constant 0 : index
    %c96 = arith.constant 96 : index
    %56 = vector.load %arg27[%c0_40, %c96] : memref<64x288xbf16, #tpu.memory_space<vmem>>, vector<64x32xbf16>
    tpu.vector_store %arg27[%c0_40, %c96], %55 {strides = array<i32>} : memref<64x288xbf16, #tpu.memory_space<vmem>>, vector<64x32xbf16>,
    %c16_41 = arith.constant 16 : index
    %c0_42 = arith.constant 0 : index
    %57 = vector.load %arg26[%c16_41, %c0_42] : memref<89x32xf32, #tpu.memory_space<vmem>>, vector<64x32xf32>
    %58 = arith.truncf %57 : vector<64x32xf32> to vector<64x32xbf16>
    %c0_43 = arith.constant 0 : index
    %c128 = arith.constant 128 : index
    %59 = vector.load %arg27[%c0_43, %c128] : memref<64x288xbf16, #tpu.memory_space<vmem>>, vector<64x32xbf16>
    tpu.vector_store %arg27[%c0_43, %c128], %58 {strides = array<i32>} : memref<64x288xbf16, #tpu.memory_space<vmem>>, vector<64x32xbf16>,
    %c17 = arith.constant 17 : index
    %c0_44 = arith.constant 0 : index
    %60 = vector.load %arg26[%c17, %c0_44] : memref<89x32xf32, #tpu.memory_space<vmem>>, vector<64x32xf32>
    %61 = vector.broadcast %13 : vector<64x1xf32> to vector<64x32xf32>
    %62 = arith.mulf %60, %61 : vector<64x32xf32>
    %63 = arith.truncf %62 : vector<64x32xf32> to vector<64x32xbf16>
    %c0_45 = arith.constant 0 : index
    %c160 = arith.constant 160 : index
    %64 = vector.load %arg27[%c0_45, %c160] : memref<64x288xbf16, #tpu.memory_space<vmem>>, vector<64x32xbf16>
    tpu.vector_store %arg27[%c0_45, %c160], %63 {strides = array<i32>} : memref<64x288xbf16, #tpu.memory_space<vmem>>, vector<64x32xbf16>,
    %c23 = arith.constant 23 : index
    %c0_46 = arith.constant 0 : index
    %65 = vector.load %arg26[%c23, %c0_46] : memref<89x32xf32, #tpu.memory_space<vmem>>, vector<64x32xf32>
    %66 = vector.broadcast %12 : vector<64x1xf32> to vector<64x32xf32>
    %67 = arith.mulf %65, %66 : vector<64x32xf32>
    %68 = arith.truncf %67 : vector<64x32xf32> to vector<64x32xbf16>
    %c0_47 = arith.constant 0 : index
    %c192 = arith.constant 192 : index
    %69 = vector.load %arg27[%c0_47, %c192] : memref<64x288xbf16, #tpu.memory_space<vmem>>, vector<64x32xbf16>
    tpu.vector_store %arg27[%c0_47, %c192], %68 {strides = array<i32>} : memref<64x288xbf16, #tpu.memory_space<vmem>>, vector<64x32xbf16>,
    %c24 = arith.constant 24 : index
    %c0_48 = arith.constant 0 : index
    %70 = vector.load %arg26[%c24, %c0_48] : memref<89x32xf32, #tpu.memory_space<vmem>>, vector<64x32xf32>
    %71 = arith.truncf %70 : vector<64x32xf32> to vector<64x32xbf16>
    %c0_49 = arith.constant 0 : index
    %c224 = arith.constant 224 : index
    %72 = vector.load %arg27[%c0_49, %c224] : memref<64x288xbf16, #tpu.memory_space<vmem>>, vector<64x32xbf16>
    tpu.vector_store %arg27[%c0_49, %c224], %71 {strides = array<i32>} : memref<64x288xbf16, #tpu.memory_space<vmem>>, vector<64x32xbf16>,
    %c25 = arith.constant 25 : index
    %c0_50 = arith.constant 0 : index
    %73 = vector.load %arg26[%c25, %c0_50] : memref<89x32xf32, #tpu.memory_space<vmem>>, vector<64x32xf32>
    %74 = vector.broadcast %13 : vector<64x1xf32> to vector<64x32xf32>
    %75 = arith.mulf %73, %74 : vector<64x32xf32>
    %76 = arith.truncf %75 : vector<64x32xf32> to vector<64x32xbf16>
    %c0_51 = arith.constant 0 : index
    %c256 = arith.constant 256 : index
    %77 = vector.load %arg27[%c0_51, %c256] : memref<64x288xbf16, #tpu.memory_space<vmem>>, vector<64x32xbf16>
    tpu.vector_store %arg27[%c0_51, %c256], %76 {strides = array<i32>} : memref<64x288xbf16, #tpu.memory_space<vmem>>, vector<64x32xbf16>,
    %c0_52 = arith.constant 0 : index
    %c0_53 = arith.constant 0 : index
    %78 = vector.load %arg27[%c0_52, %c0_53] : memref<64x288xbf16, #tpu.memory_space<vmem>>, vector<64x288xbf16>
    %c0_54 = arith.constant 0 : index
    %c0_55 = arith.constant 0 : index
    %79 = vector.load %arg11[%c0_54, %c0_55] : memref<288x32xbf16, #tpu.memory_space<vmem>>, vector<288x32xbf16>
    %cst_56 = arith.constant dense<0.000000e+00> : vector<64x32xf32>
    %80 = tpu.matmul %78, %79, %cst_56 {dimension_numbers = #tpu.dot_dimension_numbers<[1], [0], [0], [1], [0, 0, 1, 1], [], []>} : vector<64x288xbf16>, vector<288x32xbf16>, vector<64x32xf32> -> vector<64x32xf32>
    %c0_57 = arith.constant 0 : index
    %c0_58 = arith.constant 0 : index
    %81 = vector.load %arg12[%c0_57, %c0_58] : memref<1x32xf32, #tpu.memory_space<vmem>>, vector<1x32xf32>
    %82 = vector.broadcast %81 : vector<1x32xf32> to vector<64x32xf32>
    %83 = arith.addf %80, %82 : vector<64x32xf32>
    %cst_59 = arith.constant 5.000000e-01 : f32
    %84 = vector.broadcast %cst_59 : f32 to vector<64x32xf32>
    %85 = arith.mulf %84, %83 : vector<64x32xf32>
    %cst_60 = arith.constant 4.471500e-02 : f32
    %86 = vector.broadcast %cst_60 : f32 to vector<64x32xf32>
    %87 = arith.mulf %86, %83 : vector<64x32xf32>
    %88 = arith.mulf %87, %83 : vector<64x32xf32>
    %89 = arith.mulf %88, %83 : vector<64x32xf32>
    %90 = arith.addf %83, %89 : vector<64x32xf32>
    %cst_61 = arith.constant 0.797884583 : f32
    %91 = vector.broadcast %cst_61 : f32 to vector<64x32xf32>
    %92 = arith.mulf %91, %90 : vector<64x32xf32>
    %93 = math.tanh %92 : vector<64x32xf32>
    %cst_62 = arith.constant 1.000000e+00 : f32
    %94 = vector.broadcast %cst_62 : f32 to vector<64x32xf32>
    %95 = arith.addf %94, %93 : vector<64x32xf32>
    %96 = arith.mulf %85, %95 : vector<64x32xf32>
    %c16_63 = arith.constant 16 : index
    %c0_64 = arith.constant 0 : index
    %97 = vector.load %arg28[%c16_63, %c0_64] : memref<89x32xf32, #tpu.memory_space<vmem>>, vector<64x32xf32>
    tpu.vector_store %arg28[%c16_63, %c0_64], %96 {strides = array<i32>} : memref<89x32xf32, #tpu.memory_space<vmem>>, vector<64x32xf32>,
    %c7_65 = arith.constant 7 : index
    %c0_66 = arith.constant 0 : index
    %98 = vector.load %arg28[%c7_65, %c0_66] : memref<89x32xf32, #tpu.memory_space<vmem>>, vector<64x32xf32>
    %99 = vector.broadcast %12 : vector<64x1xf32> to vector<64x32xf32>
    %100 = arith.mulf %98, %99 : vector<64x32xf32>
    %101 = arith.truncf %100 : vector<64x32xf32> to vector<64x32xbf16>
    %c0_67 = arith.constant 0 : index
    %c0_68 = arith.constant 0 : index
    %102 = vector.load %arg29[%c0_67, %c0_68] : memref<64x288xbf16, #tpu.memory_space<vmem>>, vector<64x32xbf16>
    tpu.vector_store %arg29[%c0_67, %c0_68], %101 {strides = array<i32>} : memref<64x288xbf16, #tpu.memory_space<vmem>>, vector<64x32xbf16>,
    %c8_69 = arith.constant 8 : index
    %c0_70 = arith.constant 0 : index
    %103 = vector.load %arg28[%c8_69, %c0_70] : memref<89x32xf32, #tpu.memory_space<vmem>>, vector<64x32xf32>
    %104 = arith.truncf %103 : vector<64x32xf32> to vector<64x32xbf16>
    %c0_71 = arith.constant 0 : index
    %c32_72 = arith.constant 32 : index
    %105 = vector.load %arg29[%c0_71, %c32_72] : memref<64x288xbf16, #tpu.memory_space<vmem>>, vector<64x32xbf16>
    tpu.vector_store %arg29[%c0_71, %c32_72], %104 {strides = array<i32>} : memref<64x288xbf16, #tpu.memory_space<vmem>>, vector<64x32xbf16>,
    %c9_73 = arith.constant 9 : index
    %c0_74 = arith.constant 0 : index
    %106 = vector.load %arg28[%c9_73, %c0_74] : memref<89x32xf32, #tpu.memory_space<vmem>>, vector<64x32xf32>
    %107 = vector.broadcast %13 : vector<64x1xf32> to vector<64x32xf32>
    %108 = arith.mulf %106, %107 : vector<64x32xf32>
    %109 = arith.truncf %108 : vector<64x32xf32> to vector<64x32xbf16>
    %c0_75 = arith.constant 0 : index
    %c64_76 = arith.constant 64 : index
    %110 = vector.load %arg29[%c0_75, %c64_76] : memref<64x288xbf16, #tpu.memory_space<vmem>>, vector<64x32xbf16>
    tpu.vector_store %arg29[%c0_75, %c64_76], %109 {strides = array<i32>} : memref<64x288xbf16, #tpu.memory_space<vmem>>, vector<64x32xbf16>,
    %c15_77 = arith.constant 15 : index
    %c0_78 = arith.constant 0 : index
    %111 = vector.load %arg28[%c15_77, %c0_78] : memref<89x32xf32, #tpu.memory_space<vmem>>, vector<64x32xf32>
    %112 = vector.broadcast %12 : vector<64x1xf32> to vector<64x32xf32>
    %113 = arith.mulf %111, %112 : vector<64x32xf32>
    %114 = arith.truncf %113 : vector<64x32xf32> to vector<64x32xbf16>
    %c0_79 = arith.constant 0 : index
    %c96_80 = arith.constant 96 : index
    %115 = vector.load %arg29[%c0_79, %c96_80] : memref<64x288xbf16, #tpu.memory_space<vmem>>, vector<64x32xbf16>
    tpu.vector_store %arg29[%c0_79, %c96_80], %114 {strides = array<i32>} : memref<64x288xbf16, #tpu.memory_space<vmem>>, vector<64x32xbf16>,
    %c16_81 = arith.constant 16 : index
    %c0_82 = arith.constant 0 : index
    %116 = vector.load %arg28[%c16_81, %c0_82] : memref<89x32xf32, #tpu.memory_space<vmem>>, vector<64x32xf32>
    %117 = arith.truncf %116 : vector<64x32xf32> to vector<64x32xbf16>
    %c0_83 = arith.constant 0 : index
    %c128_84 = arith.constant 128 : index
    %118 = vector.load %arg29[%c0_83, %c128_84] : memref<64x288xbf16, #tpu.memory_space<vmem>>, vector<64x32xbf16>
    tpu.vector_store %arg29[%c0_83, %c128_84], %117 {strides = array<i32>} : memref<64x288xbf16, #tpu.memory_space<vmem>>, vector<64x32xbf16>,
    %c17_85 = arith.constant 17 : index
    %c0_86 = arith.constant 0 : index
    %119 = vector.load %arg28[%c17_85, %c0_86] : memref<89x32xf32, #tpu.memory_space<vmem>>, vector<64x32xf32>
    %120 = vector.broadcast %13 : vector<64x1xf32> to vector<64x32xf32>
    %121 = arith.mulf %119, %120 : vector<64x32xf32>
    %122 = arith.truncf %121 : vector<64x32xf32> to vector<64x32xbf16>
    %c0_87 = arith.constant 0 : index
    %c160_88 = arith.constant 160 : index
    %123 = vector.load %arg29[%c0_87, %c160_88] : memref<64x288xbf16, #tpu.memory_space<vmem>>, vector<64x32xbf16>
    tpu.vector_store %arg29[%c0_87, %c160_88], %122 {strides = array<i32>} : memref<64x288xbf16, #tpu.memory_space<vmem>>, vector<64x32xbf16>,
    %c23_89 = arith.constant 23 : index
    %c0_90 = arith.constant 0 : index
    %124 = vector.load %arg28[%c23_89, %c0_90] : memref<89x32xf32, #tpu.memory_space<vmem>>, vector<64x32xf32>
    %125 = vector.broadcast %12 : vector<64x1xf32> to vector<64x32xf32>
    %126 = arith.mulf %124, %125 : vector<64x32xf32>
    %127 = arith.truncf %126 : vector<64x32xf32> to vector<64x32xbf16>
    %c0_91 = arith.constant 0 : index
    %c192_92 = arith.constant 192 : index
    %128 = vector.load %arg29[%c0_91, %c192_92] : memref<64x288xbf16, #tpu.memory_space<vmem>>, vector<64x32xbf16>
    tpu.vector_store %arg29[%c0_91, %c192_92], %127 {strides = array<i32>} : memref<64x288xbf16, #tpu.memory_space<vmem>>, vector<64x32xbf16>,
    %c24_93 = arith.constant 24 : index
    %c0_94 = arith.constant 0 : index
    %129 = vector.load %arg28[%c24_93, %c0_94] : memref<89x32xf32, #tpu.memory_space<vmem>>, vector<64x32xf32>
    %130 = arith.truncf %129 : vector<64x32xf32> to vector<64x32xbf16>
    %c0_95 = arith.constant 0 : index
    %c224_96 = arith.constant 224 : index
    %131 = vector.load %arg29[%c0_95, %c224_96] : memref<64x288xbf16, #tpu.memory_space<vmem>>, vector<64x32xbf16>
    tpu.vector_store %arg29[%c0_95, %c224_96], %130 {strides = array<i32>} : memref<64x288xbf16, #tpu.memory_space<vmem>>, vector<64x32xbf16>,
    %c25_97 = arith.constant 25 : index
    %c0_98 = arith.constant 0 : index
    %132 = vector.load %arg28[%c25_97, %c0_98] : memref<89x32xf32, #tpu.memory_space<vmem>>, vector<64x32xf32>
    %133 = vector.broadcast %13 : vector<64x1xf32> to vector<64x32xf32>
    %134 = arith.mulf %132, %133 : vector<64x32xf32>
    %135 = arith.truncf %134 : vector<64x32xf32> to vector<64x32xbf16>
    %c0_99 = arith.constant 0 : index
    %c256_100 = arith.constant 256 : index
    %136 = vector.load %arg29[%c0_99, %c256_100] : memref<64x288xbf16, #tpu.memory_space<vmem>>, vector<64x32xbf16>
    tpu.vector_store %arg29[%c0_99, %c256_100], %135 {strides = array<i32>} : memref<64x288xbf16, #tpu.memory_space<vmem>>, vector<64x32xbf16>,
    %c0_101 = arith.constant 0 : index
    %c0_102 = arith.constant 0 : index
    %137 = vector.load %arg29[%c0_101, %c0_102] : memref<64x288xbf16, #tpu.memory_space<vmem>>, vector<64x288xbf16>
    %c0_103 = arith.constant 0 : index
    %c0_104 = arith.constant 0 : index
    %138 = vector.load %arg13[%c0_103, %c0_104] : memref<288x32xbf16, #tpu.memory_space<vmem>>, vector<288x32xbf16>
    %cst_105 = arith.constant dense<0.000000e+00> : vector<64x32xf32>
    %139 = tpu.matmul %137, %138, %cst_105 {dimension_numbers = #tpu.dot_dimension_numbers<[1], [0], [0], [1], [0, 0, 1, 1], [], []>} : vector<64x288xbf16>, vector<288x32xbf16>, vector<64x32xf32> -> vector<64x32xf32>
    %c0_106 = arith.constant 0 : index
    %c0_107 = arith.constant 0 : index
    %140 = vector.load %arg14[%c0_106, %c0_107] : memref<1x32xf32, #tpu.memory_space<vmem>>, vector<1x32xf32>
    %141 = vector.broadcast %140 : vector<1x32xf32> to vector<64x32xf32>
    %142 = arith.addf %139, %141 : vector<64x32xf32>
    %c0_108 = arith.constant 0 : index
    %c0_109 = arith.constant 0 : index
    %c0_110 = arith.constant 0 : index
    %143 = vector.load %arg24[%c0_108, %c0_109, %c0_110] : memref<1x64x32xf32, #tpu.memory_space<vmem>>, vector<1x64x32xf32>
    %144 = vector.shape_cast %143 : vector<1x64x32xf32> to vector<64x32xf32>
    %145 = vector.shape_cast %142 : vector<64x32xf32> to vector<1x64x32xf32>
    tpu.vector_store %arg24[%c0_108, %c0_109, %c0_110], %145 {strides = array<i32>} : memref<1x64x32xf32, #tpu.memory_space<vmem>>, vector<1x64x32xf32>,
    %c0_111 = arith.constant 0 : index
    %c0_112 = arith.constant 0 : index
    %c0_113 = arith.constant 0 : index
    %146 = vector.load %arg2[%c0_111, %c0_112, %c0_113] : memref<1x64x64xf32, #tpu.memory_space<vmem>>, vector<1x64x64xf32>
    %147 = vector.shape_cast %146 : vector<1x64x64xf32> to vector<64x64xf32>
    %c16_114 = arith.constant 16 : index
    %c0_115 = arith.constant 0 : index
    %148 = vector.load %arg30[%c16_114, %c0_115] : memref<89x64xf32, #tpu.memory_space<vmem>>, vector<64x64xf32>
    tpu.vector_store %arg30[%c16_114, %c0_115], %147 {strides = array<i32>} : memref<89x64xf32, #tpu.memory_space<vmem>>, vector<64x64xf32>,
    %c7_116 = arith.constant 7 : index
    %c0_117 = arith.constant 0 : index
    %149 = vector.load %arg30[%c7_116, %c0_117] : memref<89x64xf32, #tpu.memory_space<vmem>>, vector<64x64xf32>
    %150 = vector.broadcast %12 : vector<64x1xf32> to vector<64x64xf32>
    %151 = arith.mulf %149, %150 : vector<64x64xf32>
    %152 = arith.truncf %151 : vector<64x64xf32> to vector<64x64xbf16>
    %c0_118 = arith.constant 0 : index
    %c0_119 = arith.constant 0 : index
    %153 = vector.load %arg31[%c0_118, %c0_119] : memref<64x256xbf16, #tpu.memory_space<vmem>>, vector<64x64xbf16>
    tpu.vector_store %arg31[%c0_118, %c0_119], %152 {strides = array<i32>} : memref<64x256xbf16, #tpu.memory_space<vmem>>, vector<64x64xbf16>,
    %c8_120 = arith.constant 8 : index
    %c0_121 = arith.constant 0 : index
    %154 = vector.load %arg30[%c8_120, %c0_121] : memref<89x64xf32, #tpu.memory_space<vmem>>, vector<64x64xf32>
    %155 = arith.truncf %154 : vector<64x64xf32> to vector<64x64xbf16>
    %c0_122 = arith.constant 0 : index
    %c64_123 = arith.constant 64 : index
    %156 = vector.load %arg31[%c0_122, %c64_123] : memref<64x256xbf16, #tpu.memory_space<vmem>>, vector<64x64xbf16>
    tpu.vector_store %arg31[%c0_122, %c64_123], %155 {strides = array<i32>} : memref<64x256xbf16, #tpu.memory_space<vmem>>, vector<64x64xbf16>,
    %c15_124 = arith.constant 15 : index
    %c0_125 = arith.constant 0 : index
    %157 = vector.load %arg30[%c15_124, %c0_125] : memref<89x64xf32, #tpu.memory_space<vmem>>, vector<64x64xf32>
    %158 = vector.broadcast %12 : vector<64x1xf32> to vector<64x64xf32>
    %159 = arith.mulf %157, %158 : vector<64x64xf32>
    %160 = arith.truncf %159 : vector<64x64xf32> to vector<64x64xbf16>
    %c0_126 = arith.constant 0 : index
    %c128_127 = arith.constant 128 : index
    %161 = vector.load %arg31[%c0_126, %c128_127] : memref<64x256xbf16, #tpu.memory_space<vmem>>, vector<64x64xbf16>
    tpu.vector_store %arg31[%c0_126, %c128_127], %160 {strides = array<i32>} : memref<64x256xbf16, #tpu.memory_space<vmem>>, vector<64x64xbf16>,
    %c16_128 = arith.constant 16 : index
    %c0_129 = arith.constant 0 : index
    %162 = vector.load %arg30[%c16_128, %c0_129] : memref<89x64xf32, #tpu.memory_space<vmem>>, vector<64x64xf32>
    %163 = arith.truncf %162 : vector<64x64xf32> to vector<64x64xbf16>
    %c0_130 = arith.constant 0 : index
    %c192_131 = arith.constant 192 : index
    %164 = vector.load %arg31[%c0_130, %c192_131] : memref<64x256xbf16, #tpu.memory_space<vmem>>, vector<64x64xbf16>
    tpu.vector_store %arg31[%c0_130, %c192_131], %163 {strides = array<i32>} : memref<64x256xbf16, #tpu.memory_space<vmem>>, vector<64x64xbf16>,
    %c0_132 = arith.constant 0 : index
    %c0_133 = arith.constant 0 : index
    %165 = vector.load %arg31[%c0_132, %c0_133] : memref<64x256xbf16, #tpu.memory_space<vmem>>, vector<64x256xbf16>
    %c0_134 = arith.constant 0 : index
    %c0_135 = arith.constant 0 : index
    %166 = vector.load %arg5[%c0_134, %c0_135] : memref<256x32xbf16, #tpu.memory_space<vmem>>, vector<256x32xbf16>
    %cst_136 = arith.constant dense<0.000000e+00> : vector<64x32xf32>
    %167 = tpu.matmul %165, %166, %cst_136 {dimension_numbers = #tpu.dot_dimension_numbers<[1], [0], [0], [1], [0, 0, 1, 1], [], []>} : vector<64x256xbf16>, vector<256x32xbf16>, vector<64x32xf32> -> vector<64x32xf32>
    %c0_137 = arith.constant 0 : index
    %c0_138 = arith.constant 0 : index
    %168 = vector.load %arg6[%c0_137, %c0_138] : memref<1x32xf32, #tpu.memory_space<vmem>>, vector<1x32xf32>
    %169 = vector.broadcast %168 : vector<1x32xf32> to vector<64x32xf32>
    %170 = arith.addf %167, %169 : vector<64x32xf32>
    %c0_139 = arith.constant 0 : index
    %c0_140 = arith.constant 0 : index
    %171 = vector.load %arg9[%c0_139, %c0_140] : memref<1x32xf32, #tpu.memory_space<vmem>>, vector<1x32xf32>
    %c0_141 = arith.constant 0 : index
    %c0_142 = arith.constant 0 : index
    %172 = vector.load %arg10[%c0_141, %c0_142] : memref<1x32xf32, #tpu.memory_space<vmem>>, vector<1x32xf32>
    %cst_143 = arith.constant dense<0.000000e+00> : vector<64xf32>
    %173 = vector.multi_reduction <add>, %170, %cst_143 [1] : vector<64x32xf32> to vector<64xf32>
    %174 = vector.shape_cast %173 : vector<64xf32> to vector<64x1xf32>
    %cst_144 = arith.constant 3.200000e+01 : f32
    %175 = vector.broadcast %cst_144 : f32 to vector<64x1xf32>
    %176 = arith.divf %174, %175 : vector<64x1xf32>
    %177 = vector.broadcast %176 : vector<64x1xf32> to vector<64x32xf32>
    %178 = arith.subf %170, %177 : vector<64x32xf32>
    %179 = arith.mulf %178, %178 : vector<64x32xf32>
    %cst_145 = arith.constant dense<0.000000e+00> : vector<64xf32>
    %180 = vector.multi_reduction <add>, %179, %cst_145 [1] : vector<64x32xf32> to vector<64xf32>
    %181 = vector.shape_cast %180 : vector<64xf32> to vector<64x1xf32>
    %cst_146 = arith.constant 3.200000e+01 : f32
    %182 = vector.broadcast %cst_146 : f32 to vector<64x1xf32>
    %183 = arith.divf %181, %182 : vector<64x1xf32>
    %cst_147 = arith.constant 9.99999974E-6 : f32
    %184 = vector.broadcast %cst_147 : f32 to vector<64x1xf32>
    %185 = arith.addf %183, %184 : vector<64x1xf32>
    %186 = math.rsqrt %185 : vector<64x1xf32>
    %187 = vector.broadcast %186 : vector<64x1xf32> to vector<64x32xf32>
    %188 = arith.mulf %178, %187 : vector<64x32xf32>
    %189 = vector.broadcast %171 : vector<1x32xf32> to vector<64x32xf32>
    %190 = arith.mulf %188, %189 : vector<64x32xf32>
    %191 = vector.broadcast %172 : vector<1x32xf32> to vector<64x32xf32>
    %192 = arith.addf %190, %191 : vector<64x32xf32>
    %c16_148 = arith.constant 16 : index
    %c0_149 = arith.constant 0 : index
    %193 = vector.load %arg26[%c16_148, %c0_149] : memref<89x32xf32, #tpu.memory_space<vmem>>, vector<64x32xf32>
    tpu.vector_store %arg26[%c16_148, %c0_149], %192 {strides = array<i32>} : memref<89x32xf32, #tpu.memory_space<vmem>>, vector<64x32xf32>,
    %c7_150 = arith.constant 7 : index
    %c0_151 = arith.constant 0 : index
    %194 = vector.load %arg26[%c7_150, %c0_151] : memref<89x32xf32, #tpu.memory_space<vmem>>, vector<64x32xf32>
    %195 = vector.broadcast %12 : vector<64x1xf32> to vector<64x32xf32>
    %196 = arith.mulf %194, %195 : vector<64x32xf32>
    %197 = arith.truncf %196 : vector<64x32xf32> to vector<64x32xbf16>
    %c0_152 = arith.constant 0 : index
    %c0_153 = arith.constant 0 : index
    %198 = vector.load %arg27[%c0_152, %c0_153] : memref<64x288xbf16, #tpu.memory_space<vmem>>, vector<64x32xbf16>
    tpu.vector_store %arg27[%c0_152, %c0_153], %197 {strides = array<i32>} : memref<64x288xbf16, #tpu.memory_space<vmem>>, vector<64x32xbf16>,
    %c8_154 = arith.constant 8 : index
    %c0_155 = arith.constant 0 : index
    %199 = vector.load %arg26[%c8_154, %c0_155] : memref<89x32xf32, #tpu.memory_space<vmem>>, vector<64x32xf32>
    %200 = arith.truncf %199 : vector<64x32xf32> to vector<64x32xbf16>
    %c0_156 = arith.constant 0 : index
    %c32_157 = arith.constant 32 : index
    %201 = vector.load %arg27[%c0_156, %c32_157] : memref<64x288xbf16, #tpu.memory_space<vmem>>, vector<64x32xbf16>
    tpu.vector_store %arg27[%c0_156, %c32_157], %200 {strides = array<i32>} : memref<64x288xbf16, #tpu.memory_space<vmem>>, vector<64x32xbf16>,
    %c9_158 = arith.constant 9 : index
    %c0_159 = arith.constant 0 : index
    %202 = vector.load %arg26[%c9_158, %c0_159] : memref<89x32xf32, #tpu.memory_space<vmem>>, vector<64x32xf32>
    %203 = vector.broadcast %13 : vector<64x1xf32> to vector<64x32xf32>
    %204 = arith.mulf %202, %203 : vector<64x32xf32>
    %205 = arith.truncf %204 : vector<64x32xf32> to vector<64x32xbf16>
    %c0_160 = arith.constant 0 : index
    %c64_161 = arith.constant 64 : index
    %206 = vector.load %arg27[%c0_160, %c64_161] : memref<64x288xbf16, #tpu.memory_space<vmem>>, vector<64x32xbf16>
    tpu.vector_store %arg27[%c0_160, %c64_161], %205 {strides = array<i32>} : memref<64x288xbf16, #tpu.memory_space<vmem>>, vector<64x32xbf16>,
    %c15_162 = arith.constant 15 : index
    %c0_163 = arith.constant 0 : index
    %207 = vector.load %arg26[%c15_162, %c0_163] : memref<89x32xf32, #tpu.memory_space<vmem>>, vector<64x32xf32>
    %208 = vector.broadcast %12 : vector<64x1xf32> to vector<64x32xf32>
    %209 = arith.mulf %207, %208 : vector<64x32xf32>
    %210 = arith.truncf %209 : vector<64x32xf32> to vector<64x32xbf16>
    %c0_164 = arith.constant 0 : index
    %c96_165 = arith.constant 96 : index
    %211 = vector.load %arg27[%c0_164, %c96_165] : memref<64x288xbf16, #tpu.memory_space<vmem>>, vector<64x32xbf16>
    tpu.vector_store %arg27[%c0_164, %c96_165], %210 {strides = array<i32>} : memref<64x288xbf16, #tpu.memory_space<vmem>>, vector<64x32xbf16>,
    %c16_166 = arith.constant 16 : index
    %c0_167 = arith.constant 0 : index
    %212 = vector.load %arg26[%c16_166, %c0_167] : memref<89x32xf32, #tpu.memory_space<vmem>>, vector<64x32xf32>
    %213 = arith.truncf %212 : vector<64x32xf32> to vector<64x32xbf16>
    %c0_168 = arith.constant 0 : index
    %c128_169 = arith.constant 128 : index
    %214 = vector.load %arg27[%c0_168, %c128_169] : memref<64x288xbf16, #tpu.memory_space<vmem>>, vector<64x32xbf16>
    tpu.vector_store %arg27[%c0_168, %c128_169], %213 {strides = array<i32>} : memref<64x288xbf16, #tpu.memory_space<vmem>>, vector<64x32xbf16>,
    %c17_170 = arith.constant 17 : index
    %c0_171 = arith.constant 0 : index
    %215 = vector.load %arg26[%c17_170, %c0_171] : memref<89x32xf32, #tpu.memory_space<vmem>>, vector<64x32xf32>
    %216 = vector.broadcast %13 : vector<64x1xf32> to vector<64x32xf32>
    %217 = arith.mulf %215, %216 : vector<64x32xf32>
    %218 = arith.truncf %217 : vector<64x32xf32> to vector<64x32xbf16>
    %c0_172 = arith.constant 0 : index
    %c160_173 = arith.constant 160 : index
    %219 = vector.load %arg27[%c0_172, %c160_173] : memref<64x288xbf16, #tpu.memory_space<vmem>>, vector<64x32xbf16>
    tpu.vector_store %arg27[%c0_172, %c160_173], %218 {strides = array<i32>} : memref<64x288xbf16, #tpu.memory_space<vmem>>, vector<64x32xbf16>,
    %c23_174 = arith.constant 23 : index
    %c0_175 = arith.constant 0 : index
    %220 = vector.load %arg26[%c23_174, %c0_175] : memref<89x32xf32, #tpu.memory_space<vmem>>, vector<64x32xf32>
    %221 = vector.broadcast %12 : vector<64x1xf32> to vector<64x32xf32>
    %222 = arith.mulf %220, %221 : vector<64x32xf32>
    %223 = arith.truncf %222 : vector<64x32xf32> to vector<64x32xbf16>
    %c0_176 = arith.constant 0 : index
    %c192_177 = arith.constant 192 : index
    %224 = vector.load %arg27[%c0_176, %c192_177] : memref<64x288xbf16, #tpu.memory_space<vmem>>, vector<64x32xbf16>
    tpu.vector_store %arg27[%c0_176, %c192_177], %223 {strides = array<i32>} : memref<64x288xbf16, #tpu.memory_space<vmem>>, vector<64x32xbf16>,
    %c24_178 = arith.constant 24 : index
    %c0_179 = arith.constant 0 : index
    %225 = vector.load %arg26[%c24_178, %c0_179] : memref<89x32xf32, #tpu.memory_space<vmem>>, vector<64x32xf32>
    %226 = arith.truncf %225 : vector<64x32xf32> to vector<64x32xbf16>
    %c0_180 = arith.constant 0 : index
    %c224_181 = arith.constant 224 : index
    %227 = vector.load %arg27[%c0_180, %c224_181] : memref<64x288xbf16, #tpu.memory_space<vmem>>, vector<64x32xbf16>
    tpu.vector_store %arg27[%c0_180, %c224_181], %226 {strides = array<i32>} : memref<64x288xbf16, #tpu.memory_space<vmem>>, vector<64x32xbf16>,
    %c25_182 = arith.constant 25 : index
    %c0_183 = arith.constant 0 : index
    %228 = vector.load %arg26[%c25_182, %c0_183] : memref<89x32xf32, #tpu.memory_space<vmem>>, vector<64x32xf32>
    %229 = vector.broadcast %13 : vector<64x1xf32> to vector<64x32xf32>
    %230 = arith.mulf %228, %229 : vector<64x32xf32>
    %231 = arith.truncf %230 : vector<64x32xf32> to vector<64x32xbf16>
    %c0_184 = arith.constant 0 : index
    %c256_185 = arith.constant 256 : index
    %232 = vector.load %arg27[%c0_184, %c256_185] : memref<64x288xbf16, #tpu.memory_space<vmem>>, vector<64x32xbf16>
    tpu.vector_store %arg27[%c0_184, %c256_185], %231 {strides = array<i32>} : memref<64x288xbf16, #tpu.memory_space<vmem>>, vector<64x32xbf16>,
    %c0_186 = arith.constant 0 : index
    %c0_187 = arith.constant 0 : index
    %233 = vector.load %arg27[%c0_186, %c0_187] : memref<64x288xbf16, #tpu.memory_space<vmem>>, vector<64x288xbf16>
    %c0_188 = arith.constant 0 : index
    %c0_189 = arith.constant 0 : index
    %234 = vector.load %arg15[%c0_188, %c0_189] : memref<288x32xbf16, #tpu.memory_space<vmem>>, vector<288x32xbf16>
    %cst_190 = arith.constant dense<0.000000e+00> : vector<64x32xf32>
    %235 = tpu.matmul %233, %234, %cst_190 {dimension_numbers = #tpu.dot_dimension_numbers<[1], [0], [0], [1], [0, 0, 1, 1], [], []>} : vector<64x288xbf16>, vector<288x32xbf16>, vector<64x32xf32> -> vector<64x32xf32>
    %c0_191 = arith.constant 0 : index
    %c0_192 = arith.constant 0 : index
    %236 = vector.load %arg16[%c0_191, %c0_192] : memref<1x32xf32, #tpu.memory_space<vmem>>, vector<1x32xf32>
    %237 = vector.broadcast %236 : vector<1x32xf32> to vector<64x32xf32>
    %238 = arith.addf %235, %237 : vector<64x32xf32>
    %cst_193 = arith.constant 5.000000e-01 : f32
    %239 = vector.broadcast %cst_193 : f32 to vector<64x32xf32>
    %240 = arith.mulf %239, %238 : vector<64x32xf32>
    %cst_194 = arith.constant 4.471500e-02 : f32
    %241 = vector.broadcast %cst_194 : f32 to vector<64x32xf32>
    %242 = arith.mulf %241, %238 : vector<64x32xf32>
    %243 = arith.mulf %242, %238 : vector<64x32xf32>
    %244 = arith.mulf %243, %238 : vector<64x32xf32>
    %245 = arith.addf %238, %244 : vector<64x32xf32>
    %cst_195 = arith.constant 0.797884583 : f32
    %246 = vector.broadcast %cst_195 : f32 to vector<64x32xf32>
    %247 = arith.mulf %246, %245 : vector<64x32xf32>
    %248 = math.tanh %247 : vector<64x32xf32>
    %cst_196 = arith.constant 1.000000e+00 : f32
    %249 = vector.broadcast %cst_196 : f32 to vector<64x32xf32>
    %250 = arith.addf %249, %248 : vector<64x32xf32>
    %251 = arith.mulf %240, %250 : vector<64x32xf32>
    %c16_197 = arith.constant 16 : index
    %c0_198 = arith.constant 0 : index
    %252 = vector.load %arg28[%c16_197, %c0_198] : memref<89x32xf32, #tpu.memory_space<vmem>>, vector<64x32xf32>
    tpu.vector_store %arg28[%c16_197, %c0_198], %251 {strides = array<i32>} : memref<89x32xf32, #tpu.memory_space<vmem>>, vector<64x32xf32>,
    %c7_199 = arith.constant 7 : index
    %c0_200 = arith.constant 0 : index
    %253 = vector.load %arg28[%c7_199, %c0_200] : memref<89x32xf32, #tpu.memory_space<vmem>>, vector<64x32xf32>
    %254 = vector.broadcast %12 : vector<64x1xf32> to vector<64x32xf32>
    %255 = arith.mulf %253, %254 : vector<64x32xf32>
    %256 = arith.truncf %255 : vector<64x32xf32> to vector<64x32xbf16>
    %c0_201 = arith.constant 0 : index
    %c0_202 = arith.constant 0 : index
    %257 = vector.load %arg29[%c0_201, %c0_202] : memref<64x288xbf16, #tpu.memory_space<vmem>>, vector<64x32xbf16>
    tpu.vector_store %arg29[%c0_201, %c0_202], %256 {strides = array<i32>} : memref<64x288xbf16, #tpu.memory_space<vmem>>, vector<64x32xbf16>,
    %c8_203 = arith.constant 8 : index
    %c0_204 = arith.constant 0 : index
    %258 = vector.load %arg28[%c8_203, %c0_204] : memref<89x32xf32, #tpu.memory_space<vmem>>, vector<64x32xf32>
    %259 = arith.truncf %258 : vector<64x32xf32> to vector<64x32xbf16>
    %c0_205 = arith.constant 0 : index
    %c32_206 = arith.constant 32 : index
    %260 = vector.load %arg29[%c0_205, %c32_206] : memref<64x288xbf16, #tpu.memory_space<vmem>>, vector<64x32xbf16>
    tpu.vector_store %arg29[%c0_205, %c32_206], %259 {strides = array<i32>} : memref<64x288xbf16, #tpu.memory_space<vmem>>, vector<64x32xbf16>,
    %c9_207 = arith.constant 9 : index
    %c0_208 = arith.constant 0 : index
    %261 = vector.load %arg28[%c9_207, %c0_208] : memref<89x32xf32, #tpu.memory_space<vmem>>, vector<64x32xf32>
    %262 = vector.broadcast %13 : vector<64x1xf32> to vector<64x32xf32>
    %263 = arith.mulf %261, %262 : vector<64x32xf32>
    %264 = arith.truncf %263 : vector<64x32xf32> to vector<64x32xbf16>
    %c0_209 = arith.constant 0 : index
    %c64_210 = arith.constant 64 : index
    %265 = vector.load %arg29[%c0_209, %c64_210] : memref<64x288xbf16, #tpu.memory_space<vmem>>, vector<64x32xbf16>
    tpu.vector_store %arg29[%c0_209, %c64_210], %264 {strides = array<i32>} : memref<64x288xbf16, #tpu.memory_space<vmem>>, vector<64x32xbf16>,
    %c15_211 = arith.constant 15 : index
    %c0_212 = arith.constant 0 : index
    %266 = vector.load %arg28[%c15_211, %c0_212] : memref<89x32xf32, #tpu.memory_space<vmem>>, vector<64x32xf32>
    %267 = vector.broadcast %12 : vector<64x1xf32> to vector<64x32xf32>
    %268 = arith.mulf %266, %267 : vector<64x32xf32>
    %269 = arith.truncf %268 : vector<64x32xf32> to vector<64x32xbf16>
    %c0_213 = arith.constant 0 : index
    %c96_214 = arith.constant 96 : index
    %270 = vector.load %arg29[%c0_213, %c96_214] : memref<64x288xbf16, #tpu.memory_space<vmem>>, vector<64x32xbf16>
    tpu.vector_store %arg29[%c0_213, %c96_214], %269 {strides = array<i32>} : memref<64x288xbf16, #tpu.memory_space<vmem>>, vector<64x32xbf16>,
    %c16_215 = arith.constant 16 : index
    %c0_216 = arith.constant 0 : index
    %271 = vector.load %arg28[%c16_215, %c0_216] : memref<89x32xf32, #tpu.memory_space<vmem>>, vector<64x32xf32>
    %272 = arith.truncf %271 : vector<64x32xf32> to vector<64x32xbf16>
    %c0_217 = arith.constant 0 : index
    %c128_218 = arith.constant 128 : index
    %273 = vector.load %arg29[%c0_217, %c128_218] : memref<64x288xbf16, #tpu.memory_space<vmem>>, vector<64x32xbf16>
    tpu.vector_store %arg29[%c0_217, %c128_218], %272 {strides = array<i32>} : memref<64x288xbf16, #tpu.memory_space<vmem>>, vector<64x32xbf16>,
    %c17_219 = arith.constant 17 : index
    %c0_220 = arith.constant 0 : index
    %274 = vector.load %arg28[%c17_219, %c0_220] : memref<89x32xf32, #tpu.memory_space<vmem>>, vector<64x32xf32>
    %275 = vector.broadcast %13 : vector<64x1xf32> to vector<64x32xf32>
    %276 = arith.mulf %274, %275 : vector<64x32xf32>
    %277 = arith.truncf %276 : vector<64x32xf32> to vector<64x32xbf16>
    %c0_221 = arith.constant 0 : index
    %c160_222 = arith.constant 160 : index
    %278 = vector.load %arg29[%c0_221, %c160_222] : memref<64x288xbf16, #tpu.memory_space<vmem>>, vector<64x32xbf16>
    tpu.vector_store %arg29[%c0_221, %c160_222], %277 {strides = array<i32>} : memref<64x288xbf16, #tpu.memory_space<vmem>>, vector<64x32xbf16>,
    %c23_223 = arith.constant 23 : index
    %c0_224 = arith.constant 0 : index
    %279 = vector.load %arg28[%c23_223, %c0_224] : memref<89x32xf32, #tpu.memory_space<vmem>>, vector<64x32xf32>
    %280 = vector.broadcast %12 : vector<64x1xf32> to vector<64x32xf32>
    %281 = arith.mulf %279, %280 : vector<64x32xf32>
    %282 = arith.truncf %281 : vector<64x32xf32> to vector<64x32xbf16>
    %c0_225 = arith.constant 0 : index
    %c192_226 = arith.constant 192 : index
    %283 = vector.load %arg29[%c0_225, %c192_226] : memref<64x288xbf16, #tpu.memory_space<vmem>>, vector<64x32xbf16>
    tpu.vector_store %arg29[%c0_225, %c192_226], %282 {strides = array<i32>} : memref<64x288xbf16, #tpu.memory_space<vmem>>, vector<64x32xbf16>,
    %c24_227 = arith.constant 24 : index
    %c0_228 = arith.constant 0 : index
    %284 = vector.load %arg28[%c24_227, %c0_228] : memref<89x32xf32, #tpu.memory_space<vmem>>, vector<64x32xf32>
    %285 = arith.truncf %284 : vector<64x32xf32> to vector<64x32xbf16>
    %c0_229 = arith.constant 0 : index
    %c224_230 = arith.constant 224 : index
    %286 = vector.load %arg29[%c0_229, %c224_230] : memref<64x288xbf16, #tpu.memory_space<vmem>>, vector<64x32xbf16>
    tpu.vector_store %arg29[%c0_229, %c224_230], %285 {strides = array<i32>} : memref<64x288xbf16, #tpu.memory_space<vmem>>, vector<64x32xbf16>,
    %c25_231 = arith.constant 25 : index
    %c0_232 = arith.constant 0 : index
    %287 = vector.load %arg28[%c25_231, %c0_232] : memref<89x32xf32, #tpu.memory_space<vmem>>, vector<64x32xf32>
    %288 = vector.broadcast %13 : vector<64x1xf32> to vector<64x32xf32>
    %289 = arith.mulf %287, %288 : vector<64x32xf32>
    %290 = arith.truncf %289 : vector<64x32xf32> to vector<64x32xbf16>
    %c0_233 = arith.constant 0 : index
    %c256_234 = arith.constant 256 : index
    %291 = vector.load %arg29[%c0_233, %c256_234] : memref<64x288xbf16, #tpu.memory_space<vmem>>, vector<64x32xbf16>
    tpu.vector_store %arg29[%c0_233, %c256_234], %290 {strides = array<i32>} : memref<64x288xbf16, #tpu.memory_space<vmem>>, vector<64x32xbf16>,
    %c0_235 = arith.constant 0 : index
    %c0_236 = arith.constant 0 : index
    %292 = vector.load %arg29[%c0_235, %c0_236] : memref<64x288xbf16, #tpu.memory_space<vmem>>, vector<64x288xbf16>
    %c0_237 = arith.constant 0 : index
    %c0_238 = arith.constant 0 : index
    %293 = vector.load %arg17[%c0_237, %c0_238] : memref<288x32xbf16, #tpu.memory_space<vmem>>, vector<288x32xbf16>
    %cst_239 = arith.constant dense<0.000000e+00> : vector<64x32xf32>
    %294 = tpu.matmul %292, %293, %cst_239 {dimension_numbers = #tpu.dot_dimension_numbers<[1], [0], [0], [1], [0, 0, 1, 1], [], []>} : vector<64x288xbf16>, vector<288x32xbf16>, vector<64x32xf32> -> vector<64x32xf32>
    %c0_240 = arith.constant 0 : index
    %c0_241 = arith.constant 0 : index
    %295 = vector.load %arg18[%c0_240, %c0_241] : memref<1x32xf32, #tpu.memory_space<vmem>>, vector<1x32xf32>
    %296 = vector.broadcast %295 : vector<1x32xf32> to vector<64x32xf32>
    %297 = arith.addf %294, %296 : vector<64x32xf32>
    %298 = arith.truncf %142 : vector<64x32xf32> to vector<64x32xbf16>
    %c0_242 = arith.constant 0 : index
    %c0_243 = arith.constant 0 : index
    %299 = vector.load %arg19[%c0_242, %c0_243] : memref<32x32xbf16, #tpu.memory_space<vmem>>, vector<32x32xbf16>
    %cst_244 = arith.constant dense<0.000000e+00> : vector<64x32xf32>
    %300 = tpu.matmul %298, %299, %cst_244 {dimension_numbers = #tpu.dot_dimension_numbers<[1], [0], [0], [1], [0, 0, 1, 1], [], []>} : vector<64x32xbf16>, vector<32x32xbf16>, vector<64x32xf32> -> vector<64x32xf32>
    %301 = arith.truncf %297 : vector<64x32xf32> to vector<64x32xbf16>
    %c0_245 = arith.constant 0 : index
    %c0_246 = arith.constant 0 : index
    %302 = vector.load %arg20[%c0_245, %c0_246] : memref<32x32xbf16, #tpu.memory_space<vmem>>, vector<32x32xbf16>
    %cst_247 = arith.constant dense<0.000000e+00> : vector<64x32xf32>
    %303 = tpu.matmul %301, %302, %cst_247 {dimension_numbers = #tpu.dot_dimension_numbers<[1], [0], [0], [1], [0, 0, 1, 1], [], []>} : vector<64x32xbf16>, vector<32x32xbf16>, vector<64x32xf32> -> vector<64x32xf32>
    %304 = arith.addf %300, %303 : vector<64x32xf32>
    %c0_248 = arith.constant 0 : index
    %c0_249 = arith.constant 0 : index
    %305 = vector.load %arg21[%c0_248, %c0_249] : memref<1x32xf32, #tpu.memory_space<vmem>>, vector<1x32xf32>
    %306 = vector.broadcast %305 : vector<1x32xf32> to vector<64x32xf32>
    %307 = arith.addf %304, %306 : vector<64x32xf32>
    %cst_250 = arith.constant 5.000000e-01 : f32
    %308 = vector.broadcast %cst_250 : f32 to vector<64x32xf32>
    %309 = arith.mulf %308, %307 : vector<64x32xf32>
    %cst_251 = arith.constant 4.471500e-02 : f32
    %310 = vector.broadcast %cst_251 : f32 to vector<64x32xf32>
    %311 = arith.mulf %310, %307 : vector<64x32xf32>
    %312 = arith.mulf %311, %307 : vector<64x32xf32>
    %313 = arith.mulf %312, %307 : vector<64x32xf32>
    %314 = arith.addf %307, %313 : vector<64x32xf32>
    %cst_252 = arith.constant 0.797884583 : f32
    %315 = vector.broadcast %cst_252 : f32 to vector<64x32xf32>
    %316 = arith.mulf %315, %314 : vector<64x32xf32>
    %317 = math.tanh %316 : vector<64x32xf32>
    %cst_253 = arith.constant 1.000000e+00 : f32
    %318 = vector.broadcast %cst_253 : f32 to vector<64x32xf32>
    %319 = arith.addf %318, %317 : vector<64x32xf32>
    %320 = arith.mulf %309, %319 : vector<64x32xf32>
    %321 = arith.truncf %320 : vector<64x32xf32> to vector<64x32xbf16>
    %c0_254 = arith.constant 0 : index
    %c0_255 = arith.constant 0 : index
    %322 = vector.load %arg22[%c0_254, %c0_255] : memref<32x8xbf16, #tpu.memory_space<vmem>>, vector<32x8xbf16>
    %cst_256 = arith.constant dense<0.000000e+00> : vector<64x8xf32>
    %323 = tpu.matmul %321, %322, %cst_256 {dimension_numbers = #tpu.dot_dimension_numbers<[1], [0], [0], [1], [0, 0, 1, 1], [], []>} : vector<64x32xbf16>, vector<32x8xbf16>, vector<64x8xf32> -> vector<64x8xf32>
    %c0_257 = arith.constant 0 : index
    %c0_258 = arith.constant 0 : index
    %324 = vector.load %arg23[%c0_257, %c0_258] : memref<1x8xf32, #tpu.memory_space<vmem>>, vector<1x8xf32>
    %325 = vector.broadcast %324 : vector<1x8xf32> to vector<64x8xf32>
    %326 = arith.addf %323, %325 : vector<64x8xf32>
    %c0_259 = arith.constant 0 : index
    %c0_260 = arith.constant 0 : index
    %c0_261 = arith.constant 0 : index
    %327 = vector.load %arg25[%c0_259, %c0_260, %c0_261] : memref<1x64x8xf32, #tpu.memory_space<vmem>>, vector<1x64x8xf32>
    %328 = vector.shape_cast %327 : vector<1x64x8xf32> to vector<64x8xf32>
    %329 = vector.shape_cast %326 : vector<64x8xf32> to vector<1x64x8xf32>
    tpu.vector_store %arg25[%c0_259, %c0_260, %c0_261], %329 {strides = array<i32>} : memref<1x64x8xf32, #tpu.memory_space<vmem>>, vector<1x64x8xf32>,
    return
  }
  func.func @transform_0(%arg0: i32) -> (i32, i32, i32) {
    %c0_i32 = arith.constant 0 : i32
    %c0_i32_0 = arith.constant 0 : i32
    %c0_i32_1 = arith.constant 0 : i32
    return %arg0, %c0_i32, %c0_i32_0 : i32, i32, i32
  }
  func.func @transform_1(%arg0: i32) -> (i32, i32, i32) {
    %c0_i32 = arith.constant 0 : i32
    %c0_i32_0 = arith.constant 0 : i32
    %c0_i32_1 = arith.constant 0 : i32
    return %arg0, %c0_i32, %c0_i32_0 : i32, i32, i32
  }
  func.func @transform_2(%arg0: i32) -> (i32, i32) {
    %c0_i32 = arith.constant 0 : i32
    %c0_i32_0 = arith.constant 0 : i32
    %c0_i32_1 = arith.constant 0 : i32
    return %c0_i32, %c0_i32_0 : i32, i32
  }
  func.func @transform_3(%arg0: i32) -> (i32, i32) {
    %c0_i32 = arith.constant 0 : i32
    %c0_i32_0 = arith.constant 0 : i32
    %c0_i32_1 = arith.constant 0 : i32
    return %c0_i32, %c0_i32_0 : i32, i32
  }
  func.func @transform_4(%arg0: i32) -> (i32, i32) {
    %c0_i32 = arith.constant 0 : i32
    %c0_i32_0 = arith.constant 0 : i32
    %c0_i32_1 = arith.constant 0 : i32
    return %c0_i32, %c0_i32_0 : i32, i32
  }
  func.func @transform_5(%arg0: i32) -> (i32, i32) {
    %c0_i32 = arith.constant 0 : i32
    %c0_i32_0 = arith.constant 0 : i32
    %c0_i32_1 = arith.constant 0 : i32
    return %c0_i32, %c0_i32_0 : i32, i32
  }
  func.func @transform_6(%arg0: i32) -> (i32, i32) {
    %c0_i32 = arith.constant 0 : i32
    %c0_i32_0 = arith.constant 0 : i32
    %c0_i32_1 = arith.constant 0 : i32
    return %c0_i32, %c0_i32_0 : i32, i32
  }
  func.func @transform_7(%arg0: i32) -> (i32, i32) {
    %c0_i32 = arith.constant 0 : i32
    %c0_i32_0 = arith.constant 0 : i32
    %c0_i32_1 = arith.constant 0 : i32
    return %c0_i32, %c0_i32_0 : i32, i32
  }
  func.func @transform_8(%arg0: i32) -> (i32, i32) {
    %c0_i32 = arith.constant 0 : i32
    %c0_i32_0 = arith.constant 0 : i32
    %c0_i32_1 = arith.constant 0 : i32
    return %c0_i32, %c0_i32_0 : i32, i32
  }
  func.func @transform_9(%arg0: i32) -> (i32, i32) {
    %c0_i32 = arith.constant 0 : i32
    %c0_i32_0 = arith.constant 0 : i32
    %c0_i32_1 = arith.constant 0 : i32
    return %c0_i32, %c0_i32_0 : i32, i32
  }
  func.func @transform_10(%arg0: i32) -> (i32, i32) {
    %c0_i32 = arith.constant 0 : i32
    %c0_i32_0 = arith.constant 0 : i32
    %c0_i32_1 = arith.constant 0 : i32
    return %c0_i32, %c0_i32_0 : i32, i32
  }
  func.func @transform_11(%arg0: i32) -> (i32, i32) {
    %c0_i32 = arith.constant 0 : i32
    %c0_i32_0 = arith.constant 0 : i32
    %c0_i32_1 = arith.constant 0 : i32
    return %c0_i32, %c0_i32_0 : i32, i32
  }
  func.func @transform_12(%arg0: i32) -> (i32, i32) {
    %c0_i32 = arith.constant 0 : i32
    %c0_i32_0 = arith.constant 0 : i32
    %c0_i32_1 = arith.constant 0 : i32
    return %c0_i32, %c0_i32_0 : i32, i32
  }
  func.func @transform_13(%arg0: i32) -> (i32, i32) {
    %c0_i32 = arith.constant 0 : i32
    %c0_i32_0 = arith.constant 0 : i32
    %c0_i32_1 = arith.constant 0 : i32
    return %c0_i32, %c0_i32_0 : i32, i32
  }
  func.func @transform_14(%arg0: i32) -> (i32, i32) {
    %c0_i32 = arith.constant 0 : i32
    %c0_i32_0 = arith.constant 0 : i32
    %c0_i32_1 = arith.constant 0 : i32
    return %c0_i32, %c0_i32_0 : i32, i32
  }
  func.func @transform_15(%arg0: i32) -> (i32, i32) {
    %c0_i32 = arith.constant 0 : i32
    %c0_i32_0 = arith.constant 0 : i32
    %c0_i32_1 = arith.constant 0 : i32
    return %c0_i32, %c0_i32_0 : i32, i32
  }
  func.func @transform_16(%arg0: i32) -> (i32, i32) {
    %c0_i32 = arith.constant 0 : i32
    %c0_i32_0 = arith.constant 0 : i32
    %c0_i32_1 = arith.constant 0 : i32
    return %c0_i32, %c0_i32_0 : i32, i32
  }
  func.func @transform_17(%arg0: i32) -> (i32, i32) {
    %c0_i32 = arith.constant 0 : i32
    %c0_i32_0 = arith.constant 0 : i32
    %c0_i32_1 = arith.constant 0 : i32
    return %c0_i32, %c0_i32_0 : i32, i32
  }
  func.func @transform_18(%arg0: i32) -> (i32, i32) {
    %c0_i32 = arith.constant 0 : i32
    %c0_i32_0 = arith.constant 0 : i32
    %c0_i32_1 = arith.constant 0 : i32
    return %c0_i32, %c0_i32_0 : i32, i32
  }
  func.func @transform_19(%arg0: i32) -> (i32, i32) {
    %c0_i32 = arith.constant 0 : i32
    %c0_i32_0 = arith.constant 0 : i32
    %c0_i32_1 = arith.constant 0 : i32
    return %c0_i32, %c0_i32_0 : i32, i32
  }
  func.func @transform_20(%arg0: i32) -> (i32, i32) {
    %c0_i32 = arith.constant 0 : i32
    %c0_i32_0 = arith.constant 0 : i32
    %c0_i32_1 = arith.constant 0 : i32
    return %c0_i32, %c0_i32_0 : i32, i32
  }
  func.func @transform_21(%arg0: i32) -> (i32, i32) {
    %c0_i32 = arith.constant 0 : i32
    %c0_i32_0 = arith.constant 0 : i32
    %c0_i32_1 = arith.constant 0 : i32
    return %c0_i32, %c0_i32_0 : i32, i32
  }
  func.func @transform_22(%arg0: i32) -> (i32, i32) {
    %c0_i32 = arith.constant 0 : i32
    %c0_i32_0 = arith.constant 0 : i32
    %c0_i32_1 = arith.constant 0 : i32
    return %c0_i32, %c0_i32_0 : i32, i32
  }
  func.func @transform_23(%arg0: i32) -> (i32, i32, i32) {
    %c0_i32 = arith.constant 0 : i32
    %c0_i32_0 = arith.constant 0 : i32
    %c0_i32_1 = arith.constant 0 : i32
    return %arg0, %c0_i32, %c0_i32_0 : i32, i32, i32
  }
  func.func @transform_24(%arg0: i32) -> (i32, i32, i32) {
    %c0_i32 = arith.constant 0 : i32
    %c0_i32_0 = arith.constant 0 : i32
    %c0_i32_1 = arith.constant 0 : i32
    return %arg0, %c0_i32, %c0_i32_0 : i32, i32, i32
  }
}

</mosaic_0001>

<bundles_post_ra>
// kernel: dpcv3_forward.1
= control target key start
LH: loop header
LB: loop body
LE: loop exit
PB: predicated region body
PF: predicated region fallthrough
CT: control target
= control target key end

     0   :  { %s7027_s0 = inlined_call_operand.vmem [shape: f32[2,64,32], index: 0, kind: input, shape index: {}]   ;;  %s7028_s1 = inlined_call_operand.vmem [shape: f32[2,64,64], index: 1, kind: input, shape index: {}]   ;;  %s7029_s2 = inlined_call_operand.vmem [shape: f32[64,1], index: 2, kind: input, shape index: {}]   ;;  %s7030_s3 = inlined_call_operand.vmem [shape: f32[64,1], index: 3, kind: input, shape index: {}]   ;;  %s7031_s4 = inlined_call_operand.vmem [shape: bf16[256,32], index: 4, kind: input, shape index: {}]   ;;  %s7032_s5 = inlined_call_operand.vmem [shape: f32[1,32], index: 5, kind: input, shape index: {}]   ;;  %s7033_s6 = inlined_call_operand.vmem [shape: f32[1,32], index: 6, kind: input, shape index: {}, may-alias: {6,8}]   ;;  %s7034_s7 = inlined_call_operand.vmem [shape: f32[1,32], index: 7, kind: input, shape index: {}, may-alias: {7,9}]   ;;  %s7035_s8 = inlined_call_operand.vmem [shape: f32[1,32], index: 8, kind: input, shape index: {}, may-alias: {6,8}]   ;;  %s7036_s9 = inlined_call_operand.vmem [shape: f32[1,32], index: 9, kind: input, shape index: {}, may-alias: {7,9}]   ;;  %s7037_s10 = inlined_call_operand.vmem [shape: bf16[288,32], index: 10, kind: input, shape index: {}]   ;;  %s7038_s11 = inlined_call_operand.vmem [shape: f32[1,32], index: 11, kind: input, shape index: {}]   ;;  %s7039_s12 = inlined_call_operand.vmem [shape: bf16[288,32], index: 12, kind: input, shape index: {}]   ;;  %s7040_s13 = inlined_call_operand.vmem [shape: f32[1,32], index: 13, kind: input, shape index: {}]   ;;  %s7041_s14 = inlined_call_operand.vmem [shape: bf16[288,32], index: 14, kind: input, shape index: {}]   ;;  %s7042_s15 = inlined_call_operand.vmem [shape: f32[1,32], index: 15, kind: input, shape index: {}]   ;;  %s7043_s16 = inlined_call_operand.vmem [shape: bf16[288,32], index: 16, kind: input, shape index: {}]   ;;  %s7044_s17 = inlined_call_operand.vmem [shape: f32[1,32], index: 17, kind: input, shape index: {}]   ;;  %s7045_s18 = inlined_call_operand.vmem [shape: bf16[32,32], index: 18, kind: input, shape index: {}]   ;;  %s7046_s19 = inlined_call_operand.vmem [shape: bf16[32,32], index: 19, kind: input, shape index: {}]   ;;  %s7047_s20 = inlined_call_operand.vmem [shape: f32[1,32], index: 20, kind: input, shape index: {}]   ;;  %s7048_s21 = inlined_call_operand.vmem [shape: bf16[32,8], index: 21, kind: input, shape index: {}]   ;;  %s7049_s22 = inlined_call_operand.vmem [shape: f32[1,8], index: 22, kind: input, shape index: {}]   ;;  %s7050_s23 = inlined_call_operand.hbm [shape: f32[2,64,32], index: 23, kind: output, shape index: {0}]   ;;  %s7051_s24 = inlined_call_operand.vmem [shape: f32[2,64,8], index: 24, kind: output, shape index: {1}]  }
   0x1   :  { %7070 = sst [smem:[#allocation17_spill]] %s7027_s0 }
   0x2   :  { %7071 = sst [smem:[#allocation18_spill]] %s7028_s1 }
   0x3   :  { %7072 = sst [smem:[#allocation19_spill]] %s7029_s2 }
   0x4   :  { %7073 = sst [smem:[#allocation20_spill]] %s7030_s3 }
   0x5   :  { %7074 = sst [smem:[#allocation21_spill]] %s7031_s4 }
   0x6   :  { %7075 = sst [smem:[#allocation22_spill]] %s7032_s5 }
   0x7   :  { %7076 = sst [smem:[#allocation23_spill]] %s7033_s6 }
   0x8   :  { %7077 = sst [smem:[#allocation24_spill]] %s7034_s7 }
   0x9   :  { %7078 = sst [smem:[#allocation25_spill]] %s7035_s8 }
   0xa   :  { %7079 = sst [smem:[#allocation26_spill]] %s7036_s9 }
   0xb   :  { %7080 = sst [smem:[#allocation27_spill]] %s7037_s10 }
   0xc   :  { %7081 = sst [smem:[#allocation28_spill]] %s7038_s11 }
   0xd   :  { %7082 = sst [smem:[#allocation29_spill]] %s7051_s24 }
   0xe   :  { %30 = vsyncpa [#allocation9], 0 }
   0xf   :  { %32 = vsyncpa [#allocation9 + $0x1], 0  ;;  %s5476_s5 = smov 0   ;;  %s5478_s26 = smov 0  }
  0x10   :  { %s5480_s27 = smov 0   ;;  %s5482_s28 = smov 0  }
  0x11 LB: > { %7083 = sst [smem:[#allocation11_spill]] %s5329_s5  ;;  %s5497_s6 = sadd.s32 4294967295, %s5341_s28   ;;  %s5341_s28 = sphi %s5482_s28, %s7112_s28   ;;  %s5337_s27 = sphi %s5480_s27, %s7114_s27   ;;  %s5333_s26 = sphi %s5478_s26, %s7116_s26   ;;  %s5329_s5 = sphi %s5476_s5, %s7115_s5  }
  0x12   : > { %7084 = sst [smem:[#allocation12_spill]] %s5337_s27  ;;  %s4570_s2 = sadd.s32 4294967294, %s5341_s28  }
  0x13   : > { %7085 = sst [smem:[#allocation13_spill]] %s5341_s28  ;;  %s5501_s29 = sadd.s32 1, %s5341_s28  }
  0x14   : > { %7086 = sst [smem:[#allocation14_spill]] %s5501_s29  ;;  %s538_s0 = sadd.s32 1, %s5337_s27 }
  0x15   : > { %s535_s7 = ssub.s32 %s5341_s28, %s5501_s29  ;;  %p548_p0 = scmp.ne.s32.totalorder %s5337_s27, %s5333_s26 }
  0x16   : > { %p536_p1 = scmp.eq.s32.totalorder %s535_s7, 0  ;;  %p549_p2 = scmp.eq.s32.totalorder %s5497_s6, 1 }
  0x17   : > { %p554_p3 = scmp.ne.s32.totalorder %s5333_s26, %s5329_s5  ;;  %p555_p4 = scmp.eq.s32.totalorder %s4570_s2, 1 }
  0x18   : > { %s5512_s30 = scalar_select %p536_p1, %s5337_s27, %s538_s0  }
  0x19   : > { %p5514_p5 = por %p549_p2, %p548_p0  ;;  %p5518_p6 = por %p555_p4, %p554_p3 }
  0x1a   : > { %7087 = sst [smem:[#allocation15_spill]] %s5512_s30  ;;  %p4573_p7 = scmp.ge.s32.totalorder %s5341_s28, 1 }
  0x1b   : > { %s7089_s25 = scalar_select %p5518_p6, 1, 0 }
  0x1c   : > { %p678_p8 = scmp.lt.s32.totalorder %s5341_s28, 3 }
  0x1d   : > { %7090 = sst [smem:[#allocation16_spill]] %s7089_s25 }
  0x1e   : > { %p679_p9 = pnand %p4573_p7, %p678_p8 }
  0x1f   : > { %p754_p10 = scmp.lt.s32.totalorder (!%p679_p9), %s5497_s6, 1  ;;  %vm770_vm0 = vcmask (!%p679_p9), 261120   ;;  %s7091_s0 = sld [smem:[#allocation17_spill]] (!%p679_p9)  ;;  %v5343_v16 = vmov (!%p679_p9), 0   ;;  %vm780_vm1 = vcmask (!%p679_p9), 523264   ;;  %v5344_v61 = vmov (!%p679_p9), 0.0  }
  0x20   : > { %682 = sbr.rel (%p679_p9) target bundleno = 2819 (0xb03), region = 112  ;;  %5104 = vset.pattern.permute.xlu1 (!%p679_p9), %v5343_v16  ;;  %5103 = vset.pattern.permute.xlu0 (!%p679_p9), %v5343_v16  ;;  %s7092_s2 = sld [smem:[#allocation18_spill]] (!%p679_p9)  ;;  %772 = vst.msk [vmem:[#allocation2 + $0x8] sm:$0xff] (!%p679_p9), %vm770_vm0, %v5344_v61  ;;  %771 = vst.msk [vmem:[#allocation2] sm:$0xff] (!%p679_p9), %vm770_vm0, %v5344_v61  ;;  %vm774_vm2 = vcmask (!%p679_p9), 253952   ;;  %vm1045_vm3 = vcmask (!%p679_p9), 523520  }
  0x21   : > { %s7093_s27 = sld [smem:[#allocation20_spill]] (!%p679_p9)  ;;  %773 = vst.msk [vmem:[#allocation2 + $0x50] sm:$0xff] (!%p679_p9), %vm770_vm0, %v5344_v61  ;;  %776 = vst.msk [vmem:[#allocation4] sm:$0xff] (!%p679_p9), %vm770_vm0, %v5344_v61  ;;  %s7096_s10 = sld [smem:[#allocation27_spill]] (!%p679_p9)  ;;  %vm1126_vm4 = vcmask (!%p679_p9), 785920   ;;  %vm1167_vm5 = vcmask (!%p679_p9), 1048320  }
  0x22   : > { %777 = vst.msk [vmem:[#allocation4 + $0x8] sm:$0xff] (!%p679_p9), %vm770_vm0, %v5344_v61  ;;  %778 = vst.msk [vmem:[#allocation4 + $0x50] sm:$0xff] (!%p679_p9), %vm770_vm0, %v5344_v61  ;;  %s7065_s5 = smov (!%p679_p9), 32   ;;  %s7063_s25 = smov (!%p679_p9), 64   ;;  %vm2378_vm6 = vcmask (!%p679_p9), 1048064  }
  0x23   : > { %781 = vst.msk [vmem:[#allocation6] sm:$0xff] (!%p679_p9), %vm780_vm1, %v5344_v61  ;;  %782 = vst.msk [vmem:[#allocation6 + $0x8] sm:$0xff] (!%p679_p9), %vm780_vm1, %v5344_v61  ;;  %s7099_s11 = sld [smem:[#allocation28_spill]] (!%p679_p9)  ;;  %s7102_s30 = sld [smem:[#allocation25_spill]] (!%p679_p9) }
  0x24   : > { %775 = vst.msk [vmem:[#allocation2 + $0x58] sm:$0x1] (!%p679_p9), %vm774_vm2, %v5344_v61  ;;  %779 = vst.msk [vmem:[#allocation4 + $0x58] sm:$0x1] (!%p679_p9), %vm774_vm2, %v5344_v61  ;;  %s7103_s9 = sld [smem:[#allocation26_spill]] (!%p679_p9)  ;;  %s7104_s24 = smov (!%p679_p9), 32  }
  0x25   : > { %s7106_s28 = smov (!%p679_p9), 96  }
  0x27   : > { %s755_s8 = scalar_select %p754_p10, %s5497_s6, 1  ;;  %v795_v60 = vld [vmem:[%s7093_s27 + $0x8] sm:$0xff] }
  0x28   : > { %s7094_s29 = smov %s7093_s27  ;;  %s7097_s27 = sld [smem:[#allocation23_spill]] }
  0x29   : > { %s5526_s4 = sshll.u32 %s755_s8, 6  ;;  %s7095_s8 = sld [smem:[#allocation19_spill]]  ;;  %v794_v63 = vld [vmem:[%s7094_s29] sm:$0xff] }
  0x2a   : > { %s758_s7 = scalar_lea.vmem %s7091_s0, %s5526_s4  ;;  %s763_s0 = scalar_lea.vmem %s7092_s2, %s5526_s4 }
  0x2b   : > { %v802_v0 = vld [vmem:[%s758_s7] sm:$0xff]  ;;  %v804_v2 = vld [vmem:[%s758_s7 + $0x10] sm:$0xff]  ;;  %v803_v3 = vld [vmem:[%s758_s7 + $0x8] sm:$0xff]  ;;  %s7098_s2 = sld [smem:[#allocation24_spill]] }
  0x2c   : > { %v812_v1 = vsel %vm770_vm0, %v802_v0, 0.0  ;;  %v805_v4 = vld [vmem:[%s758_s7 + $0x18] sm:$0xff]  ;;  %v818_v5 = vsel %vm770_vm0, %v804_v2, 0.0  ;;  %v815_v6 = vsel %vm770_vm0, %v803_v3, 0.0  ;;  %v806_v7 = vld [vmem:[%s758_s7 + $0x20] sm:$0xff]  ;;  %v807_v8 = vld [vmem:[%s758_s7 + $0x28] sm:$0xff] }
  0x2d   : > { %813 = vadd.xlane.f32.xlu0 %v812_v1  ;;  %v808_v9 = vld [vmem:[%s758_s7 + $0x30] sm:$0xff]  ;;  %819 = vadd.xlane.f32.xlu1 %v818_v5  ;;  %v821_v10 = vsel %vm770_vm0, %v805_v4, 0.0  ;;  %v824_v11 = vsel %vm770_vm0, %v806_v7, 0.0  ;;  %v827_v12 = vsel %vm770_vm0, %v807_v8, 0.0  ;;  %v5538_v13 = vld [vmem:[%s758_s7 + $0x38] sm:$0xff]  ;;  %v2310_v52 = vld [vmem:[%s763_s0] sm:$0xff] }
  0x2e   : > { %v830_v14 = vsel %vm770_vm0, %v808_v9, 0.0  ;;  %v833_v15 = vsel %vm770_vm0, %v5538_v13, 0.0  ;;  %v2311_v53 = vld [vmem:[%s763_s0 + $0x8] sm:$0xff]  ;;  %v2312_v54 = vld [vmem:[%s763_s0 + $0x10] sm:$0xff]  ;;  %v2313_v55 = vld [vmem:[%s763_s0 + $0x18] sm:$0xff]  ;;  %2318 = vst.msk [vmem:[#allocation6 + $0x10] sm:$0xff] %vm780_vm1, %v2310_v52 }
  0x2f   : > { %v2314_v56 = vld [vmem:[%s763_s0 + $0x20] sm:$0xff]  ;;  %v2315_v57 = vld [vmem:[%s763_s0 + $0x28] sm:$0xff]  ;;  %v2316_v58 = vld [vmem:[%s763_s0 + $0x30] sm:$0xff]  ;;  %2319 = vst.msk [vmem:[#allocation6 + $0x18] sm:$0xff] %vm780_vm1, %v2311_v53  ;;  %s7061_s7 = smov 96  }
  0x30   : > { %v2317_v59 = vld [vmem:[%s763_s0 + $0x38] sm:$0xff]  ;;  %2320 = vst.msk [vmem:[#allocation6 + $0x20] sm:$0xff] %vm780_vm1, %v2312_v54  ;;  %2321 = vst.msk [vmem:[#allocation6 + $0x28] sm:$0xff] %vm780_vm1, %v2313_v55  ;;  %v786_v62 = vld [vmem:[%s7095_s8] sm:$0xff] }
  0x31   : > { %816 = vadd.xlane.f32.xlu0 %v815_v6  ;;  %822 = vadd.xlane.f32.xlu1 %v821_v10  ;;  %2322 = vst.msk [vmem:[#allocation6 + $0x30] sm:$0xff] %vm780_vm1, %v2314_v56  ;;  %2323 = vst.msk [vmem:[#allocation6 + $0x38] sm:$0xff] %vm780_vm1, %v2315_v57  ;;  %v799_v1 = vld [vmem:[%s7094_s29 + $0x28] sm:$0xff]  ;;  %v801_v5 = vld [vmem:[%s7094_s29 + $0x38] sm:$0xff] }
  0x32   : > { %2324 = vst.msk [vmem:[#allocation6 + $0x40] sm:$0xff] %vm780_vm1, %v2316_v58  ;;  %2325 = vst.msk [vmem:[#allocation6 + $0x48] sm:$0xff] %vm780_vm1, %v2317_v59  ;;  %v788_v6 = vld [vmem:[%s7095_s8 + $0x10] sm:$0xff]  ;;  %v790_v10 = vld [vmem:[%s7095_s8 + $0x20] sm:$0xff] }
  0x33   : > { %v5675_v54 = vld [vmem:[%s7098_s2] ss:$0 sm:$0xff]  ;;  %v5109_v57 = vld [vmem:[%s7096_s10 + $0x48] sm:$0xff]   ;;  %s7100_s2 = sld [smem:[#allocation21_spill]] }
  0x35   : > { %825 = vadd.xlane.f32.xlu0 %v824_v11  ;;  %828 = vadd.xlane.f32.xlu1 %v827_v12  ;;  %v5105_v11 = vld [vmem:[%s7096_s10 + $0x80] sm:$0xff]   ;;  %v5106_v12 = vld [vmem:[%s7096_s10 + $0x88] sm:$0xff]  }
  0x36   : > { %4965 = vmatprep.subr.bf16.mxu1 %v5105_v11 }
  0x37   : > { %4966 = vmatpush3.bf16.msra.mxu1 %v5105_v11 }
  0x38   : > { %4967 = vmatprep.subr.bf16.mxu1 %v5106_v12 }
  0x39   : > { %831 = vadd.xlane.f32.xlu0 %v830_v14  ;;  %834 = vadd.xlane.f32.xlu1 %v833_v15 }
  0x3b   : > { %4968 = vmatpush3.bf16.msra.mxu1 %v5106_v12 }
  0xba   : > { %v814_v17 = vpop.xlane.xlu0 %813  ;;  %v820_v20 = vpop.xlane.xlu1 %819 }
  0xbb   : > { %v837_v18 = vmul.f32 0.03125, %v814_v17  ;;  %v839_v21 = vmul.f32 0.03125, %v820_v20  ;;  %v800_v20 = vld [vmem:[%s7094_s29 + $0x30] sm:$0xff] }
  0xbd   : > { %v5543_v19 = vsub.f32 %v802_v0, %v837_v18  ;;  %v5547_v25 = vsub.f32 %v804_v2, %v839_v21  ;;  %v787_v0 = vld [vmem:[%s7095_s8 + $0x8] sm:$0xff]  ;;  %v796_v2 = vld [vmem:[%s7094_s29 + $0x10] sm:$0xff] }
  0xbe   : > { %v817_v22 = vpop.xlane.xlu0 %816  ;;  %v823_v27 = vpop.xlane.xlu1 %822  ;;  %v792_v21 = vld [vmem:[%s7095_s8 + $0x30] sm:$0xff] }
  0xbf   : > { %v838_v23 = vmul.f32 0.03125, %v817_v22  ;;  %v853_v24 = vmul.f32 %v5543_v19, %v5543_v19  ;;  %v840_v29 = vmul.f32 0.03125, %v823_v27  ;;  %v855_v31 = vmul.f32 %v5547_v25, %v5547_v25 }
  0xc1   : > { %v5549_v26 = vsub.f32 %v803_v3, %v838_v23  ;;  %v861_v28 = vsel %vm770_vm0, %v853_v24, 0.0  ;;  %v5556_v34 = vsub.f32 %v805_v4, %v840_v29  ;;  %v867_v35 = vsel %vm770_vm0, %v855_v31, 0.0  ;;  %v791_v3 = vld [vmem:[%s7095_s8 + $0x28] sm:$0xff]  ;;  %v797_v4 = vld [vmem:[%s7094_s29 + $0x18] sm:$0xff] }
  0xc2   : > { %862 = vadd.xlane.f32.xlu0 %v861_v28  ;;  %v826_v30 = vpop.xlane.xlu0 %825  ;;  %v829_v37 = vpop.xlane.xlu1 %828 }
  0xc3   : > { %v841_v32 = vmul.f32 0.03125, %v826_v30  ;;  %v854_v33 = vmul.f32 %v5549_v26, %v5549_v26  ;;  %v842_v39 = vmul.f32 0.03125, %v829_v37  ;;  %v856_v41 = vmul.f32 %v5556_v34, %v5556_v34 }
  0xc5   : > { %v5559_v36 = vsub.f32 %v806_v7, %v841_v32  ;;  %v864_v38 = vsel %vm770_vm0, %v854_v33, 0.0  ;;  %v5566_v44 = vsub.f32 %v807_v8, %v842_v39  ;;  %v870_v45 = vsel %vm770_vm0, %v856_v41, 0.0  ;;  %v793_v7 = vld [vmem:[%s7095_s8 + $0x38] sm:$0xff] }
  0xc6   : > { %868 = vadd.xlane.f32.xlu0 %v867_v35  ;;  %865 = vadd.xlane.f32.xlu1 %v864_v38  ;;  %v832_v40 = vpop.xlane.xlu0 %831  ;;  %v789_v8 = vld [vmem:[%s7095_s8 + $0x18] sm:$0xff]  ;;  %v835_v14 = vpop.xlane.xlu1 %834  ;;  %s7068_s8 = sand.u32 1, %s5333_s26  }
  0xc7   : > { %v843_v42 = vmul.f32 0.03125, %v832_v40  ;;  %v857_v43 = vmul.f32 %v5559_v36, %v5559_v36  ;;  %v858_v48 = vmul.f32 %v5566_v44, %v5566_v44  ;;  %v844_v15 = vmul.f32 0.03125, %v835_v14 }
  0xc9   : > { %v5569_v46 = vsub.f32 %v808_v9, %v843_v42  ;;  %v873_v47 = vsel %vm770_vm0, %v857_v43, 0.0  ;;  %v876_v50 = vsel %vm770_vm0, %v858_v48, 0.0  ;;  %v798_v9 = vld [vmem:[%s7094_s29 + $0x20] sm:$0xff]  ;;  %v5647_v16 = vsub.f32 %v5538_v13, %v844_v15 }
  0xca   : > { %871 = vadd.xlane.f32.xlu1 %v870_v45  ;;  %874 = vadd.xlane.f32.xlu0 %v873_v47  ;;  %v5107_v45 = vld [vmem:[%s7096_s10 + $0x40] sm:$0xff]  }
  0xcb   : > { %v859_v49 = vmul.f32 %v5569_v46, %v5569_v46  ;;  %v860_v17 = vmul.f32 %v5647_v16, %v5647_v16  ;;  %v5108_v47 = vld [vmem:[%s7096_s10] sm:$0xff]   ;;  %4723 = vmatprep.subr.bf16.mxu0 %v5107_v45 }
  0xcc   : > { %4724 = vmatpush3.bf16.msra.mxu0 %v5108_v47 }
  0xcd   : > { %v879_v51 = vsel %vm770_vm0, %v859_v49, 0.0  ;;  %v882_v18 = vsel %vm770_vm0, %v860_v17, 0.0  ;;  %v5667_v49 = vld [vmem:[%s7097_s27] ss:$0 sm:$0xff]  ;;  %4725 = vmatprep.subr.bf16.mxu0 %v5109_v57  ;;  %v5117_v57 = vld [vmem:[%s7096_s10 + $0x68] sm:$0xff]   ;;  %s7101_s27 = sld [smem:[#allocation22_spill]] }
  0xce   : > { %877 = vadd.xlane.f32.xlu1 %v876_v50  ;;  %880 = vadd.xlane.f32.xlu0 %v879_v51 }
  0xdf   : > { %1065 = vperm.xlu1 %5104, %v795_v60  }
  0xe3   : > { %963 = vperm.xlu1 %5104, %v786_v62  }
  0xe4   : > { %1060 = vperm.xlu0 %5103, %v794_v63   ;;  %v2383_v63 = vld [vmem:[#allocation6 + $0xf] sm:$0xff] }
  0xe7   : > { %968 = vperm.xlu1 %5104, %v787_v0   ;;  %v2326_v0 = vld [vmem:[#allocation6 + $0x7] sm:$0xff] }
  0xe8   : > { %1085 = vperm.xlu0 %5103, %v799_v1  }
  0xeb   : > { %1070 = vperm.xlu1 %5104, %v796_v2   ;;  %v5691_v2 = vld [vmem:[#allocation6 + $0x17] sm:$0xff] }
  0xec   : > { %988 = vperm.xlu0 %5103, %v791_v3  }
  0xef   : > { %1075 = vperm.xlu1 %5104, %v797_v4  }
  0xf0   : > { %1095 = vperm.xlu0 %5103, %v801_v5  }
  0xf3   : > { %973 = vperm.xlu1 %5104, %v788_v6  }
  0xf4   : > { %998 = vperm.xlu0 %5103, %v793_v7  }
  0xf7   : > { %978 = vperm.xlu1 %5104, %v789_v8   ;;  %v5112_v8 = vld [vmem:[%s7096_s10 + $0x10] sm:$0xff]  }
  0xfb   : > { %1080 = vperm.xlu1 %5104, %v798_v9  }
  0xff   : > { %983 = vperm.xlu1 %5104, %v790_v10  }
 0x123   : > { %883 = vadd.xlane.f32.xlu1 %v882_v18 }
 0x134   : > { %1090 = vperm.xlu1 %5104, %v800_v20   ;;  %v1017_v20 = vld [vmem:[#allocation2 + $0x8] sm:$0xff] }
 0x138   : > { %993 = vperm.xlu1 %5104, %v792_v21  }
 0x14f   : > { %v863_v13 = vpop.xlane.xlu0 %862 }
 0x150   : > { %v885_v22 = vmul.f32 0.03125, %v863_v13 }
 0x152   : > { %v893_v23 = vadd.f32 1e-05, %v885_v22 }
 0x153   : > { %v866_v24 = vpop.xlane.xlu1 %865  ;;  %v869_v27 = vpop.xlane.xlu0 %868 }
 0x154   : > { %5199 = vrsqrt.f32 %v893_v23  ;;  %v886_v28 = vmul.f32 0.03125, %v866_v24  ;;  %v887_v29 = vmul.f32 0.03125, %v869_v27  ;;  %v953_v27 = vld [vmem:[#allocation2 + $0x7] sm:$0xff] }
 0x156   : > { %v894_v30 = vadd.f32 1e-05, %v886_v28  ;;  %v895_v31 = vadd.f32 1e-05, %v887_v29  ;;  %v5113_v28 = vld [vmem:[%s7096_s10 + $0x58] sm:$0xff]  }
 0x157   : > { %v872_v32 = vpop.xlane.xlu1 %871  ;;  %v875_v33 = vpop.xlane.xlu0 %874  ;;  %v5114_v29 = vld [vmem:[%s7096_s10 + $0x18] sm:$0xff]  }
 0x158   : > { %5201 = vrsqrt.f32 %v894_v30  ;;  %v888_v35 = vmul.f32 0.03125, %v872_v32  ;;  %v889_v37 = vmul.f32 0.03125, %v875_v33 }
 0x159   : > { %5203 = vrsqrt.f32 %v895_v31 }
 0x15a   : > { %v896_v38 = vadd.f32 1e-05, %v888_v35  ;;  %v897_v39 = vadd.f32 1e-05, %v889_v37 }
 0x15b   : > { %v878_v40 = vpop.xlane.xlu1 %877  ;;  %v881_v41 = vpop.xlane.xlu0 %880 }
 0x15c   : > { %5205 = vrsqrt.f32 %v896_v38  ;;  %v890_v42 = vmul.f32 0.03125, %v878_v40  ;;  %v891_v43 = vmul.f32 0.03125, %v881_v41  ;;  %v5115_v41 = vld [vmem:[%s7096_s10 + $0x60] sm:$0xff]  }
 0x15d   : > { %5207 = vrsqrt.f32 %v897_v39 }
 0x15e   : > { %v5200_v48 = vpop.eup %5199  ;;  %v898_v50 = vadd.f32 1e-05, %v890_v42  ;;  %v899_v51 = vadd.f32 1e-05, %v891_v43  ;;  %v5116_v42 = vld [vmem:[%s7096_s10 + $0x20] sm:$0xff]  }
 0x15f   : > { %v909_v52 = vmul.f32 %v5200_v48, %v5543_v19  ;;  %v5670_v53 = vpop.permute.xlu1 %1065  ;;  %v5110_v19 = vld [vmem:[%s7096_s10 + $0x8] sm:$0xff]  }
 0x160   : > { %5209 = vrsqrt.f32 %v898_v50  ;;  %4726 = vmatpush3.bf16.msra.mxu0 %v5110_v19  ;;  %v5118_v19 = vld [vmem:[%s7096_s10 + $0x28] sm:$0xff]  }
 0x161   : > { %v923_v55 = vmul.f32 %v5667_v49, %v909_v52  ;;  %5211 = vrsqrt.f32 %v899_v51 }
 0x162   : > { %v5202_v56 = vpop.eup %5201 }
 0x163   : > { %v5204_v58 = vpop.eup %5203  ;;  %v937_v59 = vadd.f32 %v5675_v54, %v923_v55  ;;  %v910_v60 = vmul.f32 %v5202_v56, %v5549_v26  ;;  %v5686_v61 = vpop.permute.xlu1 %963 }
 0x164   : > { %v911_v62 = vmul.f32 %v5204_v58, %v5547_v25  ;;  %v5111_v25 = vld [vmem:[%s7096_s10 + $0x50] sm:$0xff]   ;;  %v2391_v9 = vmul.f32 %v2383_v63, %v5686_v61  ;;  %v2334_v10 = vmul.f32 %v2326_v0, %v5686_v61  ;;  %v1001_v38 = vmul.f32 %v5686_v61, %v953_v27  ;;  %v5753_v50 = vpop.permute.xlu0 %1060 }
 0x165   : > { %945 = vst.msk [vmem:[#allocation2 + $0x10] sm:$0xff] %vm770_vm0, %v937_v59  ;;  %v924_v1 = vmul.f32 %v5667_v49, %v910_v60  ;;  %4727 = vmatprep.subr.bf16.mxu0 %v5111_v25 }
 0x166   : > { %v5206_v3 = vpop.eup %5205  ;;  %v925_v4 = vmul.f32 %v5667_v49, %v911_v62  ;;  %4728 = vmatpush3.bf16.msra.mxu0 %v5112_v8 }
 0x167   : > { %v5208_v5 = vpop.eup %5207  ;;  %v938_v26 = vadd.f32 %v5675_v54, %v924_v1  ;;  %v912_v6 = vmul.f32 %v5206_v3, %v5556_v34  ;;  %v5696_v7 = vpop.permute.xlu1 %968  ;;  %4729 = vmatprep.subr.bf16.mxu0 %v5113_v28 }
 0x168   : > { %v939_v11 = vadd.f32 %v5675_v54, %v925_v4  ;;  %v913_v12 = vmul.f32 %v5208_v5, %v5559_v36  ;;  %v2392_v34 = vmul.f32 %v5691_v2, %v5696_v7  ;;  %v2335_v14 = vmul.f32 %v2383_v63, %v5696_v7  ;;  %v5786_v25 = vpop.permute.xlu0 %1085 }
 0x169   : > { %946 = vst.msk [vmem:[#allocation2 + $0x18] sm:$0xff] %vm770_vm0, %v938_v26  ;;  %v926_v15 = vmul.f32 %v5667_v49, %v912_v6 }
 0x16a   : > { %v5210_v17 = vpop.eup %5209  ;;  %947 = vst.msk [vmem:[#allocation2 + $0x20] sm:$0xff] %vm770_vm0, %v939_v11  ;;  %v927_v18 = vmul.f32 %v5667_v49, %v913_v12  ;;  %v2399_v21 = vpack.c.bf16 %v2392_v34, %v2391_v9  ;;  %v2342_v13 = vpack.c.bf16 %v2335_v14, %v2334_v10  ;;  %4730 = vmatpush3.bf16.msra.mxu0 %v5114_v29 }
 0x16b   : > { %v5212_v36 = vpop.eup %5211  ;;  %v940_v22 = vadd.f32 %v5675_v54, %v926_v15  ;;  %v914_v23 = vmul.f32 %v5210_v17, %v5566_v44  ;;  %v5717_v24 = vpop.permute.xlu1 %1070  ;;  %4731 = vmatprep.subr.bf16.mxu0 %v5115_v41  ;;  %v2385_v17 = vld [vmem:[#allocation6 + $0x1f] sm:$0xff] }
 0x16c   : > { %v941_v30 = vadd.f32 %v5675_v54, %v927_v18  ;;  %v915_v31 = vmul.f32 %v5212_v36, %v5569_v46  ;;  %v1018_v32 = vld [vmem:[#allocation2 + $0x10] sm:$0xff]  ;;  %2403 = vst.msk [vmem:[#allocation7 + $0x8] sm:$0xff] %vm780_vm1, %v2399_v21  ;;  %2346 = vst.msk [vmem:[#allocation7] sm:$0xff] %vm780_vm1, %v2342_v13 }
 0x16d   : > { %v5727_v33 = vld [vmem:[#allocation2 + $0xf] sm:$0xff]  ;;  %948 = vst.msk [vmem:[#allocation2 + $0x28] sm:$0xff] %vm770_vm0, %v940_v22  ;;  %v928_v44 = vmul.f32 %v5667_v49, %v914_v23  ;;  %v1025_v35 = vpack.c.bf16 %v1018_v32, %v1017_v20  ;;  %v2386_v23 = vld [vmem:[#allocation6 + $0x27] sm:$0xff] }
 0x16e   : > { %949 = vst.msk [vmem:[#allocation2 + $0x30] sm:$0xff] %vm770_vm0, %v941_v30  ;;  %v929_v37 = vmul.f32 %v5667_v49, %v915_v31  ;;  %v1002_v46 = vmul.f32 %v5727_v33, %v5696_v7  ;;  %4732 = vmatpush3.bf16.msra.mxu0 %v5116_v42  ;;  %v1050_v4 = vld [vmem:[#allocation2 + $0x9] sm:$0xff]  ;;  %v5121_v31 = vld [vmem:[%s7096_s10 + $0x78] sm:$0xff]  }
 0x16f   : > { %v942_v39 = vadd.f32 %v5675_v54, %v928_v44  ;;  %v5739_v40 = vpop.permute.xlu1 %1075  ;;  %1033 = vrot.lane.b32.xlu0 %v1025_v35, %s7065_s5  ;;  %4733 = vmatprep.subr.bf16.mxu0 %v5117_v57  ;;  %v5119_v36 = vld [vmem:[%s7096_s10 + $0x70] sm:$0xff]   ;;  %v1098_v28 = vmul.f32 %v5753_v50, %v1050_v4  ;;  %v5122_v57 = vld [vmem:[%s7096_s10 + $0x38] sm:$0xff]  }
 0x170   : > { %v943_v43 = vadd.f32 %v5675_v54, %v929_v37  ;;  %v1268_v45 = vld [vmem:[#allocation2 + $0x18] sm:$0xff]  ;;  %v1009_v47 = vpack.c.bf16 %v1002_v46, %v1001_v38  ;;  %v5120_v22 = vld [vmem:[%s7096_s10 + $0x30] sm:$0xff]  }
 0x171   : > { %950 = vst.msk [vmem:[#allocation2 + $0x38] sm:$0xff] %vm770_vm0, %v942_v39  ;;  %v5750_v48 = vld [vmem:[#allocation2 + $0x20] sm:$0xff]  ;;  %v1180_v56 = vpack.c.bf16 %v1268_v45, %v1018_v32  ;;  %v1051_v5 = vld [vmem:[#allocation2 + $0x11] sm:$0xff] }
 0x172   : > { %951 = vst.msk [vmem:[#allocation2 + $0x40] sm:$0xff] %vm770_vm0, %v943_v43  ;;  %v1276_v51 = vpack.c.bf16 %v5750_v48, %v1268_v45  ;;  %v5756_v52 = vld [vmem:[#allocation2 + $0x19] sm:$0xff]  ;;  %1013 = vst.msk [vmem:[#allocation3] sm:$0xff] %vm770_vm0, %v1009_v47  ;;  %4734 = vmatpush3.bf16.msra.mxu0 %v5118_v19  ;;  %v1099_v20 = vmul.f32 %v5670_v53, %v1051_v5  ;;  %v1196_v21 = vmul.f32 %v5753_v50, %v1051_v5  ;;  %v2387_v37 = vld [vmem:[#allocation6 + $0x2f] sm:$0xff]  ;;  %v5838_v45 = vpop.permute.xlu0 %988 }
 0x173   : > { %v5759_v55 = vpop.permute.xlu1 %973  ;;  %v1308_v62 = vmul.f32 %v5756_v52, %v5753_v50  ;;  %1184 = vst.msk [vmem:[#allocation3 + $0x8] sm:$0xff] %vm770_vm0, %v1180_v56  ;;  %v1132_v6 = vld [vmem:[#allocation2 + $0x17] sm:$0xff]  ;;  %v5790_v9 = vld [vmem:[#allocation2 + $0x1f] sm:$0xff]  ;;  %v1197_v13 = vmul.f32 %v5756_v52, %v5670_v53  ;;  %4735 = vmatprep.subr.bf16.mxu0 %v5119_v36  ;;  %v1139_v56 = vmul.f32 %v5727_v33, %v5686_v61 }
 0x174   : > { %1284 = vrot.lane.b32.xlu1 %v1276_v51, %s7061_s7  ;;  %1035 = vrot.lane.b32.xlu0 %v1276_v51, %s7065_s5  ;;  %v5769_v58 = vld [vmem:[#allocation2 + $0x28] sm:$0xff]  ;;  %v1003_v14 = vmul.f32 %v1132_v6, %v5759_v55  ;;  %v1140_v32 = vmul.f32 %v1132_v6, %v5696_v7  ;;  %v1236_v44 = vmul.f32 %v1132_v6, %v5686_v61  ;;  %v5827_v38 = vld [vmem:[#allocation6 + $0x37] sm:$0xff] }
 0x175   : > { %v5771_v59 = vld [vmem:[#allocation2 + $0x21] sm:$0xff]  ;;  %v5773_v60 = vld [vmem:[#allocation2 + $0x30] sm:$0xff]  ;;  %v1237_v35 = vmul.f32 %v5790_v9, %v5696_v7  ;;  %v1181_v39 = vpack.c.bf16 %v5769_v58, %v5750_v48  ;;  %v2393_v42 = vmul.f32 %v2385_v17, %v5759_v55  ;;  %v1106_v47 = vpack.c.bf16 %v1099_v20, %v1098_v28 }
 0x176   : > { %v1309_v63 = vmul.f32 %v5771_v59, %v5670_v53  ;;  %v1277_v0 = vpack.c.bf16 %v5773_v60, %v5769_v58  ;;  %v5782_v1 = vld [vmem:[#allocation2 + $0x29] sm:$0xff]  ;;  %v1204_v51 = vpack.c.bf16 %v1197_v13, %v1196_v21  ;;  %4736 = vmatpush3.bf16.msra.mxu0 %v5120_v22  ;;  %v2396_v33 = vmul.f32 %v5827_v38, %v5838_v45 }
 0x177   : > { %v5784_v3 = vpop.permute.xlu1 %978  ;;  %v1310_v12 = vmul.f32 %v5782_v1, %v5717_v24  ;;  %v5830_v46 = vld [vmem:[#allocation2 + $0x2f] sm:$0xff]  ;;  %v1134_v58 = vld [vmem:[#allocation2 + $0x27] sm:$0xff]  ;;  %1185 = vst.msk [vmem:[#allocation3 + $0x20] sm:$0xff] %vm770_vm0, %v1181_v39  ;;  %4737 = vmatprep.subr.bf16.mxu0 %v5121_v31  ;;  %v1147_v4 = vpack.c.bf16 %v1140_v32, %v1139_v56  ;;  %v1100_v13 = vmul.f32 %v5756_v52, %v5717_v24 }
 0x178   : > { %v1316_v26 = vpack.c.bf16 %v1309_v63, %v1308_v62  ;;  %1286 = vrot.lane.b32.xlu1 %v1277_v0, %s7061_s7  ;;  %1037 = vrot.lane.b32.xlu0 %v1277_v0, %s7065_s5  ;;  %v1272_v8 = vld [vmem:[#allocation2 + $0x38] sm:$0xff]  ;;  %v1004_v15 = vmul.f32 %v5790_v9, %v5784_v3  ;;  %v2394_v43 = vmul.f32 %v2386_v23, %v5784_v3 }
 0x179   : > { %v5792_v10 = vld [vmem:[#allocation2 + $0x31] sm:$0xff]  ;;  %v5794_v11 = vld [vmem:[#allocation2 + $0x40] sm:$0xff]  ;;  %v1182_v41 = vpack.c.bf16 %v1272_v8, %v5773_v60  ;;  %v2337_v48 = vmul.f32 %v2385_v17, %v5784_v3  ;;  %v2336_v62 = vmul.f32 %v5691_v2, %v5759_v55  ;;  %v2339_v63 = vmul.f32 %v2387_v37, %v5838_v45 }
 0x17a   : > { %1320 = vst.msk [vmem:[#allocation3 + $0x10] sm:$0xff] %vm770_vm0, %v1316_v26  ;;  %v1311_v34 = vmul.f32 %v5792_v10, %v5739_v40  ;;  %v1278_v18 = vpack.c.bf16 %v5794_v11, %v1272_v8  ;;  %v1010_v30 = vpack.c.bf16 %v1004_v15, %v1003_v14  ;;  %v2400_v60 = vpack.c.bf16 %v2394_v43, %v2393_v42  ;;  %v5896_v39 = vld [vmem:[#allocation2 + $0x3f] sm:$0xff] }
 0x17b   : > { %v5815_v27 = vpop.permute.xlu1 %1080  ;;  %1186 = vst.msk [vmem:[#allocation3 + $0x38] sm:$0xff] %vm770_vm0, %v1182_v41  ;;  %v1006_v26 = vmul.f32 %v5830_v46, %v5838_v45  ;;  %v1244_v2 = vpack.c.bf16 %v1237_v35, %v1236_v44  ;;  %v2343_v6 = vpack.c.bf16 %v2337_v48, %v2336_v62  ;;  %v1198_v14 = vmul.f32 %v5771_v59, %v5717_v24 }
 0x17c   : > { %v1317_v29 = vpack.c.bf16 %v1311_v34, %v1310_v12  ;;  %1288 = vrot.lane.b32.xlu1 %v1278_v18, %s7061_s7  ;;  %1039 = vrot.lane.b32.xlu0 %v1278_v18, %s7065_s5  ;;  %1014 = vst.msk [vmem:[#allocation3 + $0x18] sm:$0xff] %vm770_vm0, %v1010_v30  ;;  %v1101_v34 = vmul.f32 %v5771_v59, %v5739_v40 }
 0x17d   : > { %2404 = vst.msk [vmem:[#allocation7 + $0x18] sm:$0xff] %vm780_vm1, %v2400_v60  ;;  %v1199_v15 = vmul.f32 %v5782_v1, %v5739_v40  ;;  %4738 = vmatpush3.bf16.msra.mxu0 %v5122_v57  ;;  %2347 = vst.msk [vmem:[#allocation7 + $0x10] sm:$0xff] %vm780_vm1, %v2343_v6  ;;  %v1142_v22 = vmul.f32 %v1134_v58, %v5784_v3  ;;  %v1141_v52 = vmul.f32 %v5790_v9, %v5759_v55  ;;  %v5908_v57 = vpop.permute.xlu0 %1095 }
 0x17e   : > { %1321 = vst.msk [vmem:[#allocation3 + $0x28] sm:$0xff] %vm770_vm0, %v1317_v29  ;;  %v1107_v59 = vpack.c.bf16 %v1101_v34, %v1100_v13  ;;  %v1238_v28 = vmul.f32 %v1134_v58, %v5759_v55  ;;  %v1193_v29 = vld [vmem:[#allocation2 + $0x39] sm:$0xff]  ;;  %v1102_v32 = vmul.f32 %v5782_v1, %v5815_v27  ;;  %v1200_v44 = vmul.f32 %v5792_v10, %v5815_v27 }
 0x17f   : > { %v5846_v19 = vpop.permute.xlu1 %983  ;;  %v1205_v36 = vpack.c.bf16 %v1199_v15, %v1198_v14  ;;  %v1148_v30 = vpack.c.bf16 %v1142_v22, %v1141_v52  ;;  %v1103_v35 = vmul.f32 %v5792_v10, %v5786_v25  ;;  %v1201_v9 = vmul.f32 %v1193_v29, %v5786_v25 }
 0x180   : > { %1114 = vrot.lane.b32.xlu0 %v1106_v47, %s7063_s25  ;;  %1212 = vrot.lane.b32.xlu1 %v1204_v51, %s7065_s5  ;;  %v1005_v5 = vmul.f32 %v1134_v58, %v5846_v19  ;;  %v2395_v8 = vmul.f32 %v2387_v37, %v5846_v19  ;;  %v2338_v12 = vmul.f32 %v2386_v23, %v5846_v19  ;;  %v1232_v37 = vld [vmem:[#allocation2 + $0x37] sm:$0xff] }
 0x181   : > { %v1326_v0 = vld [vmem:[#allocation3 + $0x10] sm:$0xff]  ;;  %v1239_v23 = vmul.f32 %v5830_v46, %v5784_v3  ;;  %v1108_v41 = vpack.c.bf16 %v1103_v35, %v1102_v32  ;;  %v1206_v42 = vpack.c.bf16 %v1201_v9, %v1200_v44  ;;  %v1240_v43 = vmul.f32 %v1232_v37, %v5846_v19  ;;  %v5912_v62 = vpop.permute.xlu0 %998 }
 0x182   : > { %4969 = vmatprep.mubr.msk.bf16.mxu1 %vm770_vm0, %v1326_v0  ;;  %v1011_v17 = vpack.c.bf16 %v1006_v26, %v1005_v5  ;;  %v2401_v18 = vpack.c.bf16 %v2396_v33, %v2395_v8  ;;  %v2344_v20 = vpack.c.bf16 %v2339_v63, %v2338_v12  ;;  %v1143_v1 = vmul.f32 %v5830_v46, %v5846_v19  ;;  %v2390_v33 = vld [vmem:[#allocation6 + $0x47] sm:$0xff]  ;;  %v2389_v63 = vld [vmem:[#allocation6 + $0x3f] sm:$0xff] }
 0x183   : > { %v1245_v31 = vpack.c.bf16 %v1239_v23, %v1238_v28  ;;  %v1241_v47 = vmul.f32 %v5896_v39, %v5838_v45  ;;  %v1144_v10 = vmul.f32 %v1232_v37, %v5838_v45  ;;  %v2398_v5 = vmul.f32 %v2390_v33, %v5912_v62 }
 0x184   : > { %1155 = vrot.lane.b32.xlu0 %v1147_v4, %s7061_s7  ;;  %1252 = vrot.lane.b32.xlu1 %v1244_v2, %s7063_s25  ;;  %1015 = vst.msk [vmem:[#allocation3 + $0x30] sm:$0xff] %vm770_vm0, %v1011_v17  ;;  %v1008_v4 = vmul.f32 %v5896_v39, %v5912_v62  ;;  %v2341_v8 = vmul.f32 %v2389_v63, %v5912_v62 }
 0x185   : > { %v1329_v21 = vld [vmem:[#allocation3 + $0x28] sm:$0xff]  ;;  %2405 = vst.msk [vmem:[#allocation7 + $0x28] sm:$0xff] %vm780_vm1, %v2401_v18  ;;  %2348 = vst.msk [vmem:[#allocation7 + $0x20] sm:$0xff] %vm780_vm1, %v2344_v20  ;;  %v1246_v51 = vpack.c.bf16 %v1241_v47, %v1240_v43  ;;  %v1149_v56 = vpack.c.bf16 %v1144_v10, %v1143_v1  ;;  %v1275_v10 = vld [vmem:[#allocation2 + $0x50] sm:$0xff] }
 0x186   : > { %4970 = vmatmul.mubr.msk.bf16.vlgmr.msra.gmra.mrb[0].mxu1 %vm770_vm0, %v1329_v21 }
 0x188   : > { %1116 = vrot.lane.b32.xlu0 %v1107_v59, %s7063_s25  ;;  %1214 = vrot.lane.b32.xlu1 %v1205_v36, %s7065_s5  ;;  %v1312_v36 = vmul.f32 %v1193_v29, %v5815_v27 }
 0x18c   : > { %1157 = vrot.lane.b32.xlu0 %v1148_v30, %s7061_s7  ;;  %1254 = vrot.lane.b32.xlu1 %v1245_v31, %s7063_s25 }
 0x190   : > { %1118 = vrot.lane.b32.xlu0 %v1108_v41, %s7063_s25  ;;  %1216 = vrot.lane.b32.xlu1 %v1206_v42, %s7065_s5 }
 0x194   : > { %1256 = vrot.lane.b32.xlu1 %v1246_v51, %s7063_s25  ;;  %1159 = vrot.lane.b32.xlu0 %v1149_v56, %s7061_s7 }
 0x1b0   : > { %v884_v48 = vpop.xlane.xlu1 %883 }
 0x1b1   : > { %v892_v58 = vmul.f32 0.03125, %v884_v48 }
 0x1b3   : > { %v900_v46 = vadd.f32 1e-05, %v892_v58 }
 0x1b4   : > { %v5910_v60 = vpop.permute.xlu1 %1090 }
 0x1b5   : > { %5213 = vrsqrt.f32 %v900_v46  ;;  %v1104_v23 = vmul.f32 %v1193_v29, %v5910_v60 }
 0x1b8   : > { %v5914_v0 = vpop.permute.xlu1 %993 }
 0x1b9   : > { %v1007_v26 = vmul.f32 %v1232_v37, %v5914_v0  ;;  %v2397_v2 = vmul.f32 %v2389_v63, %v5914_v0  ;;  %v2340_v6 = vmul.f32 %v5827_v38, %v5914_v0  ;;  %v1307_v38 = vld [vmem:[#allocation2 + $0x51] sm:$0xff]  ;;  %v1145_v42 = vmul.f32 %v5896_v39, %v5914_v0 }
 0x1ba   : > { %v1315_v22 = vmul.f32 %v1307_v38, %v5908_v57 }
 0x1bb   : > { %v1012_v12 = vpack.c.bf16 %v1008_v4, %v1007_v26  ;;  %v2402_v34 = vpack.c.bf16 %v2398_v5, %v2397_v2  ;;  %v2345_v14 = vpack.c.bf16 %v2341_v8, %v2340_v6 }
 0x1bd   : > { %1016 = vst.msk [vmem:[#allocation3 + $0x48] sm:$0xff] %vm770_vm0, %v1012_v12 }
 0x1be   : > { %2406 = vst.msk [vmem:[#allocation7 + $0x38] sm:$0xff] %vm780_vm1, %v2402_v34  ;;  %2349 = vst.msk [vmem:[#allocation7 + $0x30] sm:$0xff] %vm780_vm1, %v2345_v14 }
 0x1bf   : > { %v5214_v15 = vpop.eup %5213 }
 0x1c0   : > { %v916_v17 = vmul.f32 %v5214_v15, %v5647_v16 }
 0x1c2   : > { %v930_v18 = vmul.f32 %v5667_v49, %v916_v17 }
 0x1c4   : > { %v944_v20 = vadd.f32 %v5675_v54, %v930_v18 }
 0x1c6   : > { %952 = vst.msk [vmem:[#allocation2 + $0x48] sm:$0xff] %vm770_vm0, %v944_v20 }
 0x1cd   : > { %v1057_v21 = vld [vmem:[#allocation2 + $0x41] sm:$0xff]  ;;  %v1195_v13 = vld [vmem:[#allocation2 + $0x49] sm:$0xff] }
 0x1ce   : > { %v1234_v59 = vld [vmem:[#allocation2 + $0x47] sm:$0xff]  ;;  %v1105_v52 = vmul.f32 %v5908_v57, %v1057_v21  ;;  %v1202_v16 = vmul.f32 %v5910_v60, %v1057_v21  ;;  %v1203_v49 = vmul.f32 %v1195_v13, %v5908_v57  ;;  %v1235_v28 = vld [vmem:[#allocation2 + $0x4f] sm:$0xff]  ;;  %v1313_v44 = vmul.f32 %v5786_v25, %v1057_v21 }
 0x1cf   : > { %v1274_v54 = vld [vmem:[#allocation2 + $0x48] sm:$0xff]  ;;  %v1242_v30 = vmul.f32 %v1234_v59, %v5914_v0  ;;  %v1243_v31 = vmul.f32 %v1235_v28, %v5912_v62  ;;  %v1146_v32 = vmul.f32 %v1234_v59, %v5912_v62  ;;  %v1314_v29 = vmul.f32 %v1195_v13, %v5910_v60 }
 0x1d0   : > { %v1109_v35 = vpack.c.bf16 %v1105_v52, %v1104_v23  ;;  %v1207_v9 = vpack.c.bf16 %v1203_v49, %v1202_v16  ;;  %v1183_v37 = vpack.c.bf16 %v1274_v54, %v5794_v11  ;;  %v1318_v41 = vpack.c.bf16 %v1313_v44, %v1312_v36 }
 0x1d1   : > { %v1319_v43 = vpack.c.bf16 %v1315_v22, %v1314_v29  ;;  %v1247_v1 = vpack.c.bf16 %v1243_v31, %v1242_v30  ;;  %v1150_v47 = vpack.c.bf16 %v1146_v32, %v1145_v42  ;;  %v1279_v11 = vpack.c.bf16 %v1275_v10, %v1274_v54  ;;  %v5124_v29 = vld [vmem:[%s7039_s12 + $0x88] sm:$0xff]  }
 0x1d2   : > { %1120 = vrot.lane.b32.xlu0 %v1109_v35, %s7063_s25  ;;  %1218 = vrot.lane.b32.xlu1 %v1207_v9, %s7065_s5  ;;  %1187 = vst.msk [vmem:[#allocation3 + $0x50] sm:$0xff] %vm770_vm0, %v1183_v37  ;;  %1322 = vst.msk [vmem:[#allocation3 + $0x40] sm:$0xff] %vm770_vm0, %v1318_v41  ;;  %v5123_v9 = vld [vmem:[%s7039_s12 + $0x80] sm:$0xff]  }
 0x1d3   : > { %1323 = vst.msk [vmem:[#allocation3 + $0x58] sm:$0xff] %vm770_vm0, %v1319_v43  ;;  %4977 = vmatprep.subr.bf16.mxu0 %v5123_v9 }
 0x1d6   : > { %1258 = vrot.lane.b32.xlu1 %v1247_v1, %s7063_s25  ;;  %1161 = vrot.lane.b32.xlu0 %v1150_v47, %s7061_s7  ;;  %v5992_v47 = vld [vmem:[%s7099_s11] ss:$0 sm:$0xff] }
 0x1d9   : > { %v1332_v51 = vld [vmem:[#allocation3 + $0x40] sm:$0xff] }
 0x1da   : > { %1290 = vrot.lane.b32.xlu1 %v1279_v11, %s7061_s7  ;;  %4973 = vmatprep.mubr.msk.bf16.mxu1 %vm770_vm0, %v1332_v51  ;;  %v1335_v39 = vld [vmem:[#allocation3 + $0x58] sm:$0xff] }
 0x1db   : > { %4974 = vmatmul.mubr.msk.bf16.gmra.mrb[4].mxu1 %vm770_vm0, %v1335_v39 }
 0x1e1   : > { %v1034_v56 = vpop.permute.xlu0 %1033 }
 0x1e2   : > { %1046 = vst.msk [vmem:[#allocation3] sm:$0xff] %vm1045_vm3, %v1034_v56 }
 0x1e6   : > { %v1285_v48 = vpop.permute.xlu1 %1284  ;;  %v1036_v58 = vpop.permute.xlu0 %1035 }
 0x1e7   : > { %1047 = vst.msk [vmem:[#allocation3 + $0x18] sm:$0xff] %vm1045_vm3, %v1036_v58 }
 0x1ea   : > { %v1287_v46 = vpop.permute.xlu1 %1286  ;;  %v1038_v33 = vpop.permute.xlu0 %1037 }
 0x1eb   : > { %1048 = vst.msk [vmem:[#allocation3 + $0x30] sm:$0xff] %vm1045_vm3, %v1038_v33 }
 0x1ee   : > { %v1289_v63 = vpop.permute.xlu1 %1288  ;;  %v1040_v4 = vpop.permute.xlu0 %1039 }
 0x1ef   : > { %1049 = vst.msk [vmem:[#allocation3 + $0x48] sm:$0xff] %vm1045_vm3, %v1040_v4 }
 0x1f2   : > { %v1213_v5 = vpop.permute.xlu1 %1212  ;;  %v1115_v26 = vpop.permute.xlu0 %1114 }
 0x1f3   : > { %1224 = vst.msk [vmem:[#allocation3 + $0x8] sm:$0xff] %vm1045_vm3, %v1213_v5 }
 0x1f4   : > { %1127 = vst.msk [vmem:[#allocation3] sm:$0xff] %vm1126_vm4, %v1115_v26 }
 0x1f6   : > { %v1253_v2 = vpop.permute.xlu1 %1252  ;;  %v1156_v6 = vpop.permute.xlu0 %1155 }
 0x1f7   : > { %1264 = vst.msk [vmem:[#allocation3 + $0x8] sm:$0xff] %vm1126_vm4, %v1253_v2 }
 0x1f8   : > { %1168 = vst.msk [vmem:[#allocation3] sm:$0xff] %vm1167_vm5, %v1156_v6  ;;  %1296 = vst.msk [vmem:[#allocation3 + $0x8] sm:$0xff] %vm1167_vm5, %v1285_v48 }
 0x1fa   : > { %v1215_v8 = vpop.permute.xlu1 %1214  ;;  %v1117_v12 = vpop.permute.xlu0 %1116 }
 0x1fb   : > { %1225 = vst.msk [vmem:[#allocation3 + $0x20] sm:$0xff] %vm1045_vm3, %v1215_v8 }
 0x1fc   : > { %1128 = vst.msk [vmem:[#allocation3 + $0x18] sm:$0xff] %vm1126_vm4, %v1117_v12 }
 0x1fe   : > { %v1255_v34 = vpop.permute.xlu1 %1254  ;;  %v1158_v14 = vpop.permute.xlu0 %1157 }
 0x1ff   : > { %1265 = vst.msk [vmem:[#allocation3 + $0x20] sm:$0xff] %vm1126_vm4, %v1255_v34  ;;  %v1325_v15 = vld [vmem:[#allocation3 + $0x8] sm:$0xff]  ;;  %v1324_v17 = vld [vmem:[#allocation3] sm:$0xff] }
 0x200   : > { %1169 = vst.msk [vmem:[#allocation3 + $0x18] sm:$0xff] %vm1167_vm5, %v1158_v14  ;;  %1297 = vst.msk [vmem:[#allocation3 + $0x20] sm:$0xff] %vm1167_vm5, %v1287_v46  ;;  %1531 = vmatprep.mubr.bf16.mxu0 %v1325_v15 }
 0x201   : > { %1532 = vmatmul.mubr.bf16.vlgmr.msra.gmra.mrb[0].mxu0 %v1324_v17 }
 0x202   : > { %v1217_v18 = vpop.permute.xlu1 %1216  ;;  %v1119_v20 = vpop.permute.xlu0 %1118  ;;  %4978 = vmatpush3.bf16.msra.mxu0 %v5123_v9 }
 0x203   : > { %1226 = vst.msk [vmem:[#allocation3 + $0x38] sm:$0xff] %vm1045_vm3, %v1217_v18  ;;  %4979 = vmatprep.subr.bf16.mxu0 %v5124_v29 }
 0x204   : > { %1129 = vst.msk [vmem:[#allocation3 + $0x30] sm:$0xff] %vm1126_vm4, %v1119_v20 }
 0x206   : > { %v1257_v38 = vpop.permute.xlu1 %1256  ;;  %v1160_v21 = vpop.permute.xlu0 %1159  ;;  %4980 = vmatpush3.bf16.msra.mxu0 %v5124_v29  ;;  %v5126_v29 = vld [vmem:[%s7039_s12] sm:$0xff]  }
 0x207   : > { %1266 = vst.msk [vmem:[#allocation3 + $0x38] sm:$0xff] %vm1126_vm4, %v1257_v38  ;;  %v1328_v13 = vld [vmem:[#allocation3 + $0x20] sm:$0xff]  ;;  %v1327_v59 = vld [vmem:[#allocation3 + $0x18] sm:$0xff] }
 0x208   : > { %1170 = vst.msk [vmem:[#allocation3 + $0x30] sm:$0xff] %vm1167_vm5, %v1160_v21  ;;  %1298 = vst.msk [vmem:[#allocation3 + $0x38] sm:$0xff] %vm1167_vm5, %v1289_v63  ;;  %1539 = vmatprep.mubr.bf16.mxu0 %v1328_v13 }
 0x209   : > { %1540 = vmatmul.mubr.bf16.gmra.mrb[4].mxu0 %v1327_v59 }
 0x20f   : > { %v1331_v36 = vld [vmem:[#allocation3 + $0x38] sm:$0xff]  ;;  %v1330_v22 = vld [vmem:[#allocation3 + $0x30] sm:$0xff] }
 0x210   : > { %1547 = vmatprep.mubr.bf16.mxu0 %v1331_v36 }
 0x211   : > { %1548 = vmatmul.mubr.bf16.gmra.mrb[8].mxu0 %v1330_v22 }
 0x244   : > { %v1219_v23 = vpop.permute.xlu1 %1218  ;;  %v1121_v52 = vpop.permute.xlu0 %1120 }
 0x245   : > { %1227 = vst.msk [vmem:[#allocation3 + $0x50] sm:$0xff] %vm1045_vm3, %v1219_v23 }
 0x246   : > { %1130 = vst.msk [vmem:[#allocation3 + $0x48] sm:$0xff] %vm1126_vm4, %v1121_v52 }
 0x248   : > { %v1259_v16 = vpop.permute.xlu1 %1258  ;;  %v1162_v49 = vpop.permute.xlu0 %1161 }
 0x249   : > { %1267 = vst.msk [vmem:[#allocation3 + $0x50] sm:$0xff] %vm1126_vm4, %v1259_v16 }
 0x24a   : > { %1171 = vst.msk [vmem:[#allocation3 + $0x48] sm:$0xff] %vm1167_vm5, %v1162_v49 }
 0x24c   : > { %v1291_v28 = vpop.permute.xlu1 %1290 }
 0x24d   : > { %1299 = vst.msk [vmem:[#allocation3 + $0x50] sm:$0xff] %vm1167_vm5, %v1291_v28 }
 0x251   : > { %v1333_v30 = vld [vmem:[#allocation3 + $0x48] sm:$0xff] }
 0x254   : > { %v1334_v54 = vld [vmem:[#allocation3 + $0x50] sm:$0xff] }
 0x255   : > { %1555 = vmatprep.mubr.bf16.mxu0 %v1334_v54 }
 0x256   : > { %1556 = vmatmul.mubr.bf16.gmra.mrb[12].mxu0 %v1333_v30 }
 0x259   : > { %v4971_v31 = vpop.f32.mrb[0].mxu1 }
 0x25a   : > { %v1598_v32 = vpop.f32.mrb[1].mxu1 }
 0x25b   : > { %v4972_v44 = vpop.f32.mrb[2].mxu1 }
 0x25c   : > { %v1601_v35 = vpop.f32.mrb[3].mxu1 }
 0x2ae   : > { %v5985_v37 = vpop.f32.mrb[4].mxu1 }
 0x2af   : > { %v1614_v41 = vpop.f32.mrb[5].mxu1 }
 0x2b0   : > { %v5987_v42 = vpop.f32.mrb[6].mxu1 }
 0x2b1   : > { %v1617_v43 = vpop.f32.mrb[7].mxu1 }
 0x2d4   : > { %v4739_v1 = vpop.f32.mrb[0].mxu0 }
 0x2d5   : > { %v4740_v10 = vpop.f32.mrb[1].mxu0 }
 0x2d6   : > { %v4741_v11 = vadd.f32 %v4740_v10, %v4739_v1  ;;  %v4742_v51 = vpop.f32.mrb[2].mxu0  ;;  %v5127_v1 = vld [vmem:[%s7039_s12 + $0x48] sm:$0xff]  }
 0x2d7   : > { %v4743_v39 = vpop.f32.mrb[3].mxu0 }
 0x2d8   : > { %v1534_v56 = vadd.f32 %v4741_v11, %v5992_v47  ;;  %v4744_v48 = vadd.f32 %v4743_v39, %v4742_v51 }
 0x2da   : > { %v1599_v58 = vadd.f32 %v1598_v32, %v1534_v56  ;;  %v1537_v46 = vadd.f32 %v4744_v48, %v5992_v47  ;;  %v5128_v48 = vld [vmem:[%s7039_s12 + $0x8] sm:$0xff]  }
 0x2dc   : > { %v1637_v33 = vmul.f32 0.044715, %v1599_v58  ;;  %v5996_v63 = vadd.f32 %v1601_v35, %v1537_v46  ;;  %v4745_v4 = vpop.f32.mrb[4].mxu0 }
 0x2dd   : > { %v4746_v5 = vpop.f32.mrb[5].mxu0 }
 0x2de   : > { %v1645_v26 = vmul.f32 %v1637_v33, %v1599_v58  ;;  %v1638_v2 = vmul.f32 0.044715, %v5996_v63  ;;  %v4747_v6 = vadd.f32 %v4746_v5, %v4745_v4  ;;  %v4748_v8 = vpop.f32.mrb[6].mxu0 }
 0x2df   : > { %v4749_v12 = vpop.f32.mrb[7].mxu0 }
 0x2e0   : > { %v1653_v34 = vmul.f32 %v1645_v26, %v1599_v58  ;;  %v1646_v14 = vmul.f32 %v1638_v2, %v5996_v63  ;;  %v1542_v15 = vadd.f32 %v4747_v6, %v5992_v47  ;;  %v4750_v17 = vadd.f32 %v4749_v12, %v4748_v8 }
 0x2e2   : > { %v1661_v18 = vadd.f32 %v1653_v34, %v1599_v58  ;;  %v1654_v20 = vmul.f32 %v1646_v14, %v5996_v63  ;;  %v6002_v38 = vadd.f32 %v4971_v31, %v1542_v15  ;;  %v1545_v21 = vadd.f32 %v4750_v17, %v5992_v47 }
 0x2e3   : > { %v1629_v34 = vmul.f32 0.5, %v1599_v58 }
 0x2e4   : > { %v1669_v13 = vmul.f32 0.7978846, %v1661_v18  ;;  %v1662_v59 = vadd.f32 %v1654_v20, %v5996_v63  ;;  %v1639_v36 = vmul.f32 0.044715, %v6002_v38  ;;  %v4751_v22 = vpop.f32.mrb[8].mxu0  ;;  %v6007_v23 = vadd.f32 %v4972_v44, %v1545_v21  ;;  %v5125_v44 = vld [vmem:[%s7039_s12 + $0x40] sm:$0xff]  }
 0x2e5   : > { %v4752_v52 = vpop.f32.mrb[9].mxu0  ;;  %4769 = vmatprep.subr.bf16.mxu1 %v5125_v44  ;;  %v5129_v18 = vld [vmem:[%s7039_s12 + $0x50] sm:$0xff]   ;;  %v1709_v44 = vld [vmem:[#allocation4 + $0x7] sm:$0xff] }
 0x2e6   : > { %5215 = vtanh.f32 %v1669_v13  ;;  %v1670_v16 = vmul.f32 0.7978846, %v1662_v59  ;;  %v1647_v49 = vmul.f32 %v1639_v36, %v6002_v38  ;;  %v4753_v28 = vadd.f32 %v4752_v52, %v4751_v22  ;;  %v4754_v54 = vpop.f32.mrb[10].mxu0  ;;  %4770 = vmatpush3.bf16.msra.mxu1 %v5126_v29  ;;  %v5130_v20 = vld [vmem:[%s7039_s12 + $0x10] sm:$0xff]  }
 0x2e7   : > { %v1640_v30 = vmul.f32 0.044715, %v6007_v23  ;;  %v4755_v31 = vpop.f32.mrb[11].mxu0  ;;  %4771 = vmatprep.subr.bf16.mxu1 %v5127_v1  ;;  %v1630_v13 = vmul.f32 0.5, %v5996_v63  ;;  %v1632_v29 = vmul.f32 0.5, %v6007_v23 }
 0x2e8   : > { %5217 = vtanh.f32 %v1670_v16  ;;  %v1655_v32 = vmul.f32 %v1647_v49, %v6002_v38  ;;  %v1550_v35 = vadd.f32 %v4753_v28, %v5992_v47  ;;  %v4756_v9 = vadd.f32 %v4755_v31, %v4754_v54  ;;  %v5131_v16 = vld [vmem:[%s7039_s12 + $0x58] sm:$0xff]   ;;  %v5133_v31 = vld [vmem:[%s7039_s12 + $0x60] sm:$0xff]  }
 0x2e9   : > { %v1648_v10 = vmul.f32 %v1640_v30, %v6007_v23  ;;  %v5132_v49 = vld [vmem:[%s7039_s12 + $0x18] sm:$0xff]   ;;  %v1631_v28 = vmul.f32 0.5, %v6002_v38  ;;  %v1733_v30 = vld [vmem:[#allocation4 + $0x8] sm:$0xff] }
 0x2ea   : > { %v1663_v11 = vadd.f32 %v1655_v32, %v6002_v38  ;;  %v6024_v51 = vadd.f32 %v1614_v41, %v1550_v35  ;;  %v1553_v39 = vadd.f32 %v4756_v9, %v5992_v47  ;;  %4772 = vmatpush3.bf16.msra.mxu1 %v5128_v48  ;;  %v5134_v32 = vld [vmem:[%s7039_s12 + $0x20] sm:$0xff]  }
 0x2eb   : > { %v1656_v56 = vmul.f32 %v1648_v10, %v6007_v23  ;;  %4773 = vmatprep.subr.bf16.mxu1 %v5129_v18 }
 0x2ec   : > { %v1671_v46 = vmul.f32 0.7978846, %v1663_v11  ;;  %v1641_v33 = vmul.f32 0.044715, %v6024_v51  ;;  %v6032_v4 = vadd.f32 %v1617_v43, %v1553_v39 }
 0x2ed   : > { %v1664_v5 = vadd.f32 %v1656_v56, %v6007_v23 }
 0x2ee   : > { %5219 = vtanh.f32 %v1671_v46  ;;  %v1649_v41 = vmul.f32 %v1641_v33, %v6024_v51  ;;  %v1642_v26 = vmul.f32 0.044715, %v6032_v4  ;;  %4774 = vmatpush3.bf16.msra.mxu1 %v5130_v20 }
 0x2ef   : > { %v1672_v2 = vmul.f32 0.7978846, %v1664_v5  ;;  %4775 = vmatprep.subr.bf16.mxu1 %v5131_v16 }
 0x2f0   : > { %v5216_v6 = vpop.eup %5215  ;;  %v1657_v8 = vmul.f32 %v1649_v41, %v6024_v51  ;;  %v1650_v12 = vmul.f32 %v1642_v26, %v6032_v4  ;;  %v1717_v41 = vmul.f32 %v1709_v44, %v5686_v61 }
 0x2f1   : > { %v1685_v14 = vadd.f32 1.0, %v5216_v6  ;;  %5221 = vtanh.f32 %v1672_v2  ;;  %v5135_v2 = vld [vmem:[%s7039_s12 + $0x68] sm:$0xff]  }
 0x2f2   : > { %v5218_v43 = vpop.eup %5217  ;;  %v1665_v15 = vadd.f32 %v1657_v8, %v6024_v51  ;;  %v1658_v17 = vmul.f32 %v1650_v12, %v6032_v4  ;;  %4776 = vmatpush3.bf16.msra.mxu1 %v5132_v49  ;;  %v5136_v6 = vld [vmem:[%s7039_s12 + $0x28] sm:$0xff]  }
 0x2f3   : > { %v1693_v21 = vmul.f32 %v1685_v14, %v1629_v34  ;;  %v1686_v59 = vadd.f32 1.0, %v5218_v43  ;;  %4777 = vmatprep.subr.bf16.mxu1 %v5133_v31  ;;  %v1633_v14 = vmul.f32 0.5, %v6024_v51  ;;  %v5137_v51 = vld [vmem:[%s7039_s12 + $0x70] sm:$0xff]  }
 0x2f4   : > { %v1673_v58 = vmul.f32 0.7978846, %v1665_v15  ;;  %v1666_v36 = vadd.f32 %v1658_v17, %v6032_v4 }
 0x2f5   : > { %1701 = vst.msk [vmem:[#allocation4 + $0x10] sm:$0xff] %vm770_vm0, %v1693_v21  ;;  %v1694_v22 = vmul.f32 %v1686_v59, %v1630_v13  ;;  %v1634_v21 = vmul.f32 0.5, %v6032_v4  ;;  %v5138_v4 = vld [vmem:[%s7039_s12 + $0x30] sm:$0xff]  }
 0x2f6   : > { %5223 = vtanh.f32 %v1673_v58  ;;  %v1674_v52 = vmul.f32 0.7978846, %v1666_v36  ;;  %4778 = vmatpush3.bf16.msra.mxu1 %v5134_v32 }
 0x2f7   : > { %1702 = vst.msk [vmem:[#allocation4 + $0x18] sm:$0xff] %vm770_vm0, %v1694_v22  ;;  %4779 = vmatprep.subr.bf16.mxu1 %v5135_v2 }
 0x2f8   : > { %v5220_v63 = vpop.eup %5219  ;;  %5225 = vtanh.f32 %v1674_v52 }
 0x2f9   : > { %v1687_v54 = vadd.f32 1.0, %v5220_v63 }
 0x2fa   : > { %4780 = vmatpush3.bf16.msra.mxu1 %v5136_v6 }
 0x2fb   : > { %v5222_v35 = vpop.eup %5221  ;;  %v1695_v9 = vmul.f32 %v1687_v54, %v1631_v28  ;;  %4781 = vmatprep.subr.bf16.mxu1 %v5137_v51  ;;  %v5139_v54 = vld [vmem:[%s7039_s12 + $0x78] sm:$0xff]  }
 0x2fc   : > { %v1688_v1 = vadd.f32 1.0, %v5222_v35  ;;  %v1734_v10 = vld [vmem:[#allocation4 + $0x10] sm:$0xff] }
 0x2fd   : > { %v1765_v11 = vld [vmem:[#allocation4 + $0x9] sm:$0xff]  ;;  %1703 = vst.msk [vmem:[#allocation4 + $0x20] sm:$0xff] %vm770_vm0, %v1695_v9  ;;  %v1741_v39 = vpack.c.bf16 %v1734_v10, %v1733_v30 }
 0x2fe   : > { %v1805_v38 = vld [vmem:[#allocation4 + $0xf] sm:$0xff]  ;;  %v1696_v48 = vmul.f32 %v1688_v1, %v1632_v29  ;;  %v1806_v33 = vld [vmem:[#allocation4 + $0x17] sm:$0xff]  ;;  %v1773_v23 = vmul.f32 %v1765_v11, %v5753_v50  ;;  %4782 = vmatpush3.bf16.msra.mxu1 %v5138_v4 }
 0x2ff   : > { %v1718_v56 = vmul.f32 %v1805_v38, %v5696_v7  ;;  %v1766_v46 = vld [vmem:[#allocation4 + $0x11] sm:$0xff]  ;;  %1749 = vrot.lane.b32.xlu0 %v1741_v39, %s7065_s5  ;;  %v1814_v17 = vmul.f32 %v1806_v33, %v5696_v7  ;;  %v1813_v59 = vmul.f32 %v1805_v38, %v5686_v61  ;;  %v1719_v35 = vmul.f32 %v1806_v33, %v5759_v55 }
 0x300   : > { %v1941_v5 = vld [vmem:[#allocation4 + $0x18] sm:$0xff]  ;;  %v1774_v26 = vmul.f32 %v1766_v46, %v5670_v53  ;;  %v5224_v8 = vpop.eup %5223  ;;  %1704 = vst.msk [vmem:[#allocation4 + $0x28] sm:$0xff] %vm770_vm0, %v1696_v48  ;;  %v1869_v30 = vmul.f32 %v1766_v46, %v5753_v50  ;;  %4783 = vmatprep.subr.bf16.mxu1 %v5139_v54  ;;  %v1909_v46 = vmul.f32 %v1806_v33, %v5686_v61 }
 0x301   : > { %v1725_v12 = vpack.c.bf16 %v1718_v56, %v1717_v41  ;;  %v1853_v34 = vpack.c.bf16 %v1941_v5, %v1734_v10  ;;  %v1689_v43 = vadd.f32 1.0, %v5224_v8  ;;  %v1821_v16 = vpack.c.bf16 %v1814_v17, %v1813_v59  ;;  %v5140_v1 = vld [vmem:[%s7039_s12 + $0x38] sm:$0xff]  }
 0x302   : > { %v1781_v15 = vpack.c.bf16 %v1774_v26, %v1773_v23  ;;  %v5226_v18 = vpop.eup %5225  ;;  %4784 = vmatpush3.bf16.msra.mxu1 %v5140_v1 }
 0x303   : > { %1729 = vst.msk [vmem:[#allocation5] sm:$0xff] %vm770_vm0, %v1725_v12  ;;  %1857 = vst.msk [vmem:[#allocation5 + $0x8] sm:$0xff] %vm770_vm0, %v1853_v34  ;;  %v1697_v20 = vmul.f32 %v1689_v43, %v1633_v14  ;;  %v1690_v13 = vadd.f32 1.0, %v5226_v18 }
 0x304   : > { %1789 = vrot.lane.b32.xlu0 %v1781_v15, %s7063_s25  ;;  %v1942_v58 = vld [vmem:[#allocation4 + $0x20] sm:$0xff] }
 0x305   : > { %v1862_v36 = vld [vmem:[#allocation4 + $0x19] sm:$0xff]  ;;  %1705 = vst.msk [vmem:[#allocation4 + $0x30] sm:$0xff] %vm770_vm0, %v1697_v20  ;;  %v1698_v52 = vmul.f32 %v1690_v13, %v1634_v21  ;;  %v1949_v49 = vpack.c.bf16 %v1942_v58, %v1941_v5 }
 0x306   : > { %v1902_v22 = vld [vmem:[#allocation4 + $0x1f] sm:$0xff]  ;;  %v1870_v63 = vmul.f32 %v1862_v36, %v5670_v53  ;;  %v1981_v44 = vmul.f32 %v1862_v36, %v5753_v50  ;;  %v1775_v5 = vmul.f32 %v1862_v36, %v5717_v24 }
 0x307   : > { %v1720_v28 = vmul.f32 %v1902_v22, %v5784_v3  ;;  %1706 = vst.msk [vmem:[#allocation4 + $0x38] sm:$0xff] %vm770_vm0, %v1698_v52  ;;  %1957 = vrot.lane.b32.xlu1 %v1949_v49, %s7061_s7  ;;  %v1768_v31 = vld [vmem:[#allocation4 + $0x21] sm:$0xff]  ;;  %v1910_v9 = vmul.f32 %v1902_v22, %v5696_v7  ;;  %v1815_v8 = vmul.f32 %v1902_v22, %v5759_v55 }
 0x308   : > { %1829 = vrot.lane.b32.xlu0 %v1821_v16, %s7061_s7  ;;  %v1943_v32 = vld [vmem:[#allocation4 + $0x28] sm:$0xff]  ;;  %v1982_v29 = vmul.f32 %v1768_v31, %v5670_v53  ;;  %v1877_v10 = vpack.c.bf16 %v1870_v63, %v1869_v30  ;;  %v1776_v11 = vmul.f32 %v1768_v31, %v5739_v40  ;;  %v1871_v36 = vmul.f32 %v1768_v31, %v5717_v24 }
 0x309   : > { %v1808_v38 = vld [vmem:[#allocation4 + $0x27] sm:$0xff]  ;;  %v1726_v39 = vpack.c.bf16 %v1720_v28, %v1719_v35  ;;  %v1854_v56 = vpack.c.bf16 %v1943_v32, %v1942_v58  ;;  %v1917_v26 = vpack.c.bf16 %v1910_v9, %v1909_v46 }
 0x30a   : > { %v1989_v48 = vpack.c.bf16 %v1982_v29, %v1981_v44  ;;  %v1816_v41 = vmul.f32 %v1808_v38, %v5784_v3  ;;  %v1782_v2 = vpack.c.bf16 %v1776_v11, %v1775_v5  ;;  %v1721_v43 = vmul.f32 %v1808_v38, %v5846_v19 }
 0x30b   : > { %1885 = vrot.lane.b32.xlu1 %v1877_v10, %s7065_s5  ;;  %1730 = vst.msk [vmem:[#allocation5 + $0x18] sm:$0xff] %vm770_vm0, %v1726_v39  ;;  %1858 = vst.msk [vmem:[#allocation5 + $0x20] sm:$0xff] %vm770_vm0, %v1854_v56  ;;  %v1911_v63 = vmul.f32 %v1808_v38, %v5759_v55 }
 0x30c   : > { %1751 = vrot.lane.b32.xlu0 %v1949_v49, %s7065_s5  ;;  %1993 = vst.msk [vmem:[#allocation5 + $0x10] sm:$0xff] %vm770_vm0, %v1989_v48  ;;  %v1904_v23 = vld [vmem:[#allocation4 + $0x2f] sm:$0xff]  ;;  %v1822_v15 = vpack.c.bf16 %v1816_v41, %v1815_v8 }
 0x30d   : > { %v1864_v6 = vld [vmem:[#allocation4 + $0x29] sm:$0xff]  ;;  %v1722_v14 = vmul.f32 %v1904_v23, %v5838_v45  ;;  %v1912_v52 = vmul.f32 %v1904_v23, %v5784_v3 }
 0x30e   : > { %v1944_v12 = vld [vmem:[#allocation4 + $0x30] sm:$0xff]  ;;  %v6120_v33 = vld [vmem:[#allocation4 + $0x38] sm:$0xff]  ;;  %v1983_v17 = vmul.f32 %v1864_v6, %v5717_v24  ;;  %v1872_v21 = vmul.f32 %v1864_v6, %v5739_v40  ;;  %v1777_v4 = vmul.f32 %v1864_v6, %v5815_v27 }
 0x30f   : > { %v6118_v34 = vld [vmem:[#allocation4 + $0x31] sm:$0xff]  ;;  %1925 = vrot.lane.b32.xlu1 %v1917_v26, %s7063_s25  ;;  %v1950_v20 = vpack.c.bf16 %v1944_v12, %v1943_v32  ;;  %v1727_v13 = vpack.c.bf16 %v1722_v14, %v1721_v43  ;;  %v1855_v59 = vpack.c.bf16 %v6120_v33, %v1944_v12  ;;  %v1918_v28 = vpack.c.bf16 %v1912_v52, %v1911_v63 }
 0x310   : > { %1791 = vrot.lane.b32.xlu0 %v1782_v2, %s7063_s25  ;;  %v1984_v18 = vmul.f32 %v6118_v34, %v5739_v40  ;;  %v1878_v22 = vpack.c.bf16 %v1872_v21, %v1871_v36  ;;  %v1778_v16 = vmul.f32 %v6118_v34, %v5786_v25  ;;  %v6141_v49 = vld [vmem:[#allocation4 + $0x37] sm:$0xff]  ;;  %v1817_v32 = vmul.f32 %v1904_v23, %v5846_v19  ;;  %v5141_v21 = vld [vmem:[%s7100_s2 + $0x40] sm:$0xff]  }
 0x311   : > { %1731 = vst.msk [vmem:[#allocation5 + $0x30] sm:$0xff] %vm770_vm0, %v1727_v13  ;;  %1859 = vst.msk [vmem:[#allocation5 + $0x38] sm:$0xff] %vm770_vm0, %v1855_v59  ;;  %v1818_v30 = vmul.f32 %v6141_v49, %v5838_v45  ;;  %4815 = vmatprep.subr.bf16.mxu1 %v5141_v21  ;;  %v1980_v13 = vld [vmem:[#allocation4 + $0x51] sm:$0xff]  ;;  %v1873_v52 = vmul.f32 %v6118_v34, %v5815_v27 }
 0x312   : > { %v1990_v51 = vpack.c.bf16 %v1984_v18, %v1983_v17  ;;  %v1783_v54 = vpack.c.bf16 %v1778_v16, %v1777_v4  ;;  %v1948_v21 = vld [vmem:[#allocation4 + $0x50] sm:$0xff] }
 0x313   : > { %1959 = vrot.lane.b32.xlu1 %v1950_v20, %s7061_s7  ;;  %v1999_v58 = vld [vmem:[#allocation5 + $0x10] sm:$0xff]  ;;  %v1823_v35 = vpack.c.bf16 %v1818_v30, %v1817_v32 }
 0x314   : > { %1831 = vrot.lane.b32.xlu0 %v1822_v15, %s7061_s7  ;;  %4981 = vmatprep.mubr.msk.bf16.mxu0 %vm770_vm0, %v1999_v58  ;;  %1994 = vst.msk [vmem:[#allocation5 + $0x28] sm:$0xff] %vm770_vm0, %v1990_v51 }
 0x317   : > { %1887 = vrot.lane.b32.xlu1 %v1878_v22, %s7065_s5 }
 0x318   : > { %1753 = vrot.lane.b32.xlu0 %v1950_v20, %s7065_s5 }
 0x31b   : > { %1927 = vrot.lane.b32.xlu1 %v1918_v28, %s7063_s25  ;;  %v2002_v31 = vld [vmem:[#allocation5 + $0x28] sm:$0xff]  ;;  %v1988_v28 = vmul.f32 %v1980_v13, %v5908_v57 }
 0x31c   : > { %1793 = vrot.lane.b32.xlu0 %v1783_v54, %s7063_s25  ;;  %4982 = vmatmul.mubr.msk.bf16.vlgmr.msra.gmra.mrb[16].mxu0 %vm770_vm0, %v2002_v31  ;;  %v2410_v13 = vld [vmem:[#allocation6 + $0x28] sm:$0xff] }
 0x320   : > { %1833 = vrot.lane.b32.xlu0 %v1823_v35, %s7061_s7  ;;  %v1723_v35 = vmul.f32 %v6141_v49, %v5914_v0 }
 0x329   : > { %v4757_v9 = vpop.f32.mrb[12].mxu0 }
 0x32a   : > { %v4758_v44 = vpop.f32.mrb[13].mxu0 }
 0x32b   : > { %v4759_v29 = vadd.f32 %v4758_v44, %v4757_v9  ;;  %v4760_v1 = vpop.f32.mrb[14].mxu0 }
 0x32c   : > { %v4761_v10 = vpop.f32.mrb[15].mxu0 }
 0x32d   : > { %v1558_v11 = vadd.f32 %v4759_v29, %v5992_v47  ;;  %v4762_v38 = vadd.f32 %v4761_v10, %v4760_v1 }
 0x32f   : > { %v1623_v39 = vadd.f32 %v5985_v37, %v1558_v11  ;;  %v1561_v56 = vadd.f32 %v4762_v38, %v5992_v47  ;;  %v1913_v11 = vmul.f32 %v6141_v49, %v5846_v19 }
 0x331   : > { %v1643_v48 = vmul.f32 0.044715, %v1623_v39  ;;  %v1626_v46 = vadd.f32 %v5987_v42, %v1561_v56  ;;  %v1635_v15 = vmul.f32 0.5, %v1623_v39 }
 0x333   : > { %v1651_v5 = vmul.f32 %v1643_v48, %v1623_v39  ;;  %v1644_v41 = vmul.f32 0.044715, %v1626_v46  ;;  %v1636_v47 = vmul.f32 0.5, %v1626_v46 }
 0x335   : > { %v1659_v23 = vmul.f32 %v1651_v5, %v1623_v39  ;;  %v1652_v26 = vmul.f32 %v1644_v41, %v1626_v46  ;;  %v2350_v5 = vld [vmem:[#allocation6 + $0x8] sm:$0xff] }
 0x337   : > { %v1667_v2 = vadd.f32 %v1659_v23, %v1623_v39  ;;  %v1660_v6 = vmul.f32 %v1652_v26, %v1626_v46 }
 0x339   : > { %v1675_v8 = vmul.f32 0.7978846, %v1667_v2  ;;  %v1668_v12 = vadd.f32 %v1660_v6, %v1626_v46  ;;  %v2407_v46 = vld [vmem:[#allocation6 + $0x10] sm:$0xff] }
 0x33b   : > { %5227 = vtanh.f32 %v1675_v8  ;;  %v1676_v14 = vmul.f32 0.7978846, %v1668_v12  ;;  %v2358_v8 = vpack.c.bf16 %v2407_v46, %v2350_v5  ;;  %v2409_v12 = vld [vmem:[#allocation6 + $0x20] sm:$0xff]  ;;  %v5144_v5 = vld [vmem:[%s7100_s2 + $0x8] sm:$0xff]  }
 0x33d   : > { %5229 = vtanh.f32 %v1676_v14 }
 0x345   : > { %v5228_v43 = vpop.eup %5227 }
 0x346   : > { %v1691_v17 = vadd.f32 1.0, %v5228_v43 }
 0x347   : > { %v5230_v37 = vpop.eup %5229 }
 0x348   : > { %v1699_v18 = vmul.f32 %v1691_v17, %v1635_v15  ;;  %v1692_v20 = vadd.f32 1.0, %v5230_v37  ;;  %v2408_v17 = vld [vmem:[#allocation6 + $0x18] sm:$0xff] }
 0x34a   : > { %1707 = vst.msk [vmem:[#allocation4 + $0x40] sm:$0xff] %vm770_vm0, %v1699_v18  ;;  %v1700_v42 = vmul.f32 %v1692_v20, %v1636_v47  ;;  %v2359_v18 = vpack.c.bf16 %v2409_v12, %v2408_v17  ;;  %v2411_v20 = vld [vmem:[#allocation6 + $0x30] sm:$0xff] }
 0x34c   : > { %1708 = vst.msk [vmem:[#allocation4 + $0x48] sm:$0xff] %vm770_vm0, %v1700_v42 }
 0x351   : > { %v1946_v59 = vld [vmem:[#allocation4 + $0x40] sm:$0xff] }
 0x352   : > { %v1866_v51 = vld [vmem:[#allocation4 + $0x39] sm:$0xff]  ;;  %v1951_v36 = vpack.c.bf16 %v1946_v59, %v6120_v33 }
 0x353   : > { %v1906_v58 = vld [vmem:[#allocation4 + $0x3f] sm:$0xff]  ;;  %v1874_v22 = vmul.f32 %v1866_v51, %v5786_v25  ;;  %v1812_v63 = vld [vmem:[#allocation4 + $0x47] sm:$0xff]  ;;  %v1779_v54 = vmul.f32 %v1866_v51, %v5910_v60  ;;  %v1985_v32 = vmul.f32 %v1866_v51, %v5815_v27  ;;  %v1908_v6 = vld [vmem:[#allocation4 + $0x4f] sm:$0xff] }
 0x354   : > { %v1772_v16 = vld [vmem:[#allocation4 + $0x41] sm:$0xff]  ;;  %v1868_v4 = vld [vmem:[#allocation4 + $0x49] sm:$0xff]  ;;  %1961 = vrot.lane.b32.xlu1 %v1951_v36, %s7061_s7  ;;  %1755 = vrot.lane.b32.xlu0 %v1951_v36, %s7065_s5  ;;  %v1724_v33 = vmul.f32 %v1906_v58, %v5912_v62  ;;  %v1914_v31 = vmul.f32 %v1906_v58, %v5838_v45  ;;  %v1820_v29 = vmul.f32 %v1812_v63, %v5912_v62  ;;  %v2412_v36 = vld [vmem:[#allocation6 + $0x38] sm:$0xff] }
 0x355   : > { %v1780_v30 = vmul.f32 %v1772_v16, %v5908_v57  ;;  %v1986_v34 = vmul.f32 %v1772_v16, %v5786_v25  ;;  %v1879_v9 = vpack.c.bf16 %v1874_v22, %v1873_v52  ;;  %v1987_v1 = vmul.f32 %v1868_v4, %v5910_v60  ;;  %v1947_v10 = vld [vmem:[#allocation4 + $0x48] sm:$0xff]  ;;  %v2413_v51 = vld [vmem:[#allocation6 + $0x40] sm:$0xff] }
 0x356   : > { %v1819_v39 = vmul.f32 %v1906_v58, %v5914_v0  ;;  %v1728_v48 = vpack.c.bf16 %v1724_v33, %v1723_v35  ;;  %v1856_v41 = vpack.c.bf16 %v1947_v10, %v1946_v59  ;;  %v1919_v23 = vpack.c.bf16 %v1914_v31, %v1913_v11  ;;  %v5142_v11 = vld [vmem:[%s7100_s2] sm:$0xff]  }
 0x357   : > { %v1784_v44 = vpack.c.bf16 %v1780_v30, %v1779_v54  ;;  %v1991_v38 = vpack.c.bf16 %v1986_v34, %v1985_v32  ;;  %v1992_v56 = vpack.c.bf16 %v1988_v28, %v1987_v1  ;;  %v1875_v2 = vmul.f32 %v1772_v16, %v5910_v60  ;;  %v2414_v28 = vld [vmem:[#allocation6 + $0x48] sm:$0xff] }
 0x358   : > { %1889 = vrot.lane.b32.xlu1 %v1879_v9, %s7065_s5  ;;  %v1824_v26 = vpack.c.bf16 %v1820_v29, %v1819_v39  ;;  %v1876_v49 = vmul.f32 %v1868_v4, %v5908_v57  ;;  %1732 = vst.msk [vmem:[#allocation5 + $0x48] sm:$0xff] %vm770_vm0, %v1728_v48  ;;  %1860 = vst.msk [vmem:[#allocation5 + $0x50] sm:$0xff] %vm770_vm0, %v1856_v41  ;;  %v1915_v43 = vmul.f32 %v1812_v63, %v5914_v0  ;;  %v5143_v39 = vld [vmem:[%s7100_s2 + $0x48] sm:$0xff]   ;;  %v5145_v41 = vld [vmem:[%s7100_s2 + $0x50] sm:$0xff]  }
 0x359   : > { %1795 = vrot.lane.b32.xlu0 %v1784_v44, %s7063_s25  ;;  %1995 = vst.msk [vmem:[#allocation5 + $0x40] sm:$0xff] %vm770_vm0, %v1991_v38  ;;  %1996 = vst.msk [vmem:[#allocation5 + $0x58] sm:$0xff] %vm770_vm0, %v1992_v56  ;;  %v1916_v15 = vmul.f32 %v1908_v6, %v5912_v62  ;;  %v2360_v59 = vpack.c.bf16 %v2411_v20, %v2410_v13  ;;  %v1952_v58 = vpack.c.bf16 %v1948_v21, %v1947_v10 }
 0x35a   : > { %v1880_v14 = vpack.c.bf16 %v1876_v49, %v1875_v2  ;;  %v2415_v22 = vpack.c.bf16 %v2408_v17, %v2407_v46  ;;  %v2361_v52 = vpack.c.bf16 %v2413_v51, %v2412_v36  ;;  %v2416_v16 = vpack.c.bf16 %v2410_v13, %v2409_v12  ;;  %v5147_v2 = vld [vmem:[%s7100_s2 + $0x58] sm:$0xff]   ;;  %v5153_v17 = vld [vmem:[%s7100_s2 + $0x70] sm:$0xff]  }
 0x35b   : > { %v1920_v42 = vpack.c.bf16 %v1916_v15, %v1915_v43  ;;  %v2417_v63 = vpack.c.bf16 %v2412_v36, %v2411_v20  ;;  %v2418_v54 = vpack.c.bf16 %v2414_v28, %v2413_v51  ;;  %v5148_v49 = vld [vmem:[%s7100_s2 + $0x18] sm:$0xff]   ;;  %v5151_v43 = vld [vmem:[%s7100_s2 + $0x68] sm:$0xff]  }
 0x35c   : > { %1929 = vrot.lane.b32.xlu1 %v1919_v23, %s7063_s25  ;;  %v5152_v15 = vld [vmem:[%s7100_s2 + $0x28] sm:$0xff]  }
 0x35d   : > { %1835 = vrot.lane.b32.xlu0 %v1824_v26, %s7061_s7  ;;  %v5146_v26 = vld [vmem:[%s7100_s2 + $0x10] sm:$0xff]  }
 0x360   : > { %v2005_v37 = vld [vmem:[#allocation5 + $0x40] sm:$0xff]  ;;  %1891 = vrot.lane.b32.xlu1 %v1880_v14, %s7065_s5  ;;  %v2008_v47 = vld [vmem:[#allocation5 + $0x58] sm:$0xff]  ;;  %s4722_s5 = sshll.u32 %s5497_s6, 10  ;;  %s5348_s6 = smov [#allocation8]  }
 0x361   : > { %2366 = vrot.lane.b32.xlu0 %v2358_v8, %s7063_s25  ;;  %4985 = vmatprep.mubr.msk.bf16.mxu0 %vm770_vm0, %v2005_v37  ;;  %v5149_v8 = vld [vmem:[%s7100_s2 + $0x60] sm:$0xff]   ;;  %v5154_v37 = vld [vmem:[%s7100_s2 + $0x30] sm:$0xff]  }
 0x362   : > { %4986 = vmatmul.mubr.msk.bf16.gmra.mrb[20].mxu0 %vm770_vm0, %v2008_v47  ;;  %v5150_v14 = vld [vmem:[%s7100_s2 + $0x20] sm:$0xff]   ;;  %v5156_v47 = vld [vmem:[%s7100_s2 + $0x38] sm:$0xff]  }
 0x364   : > { %1931 = vrot.lane.b32.xlu1 %v1920_v42, %s7063_s25 }
 0x365   : > { %2368 = vrot.lane.b32.xlu0 %v2359_v18, %s7063_s25  ;;  %v5155_v18 = vld [vmem:[%s7100_s2 + $0x78] sm:$0xff]   ;;  %s6965_s2 = scalar_lea.hbm %s7050_s23, %s4722_s5 }
 0x368   : > { %1963 = vrot.lane.b32.xlu1 %v1952_v58, %s7061_s7 }
 0x369   : > { %2370 = vrot.lane.b32.xlu0 %v2360_v59, %s7063_s25 }
 0x36c   : > { %2423 = vrot.lane.b32.xlu1 %v2415_v22, %s7063_s25 }
 0x36d   : > { %2372 = vrot.lane.b32.xlu0 %v2361_v52, %s7063_s25 }
 0x370   : > { %2425 = vrot.lane.b32.xlu1 %v2416_v16, %s7063_s25 }
 0x371   : > { %v1750_v4 = vpop.permute.xlu0 %1749 }
 0x372   : > { %1761 = vst.msk [vmem:[#allocation5] sm:$0xff] %vm1045_vm3, %v1750_v4 }
 0x374   : > { %2427 = vrot.lane.b32.xlu1 %v2417_v63, %s7063_s25 }
 0x376   : > { %v1790_v30 = vpop.permute.xlu0 %1789 }
 0x377   : > { %1801 = vst.msk [vmem:[#allocation5] sm:$0xff] %vm1126_vm4, %v1790_v30 }
 0x378   : > { %2429 = vrot.lane.b32.xlu1 %v2418_v54, %s7063_s25  ;;  %s4574_s25 = sshll.u32 %s7068_s8, 6  ;;  %s7107_s8 = sand.u32 1, %s5333_s26  }
 0x379   : > { %v1958_v33 = vpop.permute.xlu1 %1957  ;;  %s6293_s0 = scalar_lea.vmem [#allocation8], %s4574_s25 }
 0x37a   : > { %v1830_v31 = vpop.permute.xlu0 %1829  ;;  %s4468_s7 = sshll.u32 %s6293_s0, 4  ;;  %s6967_s7 = int_to_ptr.vmem [resolvable:$true] %s4468_s7 }
 0x37b   : > { %1841 = vst.msk [vmem:[#allocation5] sm:$0xff] %vm1167_vm5, %v1830_v31  ;;  %s5279_s10 = scalar_lea.vmem %s6967_s7, 1024 }
 0x37c   : > { %p5280_p11 = scmp.ne.s32.totalorder %s6967_s7, %s5279_s10 }
 0x37d   : > { %v1886_v32 = vpop.permute.xlu1 %1885 }
 0x37e   : > { %v1752_v34 = vpop.permute.xlu0 %1751  ;;  %1897 = vst.msk [vmem:[#allocation5 + $0x8] sm:$0xff] %vm1045_vm3, %v1886_v32  ;;  %p5281_p12 = pnand %p5280_p11, %p5514_p5 }
 0x37f   : > { %1762 = vst.msk [vmem:[#allocation5 + $0x18] sm:$0xff] %vm1045_vm3, %v1752_v34 }
 0x380   : > { %p5282_p13 = pneg %p5281_p12 }
 0x381   : > { %v1926_v35 = vpop.permute.xlu1 %1925 }
 0x382   : > { %v1792_v9 = vpop.permute.xlu0 %1791  ;;  %1937 = vst.msk [vmem:[#allocation5 + $0x8] sm:$0xff] %vm1126_vm4, %v1926_v35  ;;  %v1997_v56 = vld [vmem:[#allocation5] sm:$0xff] }
 0x383   : > { %1802 = vst.msk [vmem:[#allocation5 + $0x18] sm:$0xff] %vm1126_vm4, %v1792_v9 }
 0x384   : > { %1969 = vst.msk [vmem:[#allocation5 + $0x8] sm:$0xff] %vm1167_vm5, %v1958_v33 }
 0x385   : > { %v1960_v44 = vpop.permute.xlu1 %1959 }
 0x386   : > { %v1832_v29 = vpop.permute.xlu0 %1831 }
 0x387   : > { %1842 = vst.msk [vmem:[#allocation5 + $0x18] sm:$0xff] %vm1167_vm5, %v1832_v29 }
 0x389   : > { %v1888_v1 = vpop.permute.xlu1 %1887 }
 0x38a   : > { %v1754_v10 = vpop.permute.xlu0 %1753  ;;  %1898 = vst.msk [vmem:[#allocation5 + $0x20] sm:$0xff] %vm1045_vm3, %v1888_v1 }
 0x38b   : > { %1763 = vst.msk [vmem:[#allocation5 + $0x30] sm:$0xff] %vm1045_vm3, %v1754_v10  ;;  %v1998_v38 = vld [vmem:[#allocation5 + $0x8] sm:$0xff] }
 0x38c   : > { %2204 = vmatprep.mubr.bf16.mxu1 %v1998_v38 }
 0x38d   : > { %2205 = vmatmul.mubr.bf16.vlgmr.msra.gmra.mrb[8].mxu1 %v1997_v56  ;;  %v1928_v48 = vpop.permute.xlu1 %1927 }
 0x38e   : > { %v1794_v46 = vpop.permute.xlu0 %1793  ;;  %4816 = vmatpush3.bf16.msra.mxu1 %v5142_v11  ;;  %1938 = vst.msk [vmem:[#allocation5 + $0x20] sm:$0xff] %vm1126_vm4, %v1928_v48  ;;  %v2000_v12 = vld [vmem:[#allocation5 + $0x18] sm:$0xff] }
 0x38f   : > { %1803 = vst.msk [vmem:[#allocation5 + $0x30] sm:$0xff] %vm1126_vm4, %v1794_v46  ;;  %4817 = vmatprep.subr.bf16.mxu1 %v5143_v39 }
 0x390   : > { %1970 = vst.msk [vmem:[#allocation5 + $0x20] sm:$0xff] %vm1167_vm5, %v1960_v44 }
 0x392   : > { %v1834_v23 = vpop.permute.xlu0 %1833  ;;  %4818 = vmatpush3.bf16.msra.mxu1 %v5144_v5 }
 0x393   : > { %1843 = vst.msk [vmem:[#allocation5 + $0x30] sm:$0xff] %vm1167_vm5, %v1834_v23  ;;  %4819 = vmatprep.subr.bf16.mxu1 %v5145_v41 }
 0x396   : > { %4820 = vmatpush3.bf16.msra.mxu1 %v5146_v26 }
 0x397   : > { %v2001_v6 = vld [vmem:[#allocation5 + $0x20] sm:$0xff]  ;;  %4821 = vmatprep.subr.bf16.mxu1 %v5147_v2 }
 0x398   : > { %2212 = vmatprep.mubr.bf16.mxu1 %v2001_v6  ;;  %v4606_v6 = vld [vmem:[%s7040_s13] ss:$0 sm:$0xff] }
 0x399   : > { %2213 = vmatmul.mubr.bf16.gmra.mrb[12].mxu1 %v2000_v12 }
 0x39a   : > { %4822 = vmatpush3.bf16.msra.mxu1 %v5148_v49  ;;  %v2003_v63 = vld [vmem:[#allocation5 + $0x30] sm:$0xff] }
 0x39b   : > { %4823 = vmatprep.subr.bf16.mxu1 %v5149_v8 }
 0x39e   : > { %4824 = vmatpush3.bf16.msra.mxu1 %v5150_v14 }
 0x39f   : > { %4825 = vmatprep.subr.bf16.mxu1 %v5151_v43 }
 0x3a2   : > { %4826 = vmatpush3.bf16.msra.mxu1 %v5152_v15 }
 0x3a3   : > { %4827 = vmatprep.subr.bf16.mxu1 %v5153_v17 }
 0x3a6   : > { %4828 = vmatpush3.bf16.msra.mxu1 %v5154_v37 }
 0x3a7   : > { %4829 = vmatprep.subr.bf16.mxu1 %v5155_v18 }
 0x3aa   : > { %4830 = vmatpush3.bf16.msra.mxu1 %v5156_v47 }
 0x3c6   : > { %v1962_v20 = vpop.permute.xlu1 %1961  ;;  %v1756_v42 = vpop.permute.xlu0 %1755 }
 0x3c7   : > { %1764 = vst.msk [vmem:[#allocation5 + $0x48] sm:$0xff] %vm1045_vm3, %v1756_v42 }
 0x3ca   : > { %v1890_v21 = vpop.permute.xlu1 %1889 }
 0x3cb   : > { %v1796_v13 = vpop.permute.xlu0 %1795  ;;  %1899 = vst.msk [vmem:[#allocation5 + $0x38] sm:$0xff] %vm1045_vm3, %v1890_v21 }
 0x3cc   : > { %1804 = vst.msk [vmem:[#allocation5 + $0x48] sm:$0xff] %vm1126_vm4, %v1796_v13 }
 0x3ce   : > { %v1930_v59 = vpop.permute.xlu1 %1929 }
 0x3cf   : > { %v1836_v51 = vpop.permute.xlu0 %1835  ;;  %1939 = vst.msk [vmem:[#allocation5 + $0x38] sm:$0xff] %vm1126_vm4, %v1930_v59 }
 0x3d0   : > { %1844 = vst.msk [vmem:[#allocation5 + $0x48] sm:$0xff] %vm1167_vm5, %v1836_v51  ;;  %1971 = vst.msk [vmem:[#allocation5 + $0x38] sm:$0xff] %vm1167_vm5, %v1962_v20 }
 0x3d2   : > { %v1892_v58 = vpop.permute.xlu1 %1891 }
 0x3d3   : > { %v2367_v36 = vpop.permute.xlu0 %2366  ;;  %1900 = vst.msk [vmem:[#allocation5 + $0x50] sm:$0xff] %vm1045_vm3, %v1892_v58 }
 0x3d4   : > { %2379 = vst.msk [vmem:[#allocation7] sm:$0xff] %vm2378_vm6, %v2367_v36 }
 0x3d6   : > { %v1932_v22 = vpop.permute.xlu1 %1931 }
 0x3d7   : > { %v2369_v52 = vpop.permute.xlu0 %2368  ;;  %1940 = vst.msk [vmem:[#allocation5 + $0x50] sm:$0xff] %vm1126_vm4, %v1932_v22  ;;  %v2004_v16 = vld [vmem:[#allocation5 + $0x38] sm:$0xff]  ;;  %v2006_v32 = vld [vmem:[#allocation5 + $0x48] sm:$0xff] }
 0x3d8   : > { %2380 = vst.msk [vmem:[#allocation7 + $0x10] sm:$0xff] %vm2378_vm6, %v2369_v52  ;;  %2220 = vmatprep.mubr.bf16.mxu1 %v2004_v16 }
 0x3d9   : > { %2221 = vmatmul.mubr.bf16.gmra.mrb[16].mxu1 %v2003_v63 }
 0x3da   : > { %v1964_v4 = vpop.permute.xlu1 %1963 }
 0x3db   : > { %v2371_v28 = vpop.permute.xlu0 %2370  ;;  %1972 = vst.msk [vmem:[#allocation5 + $0x50] sm:$0xff] %vm1167_vm5, %v1964_v4  ;;  %v2439_v9 = vld [vmem:[#allocation7] sm:$0xff] }
 0x3dc   : > { %2381 = vst.msk [vmem:[#allocation7 + $0x20] sm:$0xff] %vm2378_vm6, %v2371_v28 }
 0x3de   : > { %v2424_v54 = vpop.permute.xlu1 %2423 }
 0x3df   : > { %v2373_v30 = vpop.permute.xlu0 %2372  ;;  %2435 = vst.msk [vmem:[#allocation7 + $0x8] sm:$0xff] %vm2378_vm6, %v2424_v54  ;;  %v2441_v38 = vld [vmem:[#allocation7 + $0x10] sm:$0xff] }
 0x3e0   : > { %2382 = vst.msk [vmem:[#allocation7 + $0x30] sm:$0xff] %vm2378_vm6, %v2373_v30 }
 0x3e2   : > { %v2007_v33 = vld [vmem:[#allocation5 + $0x50] sm:$0xff]  ;;  %v2426_v31 = vpop.permute.xlu1 %2425 }
 0x3e3   : > { %2228 = vmatprep.mubr.bf16.mxu1 %v2007_v33  ;;  %2436 = vst.msk [vmem:[#allocation7 + $0x18] sm:$0xff] %vm2378_vm6, %v2426_v31  ;;  %v2443_v48 = vld [vmem:[#allocation7 + $0x20] sm:$0xff] }
 0x3e4   : > { %2229 = vmatmul.mubr.bf16.gmra.mrb[20].mxu1 %v2006_v32 }
 0x3e6   : > { %v2440_v34 = vld [vmem:[#allocation7 + $0x8] sm:$0xff]  ;;  %v2428_v35 = vpop.permute.xlu1 %2427 }
 0x3e7   : > { %2614 = vmatprep.mubr.bf16.mxu1 %v2440_v34  ;;  %2437 = vst.msk [vmem:[#allocation7 + $0x28] sm:$0xff] %vm2378_vm6, %v2428_v35  ;;  %v2445_v5 = vld [vmem:[#allocation7 + $0x30] sm:$0xff] }
 0x3ea   : > { %v2442_v44 = vld [vmem:[#allocation7 + $0x18] sm:$0xff]  ;;  %v2430_v29 = vpop.permute.xlu1 %2429 }
 0x3eb   : > { %2438 = vst.msk [vmem:[#allocation7 + $0x38] sm:$0xff] %vm2378_vm6, %v2430_v29 }
 0x3ec   : > { %2615 = vmatmul.mubr.bf16.vlgmr.msra.gmra.mrb[24].mxu1 %v2439_v9 }
 0x3ed   : > { %2622 = vmatprep.mubr.bf16.mxu1 %v2442_v44 }
 0x3ee   : > { %v2444_v56 = vld [vmem:[#allocation7 + $0x28] sm:$0xff] }
 0x3ef   : > { %v4983_v1 = vpop.f32.mrb[16].mxu0 }
 0x3f0   : > { %v2271_v10 = vpop.f32.mrb[17].mxu0 }
 0x3f1   : > { %v4984_v11 = vpop.f32.mrb[18].mxu0 }
 0x3f2   : > { %v2274_v39 = vpop.f32.mrb[19].mxu0  ;;  %v2446_v46 = vld [vmem:[#allocation7 + $0x38] sm:$0xff] }
 0x3f4   : > { %2623 = vmatmul.mubr.bf16.gmra.mrb[28].mxu1 %v2441_v38 }
 0x3f5   : > { %2630 = vmatprep.mubr.bf16.mxu1 %v2444_v56 }
 0x3fc   : > { %2631 = vmatmul.mubr.bf16.gmra.mrb[32].mxu1 %v2443_v48 }
 0x3fd   : > { %2638 = vmatprep.mubr.bf16.mxu1 %v2446_v46 }
 0x404   : > { %2639 = vmatmul.mubr.bf16.gmra.mrb[36].mxu1 %v2445_v5 }
 0x435   : > { %v4987_v41 = vpop.f32.mrb[20].mxu0 }
 0x436   : > { %v2287_v23 = vpop.f32.mrb[21].mxu0 }
 0x437   : > { %v4988_v26 = vpop.f32.mrb[22].mxu0 }
 0x438   : > { %v2290_v2 = vpop.f32.mrb[23].mxu0 }
 0x460   : > { %v4785_v49 = vpop.f32.mrb[8].mxu1 }
 0x461   : > { %v4786_v8 = vpop.f32.mrb[9].mxu1 }
 0x462   : > { %v4787_v12 = vadd.f32 %v4786_v8, %v4785_v49  ;;  %v4788_v14 = vpop.f32.mrb[10].mxu1  ;;  %v4629_v49 = vld [vmem:[%s7101_s27] ss:$0 sm:$0xff] }
 0x463   : > { %v4789_v43 = vpop.f32.mrb[11].mxu1 }
 0x464   : > { %v2207_v15 = vadd.f32 %v4787_v12, %v4606_v6  ;;  %v4790_v17 = vadd.f32 %v4789_v43, %v4788_v14 }
 0x466   : > { %v6291_v37 = vadd.f32 %v2271_v10, %v2207_v15  ;;  %v2210_v18 = vadd.f32 %v4790_v17, %v4606_v6 }
 0x468   : > { %2302 = vst.msk [vmem:[%s6293_s0] sm:$0xff] %vm770_vm0, %v6291_v37  ;;  %v6298_v47 = vadd.f32 %v2274_v39, %v2210_v18 }
 0x46a   : > { %2303 = vst.msk [vmem:[%s6293_s0 + $0x8] sm:$0xff] %vm770_vm0, %v6298_v47  ;;  %v4055_v20 = vpack.c.bf16 %v6298_v47, %v6291_v37  ;;  %v5197_v37 = vld [vmem:[%s7048_s21] sm:$0xff]   ;;  %v5198_v47 = vld [vmem:[%s7048_s21 + $0x8] sm:$0xff]  }
 0x46c   : > { %v4791_v42 = vpop.f32.mrb[12].mxu1 }
 0x46d   : > { %v4792_v21 = vpop.f32.mrb[13].mxu1 }
 0x46e   : > { %v4793_v13 = vadd.f32 %v4792_v21, %v4791_v42  ;;  %v4794_v59 = vpop.f32.mrb[14].mxu1 }
 0x46f   : > { %v4795_v51 = vpop.f32.mrb[15].mxu1 }
 0x470   : > { %v2215_v58 = vadd.f32 %v4793_v13, %v4606_v6  ;;  %v4796_v36 = vadd.f32 %v4795_v51, %v4794_v59 }
 0x472   : > { %v6305_v22 = vadd.f32 %v4983_v1, %v2215_v58  ;;  %v2218_v52 = vadd.f32 %v4796_v36, %v4606_v6 }
 0x474   : > { %2304 = vst.msk [vmem:[%s6293_s0 + $0x10] sm:$0xff] %vm770_vm0, %v6305_v22  ;;  %v6310_v16 = vadd.f32 %v4984_v11, %v2218_v52 }
 0x476   : > { %2305 = vst.msk [vmem:[%s6293_s0 + $0x18] sm:$0xff] %vm770_vm0, %v6310_v16  ;;  %v4056_v63 = vpack.c.bf16 %v6310_v16, %v6305_v22 }
 0x4ac   : > { %v4797_v4 = vpop.f32.mrb[16].mxu1 }
 0x4ad   : > { %v4798_v28 = vpop.f32.mrb[17].mxu1 }
 0x4ae   : > { %v4799_v54 = vadd.f32 %v4798_v28, %v4797_v4  ;;  %v4800_v30 = vpop.f32.mrb[18].mxu1 }
 0x4af   : > { %v4801_v33 = vpop.f32.mrb[19].mxu1 }
 0x4b0   : > { %v2223_v31 = vadd.f32 %v4799_v54, %v4606_v6  ;;  %v4802_v32 = vadd.f32 %v4801_v33, %v4800_v30 }
 0x4b2   : > { %v6317_v34 = vadd.f32 %v2287_v23, %v2223_v31  ;;  %v2226_v35 = vadd.f32 %v4802_v32, %v4606_v6 }
 0x4b4   : > { %2306 = vst.msk [vmem:[%s6293_s0 + $0x20] sm:$0xff] %vm770_vm0, %v6317_v34  ;;  %v6322_v9 = vadd.f32 %v2290_v2, %v2226_v35 }
 0x4b6   : > { %2307 = vst.msk [vmem:[%s6293_s0 + $0x28] sm:$0xff] %vm770_vm0, %v6322_v9  ;;  %v4057_v44 = vpack.c.bf16 %v6322_v9, %v6317_v34 }
 0x4b7   : > { %v4803_v29 = vpop.f32.mrb[20].mxu1 }
 0x4b8   : > { %v4804_v1 = vpop.f32.mrb[21].mxu1 }
 0x4b9   : > { %v4805_v10 = vadd.f32 %v4804_v1, %v4803_v29  ;;  %v4806_v11 = vpop.f32.mrb[22].mxu1 }
 0x4ba   : > { %v4807_v38 = vpop.f32.mrb[23].mxu1 }
 0x4bb   : > { %v2231_v39 = vadd.f32 %v4805_v10, %v4606_v6  ;;  %v4808_v56 = vadd.f32 %v4807_v38, %v4806_v11 }
 0x4bd   : > { %v6329_v48 = vadd.f32 %v4987_v41, %v2231_v39  ;;  %v2234_v46 = vadd.f32 %v4808_v56, %v4606_v6 }
 0x4bf   : > { %2308 = vst.msk [vmem:[%s6293_s0 + $0x30] sm:$0xff] %vm770_vm0, %v6329_v48  ;;  %v6334_v5 = vadd.f32 %v4988_v26, %v2234_v46  ;;  %v4831_v23 = vpop.f32.mrb[24].mxu1 }
 0x4c0   : > { %v4832_v2 = vpop.f32.mrb[25].mxu1 }
 0x4c1   : > { %2309 = vst.msk [vmem:[%s6293_s0 + $0x38] sm:$0xff] %vm770_vm0, %v6334_v5  ;;  %v4058_v8 = vpack.c.bf16 %v6334_v5, %v6329_v48  ;;  %v4833_v41 = vadd.f32 %v4832_v2, %v4831_v23  ;;  %v4834_v12 = vpop.f32.mrb[26].mxu1  ;;  %s5283_s0 = sshll.u32 %s5348_s6, 4  ;;  %s5284_s0 = int_to_ptr.vmem [resolvable:$false] %s5283_s0 }
 0x4c2   : > { %v4835_v6 = vpop.f32.mrb[27].mxu1  ;;  %s5285_s11 = scalar_lea.vmem %s5284_s0, 2048  ;;  %p5286_p0 = scmp.lt.s32.totalorder %s6967_s7, %s5284_s0 }
 0x4c3   : > { %v4836_v14 = vadd.f32 %v4835_v6, %v4834_v12  ;;  %v2617_v43 = vadd.f32 %v4833_v41, %v4629_v49  ;;  %p5287_p1 = scmp.lt.s32.totalorder %s5285_s11, %s5279_s10 }
 0x4c5   : > { %v2649_v26 = vsel %vm770_vm0, %v2617_v43, 0.0  ;;  %v2620_v15 = vadd.f32 %v4836_v14, %v4629_v49  ;;  %p5288_p2 = por %p5287_p1, %p5286_p0 }
 0x4c6   : > { %2650 = vadd.xlane.f32.xlu1 %v2649_v26 }
 0x4c7   : > { %v4837_v17 = vpop.f32.mrb[28].mxu1  ;;  %v2652_v18 = vsel %vm770_vm0, %v2620_v15, 0.0  ;;  %p5289_p3 = pnand %p5288_p2, %p5282_p13 }
 0x4c8   : > { %2653 = vadd.xlane.f32.xlu0 %v2652_v18  ;;  %v4838_v42 = vpop.f32.mrb[29].mxu1 }
 0x4c9   : > { %v4839_v21 = vadd.f32 %v4838_v42, %v4837_v17  ;;  %v4840_v13 = vpop.f32.mrb[30].mxu1 }
 0x4ca   : > { %v4841_v59 = vpop.f32.mrb[31].mxu1 }
 0x4cb   : > { %v4842_v51 = vadd.f32 %v4841_v59, %v4840_v13  ;;  %v2625_v58 = vadd.f32 %v4839_v21, %v4629_v49 }
 0x4cd   : > { %v2655_v36 = vsel %vm770_vm0, %v2625_v58, 0.0  ;;  %v2628_v52 = vadd.f32 %v4842_v51, %v4629_v49 }
 0x4ce   : > { %2656 = vadd.xlane.f32.xlu0 %v2655_v36 }
 0x4cf   : > { %v4843_v4 = vpop.f32.mrb[32].mxu1  ;;  %v2658_v28 = vsel %vm770_vm0, %v2628_v52, 0.0 }
 0x4d0   : > { %2659 = vadd.xlane.f32.xlu1 %v2658_v28  ;;  %v4844_v54 = vpop.f32.mrb[33].mxu1 }
 0x4d1   : > { %v4845_v30 = vadd.f32 %v4844_v54, %v4843_v4  ;;  %v4846_v33 = vpop.f32.mrb[34].mxu1 }
 0x4d2   : > { %v4847_v31 = vpop.f32.mrb[35].mxu1 }
 0x4d3   : > { %v4848_v32 = vadd.f32 %v4847_v31, %v4846_v33  ;;  %v2633_v35 = vadd.f32 %v4845_v30, %v4629_v49 }
 0x4d5   : > { %v2636_v29 = vadd.f32 %v4848_v32, %v4629_v49  ;;  %v2661_v1 = vsel %vm770_vm0, %v2633_v35, 0.0 }
 0x4d6   : > { %2662 = vadd.xlane.f32.xlu0 %v2661_v1 }
 0x4d7   : > { %v4849_v10 = vpop.f32.mrb[36].mxu1  ;;  %v2664_v11 = vsel %vm770_vm0, %v2636_v29, 0.0 }
 0x4d8   : > { %2665 = vadd.xlane.f32.xlu1 %v2664_v11  ;;  %v4850_v38 = vpop.f32.mrb[37].mxu1 }
 0x4d9   : > { %v4851_v39 = vadd.f32 %v4850_v38, %v4849_v10  ;;  %v4852_v56 = vpop.f32.mrb[38].mxu1 }
 0x4da   : > { %v4853_v46 = vpop.f32.mrb[39].mxu1 }
 0x4db   : > { %v4854_v23 = vadd.f32 %v4853_v46, %v4852_v56  ;;  %v2641_v2 = vadd.f32 %v4851_v39, %v4629_v49 }
 0x4dd   : > { %v2644_v41 = vadd.f32 %v4854_v23, %v4629_v49  ;;  %v2667_v12 = vsel %vm770_vm0, %v2641_v2, 0.0 }
 0x4de   : > { %2668 = vadd.xlane.f32.xlu0 %v2667_v12 }
 0x4df   : > { %v2670_v6 = vsel %vm770_vm0, %v2644_v41, 0.0 }
 0x4e0   : > { %2671 = vadd.xlane.f32.xlu1 %v2670_v6 }
 0x553   : > { %v2651_v14 = vpop.xlane.xlu1 %2650 }
 0x554   : > { %v2673_v26 = vmul.f32 0.03125, %v2651_v14 }
 0x555   : > { %v2654_v17 = vpop.xlane.xlu0 %2653 }
 0x556   : > { %v6352_v18 = vsub.f32 %v2617_v43, %v2673_v26  ;;  %v2674_v42 = vmul.f32 0.03125, %v2654_v17 }
 0x558   : > { %v6354_v21 = vsub.f32 %v2620_v15, %v2674_v42  ;;  %v2689_v13 = vmul.f32 %v6352_v18, %v6352_v18 }
 0x55a   : > { %v2697_v59 = vsel %vm770_vm0, %v2689_v13, 0.0  ;;  %v2690_v49 = vmul.f32 %v6354_v21, %v6354_v21 }
 0x55b   : > { %2698 = vadd.xlane.f32.xlu0 %v2697_v59  ;;  %v2657_v51 = vpop.xlane.xlu0 %2656 }
 0x55c   : > { %v2675_v36 = vmul.f32 0.03125, %v2657_v51  ;;  %v2700_v4 = vsel %vm770_vm0, %v2690_v49, 0.0  ;;  %v5159_v49 = vld [vmem:[%s7041_s14 + $0x40] sm:$0xff]  }
 0x55d   : > { %v2660_v28 = vpop.xlane.xlu1 %2659  ;;  %2701 = vadd.xlane.f32.xlu1 %v2700_v4  ;;  %v5160_v51 = vld [vmem:[%s7041_s14] sm:$0xff]   ;;  %4855 = vmatprep.subr.bf16.mxu0 %v5159_v49 }
 0x55e   : > { %v6362_v43 = vsub.f32 %v2625_v58, %v2675_v36  ;;  %v2676_v54 = vmul.f32 0.03125, %v2660_v28  ;;  %v5161_v36 = vld [vmem:[%s7041_s14 + $0x48] sm:$0xff]   ;;  %4856 = vmatpush3.bf16.msra.mxu0 %v5160_v51 }
 0x55f   : > { %4857 = vmatprep.subr.bf16.mxu0 %v5161_v36 }
 0x560   : > { %v6364_v15 = vsub.f32 %v2628_v52, %v2676_v54  ;;  %v2691_v30 = vmul.f32 %v6362_v43, %v6362_v43 }
 0x562   : > { %v2703_v33 = vsel %vm770_vm0, %v2691_v30, 0.0  ;;  %v2692_v31 = vmul.f32 %v6364_v15, %v6364_v15 }
 0x563   : > { %2704 = vadd.xlane.f32.xlu0 %v2703_v33  ;;  %v2663_v32 = vpop.xlane.xlu0 %2662 }
 0x564   : > { %v2677_v1 = vmul.f32 0.03125, %v2663_v32  ;;  %v2706_v10 = vsel %vm770_vm0, %v2692_v31, 0.0 }
 0x565   : > { %v2666_v11 = vpop.xlane.xlu1 %2665  ;;  %2707 = vadd.xlane.f32.xlu1 %v2706_v10 }
 0x566   : > { %v6372_v58 = vsub.f32 %v2633_v35, %v2677_v1  ;;  %v2678_v38 = vmul.f32 0.03125, %v2666_v11 }
 0x568   : > { %v6374_v52 = vsub.f32 %v2636_v29, %v2678_v38  ;;  %v2693_v39 = vmul.f32 %v6372_v58, %v6372_v58 }
 0x56a   : > { %v2709_v56 = vsel %vm770_vm0, %v2693_v39, 0.0  ;;  %v2694_v46 = vmul.f32 %v6374_v52, %v6374_v52 }
 0x56b   : > { %2710 = vadd.xlane.f32.xlu0 %v2709_v56  ;;  %v2669_v23 = vpop.xlane.xlu0 %2668 }
 0x56c   : > { %v2679_v12 = vmul.f32 0.03125, %v2669_v23  ;;  %v2712_v6 = vsel %vm770_vm0, %v2694_v46, 0.0  ;;  %v6410_v46 = vld [vmem:[%s7102_s30] ss:$0 sm:$0xff]  ;;  %s7105_s30 = smov 64  }
 0x56d   : > { %v2672_v14 = vpop.xlane.xlu1 %2671  ;;  %2713 = vadd.xlane.f32.xlu1 %v2712_v6 }
 0x56e   : > { %v6382_v35 = vsub.f32 %v2641_v2, %v2679_v12  ;;  %v2680_v26 = vmul.f32 0.03125, %v2672_v14  ;;  %v5157_v2 = vld [vmem:[%s7041_s14 + $0x80] sm:$0xff]  }
 0x56f   : > { %4989 = vmatprep.subr.bf16.mxu1 %v5157_v2  ;;  %v6416_v14 = vld [vmem:[%s7103_s9] ss:$0 sm:$0xff]  ;;  %s6971_s9 = scalar_lea.sflag [#allocation9], %s7107_s8 }
 0x570   : > { %v6384_v29 = vsub.f32 %v2644_v41, %v2680_v26  ;;  %v2695_v17 = vmul.f32 %v6382_v35, %v6382_v35  ;;  %4990 = vmatpush3.bf16.msra.mxu1 %v5157_v2  ;;  %v5158_v41 = vld [vmem:[%s7041_s14 + $0x88] sm:$0xff]  }
 0x571   : > { %4991 = vmatprep.subr.bf16.mxu1 %v5158_v41 }
 0x572   : > { %v2715_v42 = vsel %vm770_vm0, %v2695_v17, 0.0  ;;  %v2696_v13 = vmul.f32 %v6384_v29, %v6384_v29 }
 0x573   : > { %2716 = vadd.xlane.f32.xlu0 %v2715_v42 }
 0x574   : > { %v2718_v59 = vsel %vm770_vm0, %v2696_v13, 0.0  ;;  %4992 = vmatpush3.bf16.msra.mxu1 %v5158_v41  ;;  %v5162_v41 = vld [vmem:[%s7041_s14 + $0x8] sm:$0xff]  }
 0x575   : > { %2719 = vadd.xlane.f32.xlu1 %v2718_v59  ;;  %4858 = vmatpush3.bf16.msra.mxu0 %v5162_v41 }
 0x5e8   : > { %v2699_v4 = vpop.xlane.xlu0 %2698 }
 0x5e9   : > { %v2721_v28 = vmul.f32 0.03125, %v2699_v4 }
 0x5ea   : > { %v2702_v54 = vpop.xlane.xlu1 %2701 }
 0x5eb   : > { %v2729_v30 = vadd.f32 1e-05, %v2721_v28  ;;  %v2722_v33 = vmul.f32 0.03125, %v2702_v54  ;;  %v5164_v28 = vld [vmem:[%s7041_s14 + $0x10] sm:$0xff]   ;;  %v5165_v54 = vld [vmem:[%s7041_s14 + $0x58] sm:$0xff]  }
 0x5ed   : > { %5231 = vrsqrt.f32 %v2729_v30  ;;  %v2730_v31 = vadd.f32 1e-05, %v2722_v33 }
 0x5ef   : > { %5233 = vrsqrt.f32 %v2730_v31 }
 0x5f0   : > { %v2705_v32 = vpop.xlane.xlu0 %2704 }
 0x5f1   : > { %v2723_v1 = vmul.f32 0.03125, %v2705_v32 }
 0x5f2   : > { %v2708_v10 = vpop.xlane.xlu1 %2707 }
 0x5f3   : > { %v2731_v11 = vadd.f32 1e-05, %v2723_v1  ;;  %v2724_v38 = vmul.f32 0.03125, %v2708_v10 }
 0x5f5   : > { %5235 = vrsqrt.f32 %v2731_v11  ;;  %v2732_v39 = vadd.f32 1e-05, %v2724_v38 }
 0x5f7   : > { %v5232_v56 = vpop.eup %5231  ;;  %5237 = vrsqrt.f32 %v2732_v39 }
 0x5f8   : > { %v2745_v23 = vmul.f32 %v5232_v56, %v6352_v18  ;;  %v2711_v12 = vpop.xlane.xlu0 %2710  ;;  %v5163_v18 = vld [vmem:[%s7041_s14 + $0x50] sm:$0xff]   ;;  %v2813_v56 = vld [vmem:[#allocation2 + $0x8] sm:$0xff] }
 0x5f9   : > { %v5234_v6 = vpop.eup %5233  ;;  %v2725_v26 = vmul.f32 0.03125, %v2711_v12  ;;  %4859 = vmatprep.subr.bf16.mxu0 %v5163_v18 }
 0x5fa   : > { %v2759_v17 = vmul.f32 %v6410_v46, %v2745_v23  ;;  %v2746_v42 = vmul.f32 %v5234_v6, %v6354_v21  ;;  %v2714_v13 = vpop.xlane.xlu1 %2713  ;;  %4860 = vmatpush3.bf16.msra.mxu0 %v5164_v28  ;;  %v5166_v23 = vld [vmem:[%s7041_s14 + $0x18] sm:$0xff]  }
 0x5fb   : > { %v2733_v59 = vadd.f32 1e-05, %v2725_v26  ;;  %v2726_v2 = vmul.f32 0.03125, %v2714_v13  ;;  %4861 = vmatprep.subr.bf16.mxu0 %v5165_v54  ;;  %v2789_v26 = vld [vmem:[#allocation2 + $0x7] sm:$0xff] }
 0x5fc   : > { %v2773_v49 = vadd.f32 %v6416_v14, %v2759_v17  ;;  %v2760_v51 = vmul.f32 %v6410_v46, %v2746_v42 }
 0x5fd   : > { %5239 = vrsqrt.f32 %v2733_v59  ;;  %v2734_v36 = vadd.f32 1e-05, %v2726_v2 }
 0x5fe   : > { %2781 = vst.msk [vmem:[#allocation2 + $0x10] sm:$0xff] %vm770_vm0, %v2773_v49  ;;  %v2774_v21 = vadd.f32 %v6416_v14, %v2760_v51  ;;  %4862 = vmatpush3.bf16.msra.mxu0 %v5166_v23 }
 0x5ff   : > { %v5236_v4 = vpop.eup %5235  ;;  %5241 = vrsqrt.f32 %v2734_v36  ;;  %v2797_v36 = vmul.f32 %v2789_v26, %v5686_v61 }
 0x600   : > { %2782 = vst.msk [vmem:[#allocation2 + $0x18] sm:$0xff] %vm770_vm0, %v2774_v21  ;;  %v2747_v30 = vmul.f32 %v5236_v4, %v6362_v43  ;;  %v2717_v33 = vpop.xlane.xlu0 %2716  ;;  %v5167_v43 = vld [vmem:[%s7041_s14 + $0x60] sm:$0xff]  }
 0x601   : > { %v5238_v31 = vpop.eup %5237  ;;  %v2727_v32 = vmul.f32 0.03125, %v2717_v33  ;;  %4863 = vmatprep.subr.bf16.mxu0 %v5167_v43  ;;  %v5169_v33 = vld [vmem:[%s7041_s14 + $0x68] sm:$0xff]  }
 0x602   : > { %v2761_v1 = vmul.f32 %v6410_v46, %v2747_v30  ;;  %v2748_v10 = vmul.f32 %v5238_v31, %v6364_v15  ;;  %v2720_v11 = vpop.xlane.xlu1 %2719  ;;  %v5168_v30 = vld [vmem:[%s7041_s14 + $0x20] sm:$0xff]  }
 0x603   : > { %v2735_v38 = vadd.f32 1e-05, %v2727_v32  ;;  %v2728_v39 = vmul.f32 0.03125, %v2720_v11  ;;  %4864 = vmatpush3.bf16.msra.mxu0 %v5168_v30 }
 0x604   : > { %v2775_v12 = vadd.f32 %v6416_v14, %v2761_v1  ;;  %v2762_v6 = vmul.f32 %v6410_v46, %v2748_v10  ;;  %4865 = vmatprep.subr.bf16.mxu0 %v5169_v33 }
 0x605   : > { %5243 = vrsqrt.f32 %v2735_v38  ;;  %v2736_v15 = vadd.f32 1e-05, %v2728_v39  ;;  %v2814_v17 = vld [vmem:[#allocation2 + $0x10] sm:$0xff] }
 0x606   : > { %v2845_v42 = vld [vmem:[#allocation2 + $0x9] sm:$0xff]  ;;  %2783 = vst.msk [vmem:[#allocation2 + $0x20] sm:$0xff] %vm770_vm0, %v2775_v12  ;;  %v2776_v59 = vadd.f32 %v6416_v14, %v2762_v6  ;;  %v2821_v2 = vpack.c.bf16 %v2814_v17, %v2813_v56 }
 0x607   : > { %v2885_v13 = vld [vmem:[#allocation2 + $0xf] sm:$0xff]  ;;  %v5240_v41 = vpop.eup %5239  ;;  %5245 = vrsqrt.f32 %v2736_v15  ;;  %v2886_v49 = vld [vmem:[#allocation2 + $0x17] sm:$0xff]  ;;  %v2853_v28 = vmul.f32 %v2845_v42, %v5753_v50 }
 0x608   : > { %v6450_v18 = vld [vmem:[#allocation2 + $0x11] sm:$0xff]  ;;  %v2798_v21 = vmul.f32 %v2885_v13, %v5696_v7  ;;  %2784 = vst.msk [vmem:[#allocation2 + $0x28] sm:$0xff] %vm770_vm0, %v2776_v59  ;;  %v2749_v4 = vmul.f32 %v5240_v41, %v6372_v58  ;;  %2829 = vrot.lane.b32.xlu1 %v2821_v2, %s7104_s24  ;;  %v2894_v38 = vmul.f32 %v2886_v49, %v5696_v7  ;;  %v5170_v42 = vld [vmem:[%s7041_s14 + $0x28] sm:$0xff]  }
 0x609   : > { %v3021_v51 = vld [vmem:[#allocation2 + $0x18] sm:$0xff]  ;;  %v2854_v54 = vmul.f32 %v6450_v18, %v5670_v53  ;;  %v5242_v31 = vpop.eup %5241  ;;  %v2893_v23 = vmul.f32 %v2885_v13, %v5686_v61  ;;  %v5171_v13 = vld [vmem:[%s7041_s14 + $0x70] sm:$0xff]   ;;  %4866 = vmatpush3.bf16.msra.mxu0 %v5170_v42 }
 0x60a   : > { %v2805_v32 = vpack.c.bf16 %v2798_v21, %v2797_v36  ;;  %v2933_v1 = vpack.c.bf16 %v3021_v51, %v2814_v17  ;;  %v2763_v58 = vmul.f32 %v6410_v46, %v2749_v4  ;;  %v2750_v10 = vmul.f32 %v5242_v31, %v6374_v52  ;;  %4867 = vmatprep.subr.bf16.mxu0 %v5171_v13 }
 0x60b   : > { %v2861_v11 = vpack.c.bf16 %v2854_v54, %v2853_v28  ;;  %v2901_v6 = vpack.c.bf16 %v2894_v38, %v2893_v23  ;;  %v2989_v36 = vmul.f32 %v2886_v49, %v5686_v61  ;;  %v2799_v4 = vmul.f32 %v2886_v49, %v5759_v55  ;;  %v5173_v49 = vld [vmem:[%s7041_s14 + $0x78] sm:$0xff]  }
 0x60c   : > { %2809 = vst.msk [vmem:[#allocation3] sm:$0xff] %vm770_vm0, %v2805_v32  ;;  %2937 = vst.msk [vmem:[#allocation3 + $0x8] sm:$0xff] %vm770_vm0, %v2933_v1  ;;  %v2777_v39 = vadd.f32 %v6416_v14, %v2763_v58  ;;  %v2764_v56 = vmul.f32 %v6410_v46, %v2750_v10  ;;  %v5174_v23 = vld [vmem:[%s7041_s14 + $0x38] sm:$0xff]  }
 0x60d   : > { %2869 = vrot.lane.b32.xlu0 %v2861_v11, %s7105_s30  ;;  %v3022_v43 = vld [vmem:[#allocation2 + $0x20] sm:$0xff] }
 0x60e   : > { %v6475_v12 = vld [vmem:[#allocation2 + $0x1f] sm:$0xff]  ;;  %2785 = vst.msk [vmem:[#allocation2 + $0x30] sm:$0xff] %vm770_vm0, %v2777_v39  ;;  %v2778_v52 = vadd.f32 %v6416_v14, %v2764_v56  ;;  %v3029_v26 = vpack.c.bf16 %v3022_v43, %v3021_v51 }
 0x60f   : > { %v2990_v15 = vmul.f32 %v6475_v12, %v5696_v7  ;;  %v2942_v17 = vld [vmem:[#allocation2 + $0x19] sm:$0xff]  ;;  %v5244_v59 = vpop.eup %5243  ;;  %v3054_v2 = vld [vmem:[#allocation2 + $0x21] sm:$0xff]  ;;  %v2800_v41 = vmul.f32 %v6475_v12, %v5784_v3 }
 0x610   : > { %2786 = vst.msk [vmem:[#allocation2 + $0x38] sm:$0xff] %vm770_vm0, %v2778_v52  ;;  %v2751_v51 = vmul.f32 %v5244_v59, %v6382_v35  ;;  %3037 = vrot.lane.b32.xlu1 %v3029_v26, %s7106_s28  ;;  %v3023_v21 = vld [vmem:[#allocation2 + $0x28] sm:$0xff]  ;;  %v2950_v54 = vmul.f32 %v2942_v17, %v5670_v53  ;;  %v3061_v30 = vmul.f32 %v2942_v17, %v5753_v50  ;;  %v5172_v35 = vld [vmem:[%s7041_s14 + $0x30] sm:$0xff]  }
 0x611   : > { %2909 = vrot.lane.b32.xlu0 %v2901_v6, %s7106_s28  ;;  %v5246_v28 = vpop.eup %5245  ;;  %v3062_v33 = vmul.f32 %v3054_v2, %v5670_v53  ;;  %v2997_v1 = vpack.c.bf16 %v2990_v15, %v2989_v36  ;;  %v2806_v58 = vpack.c.bf16 %v2800_v41, %v2799_v4  ;;  %v2934_v11 = vpack.c.bf16 %v3023_v21, %v3022_v43  ;;  %v2888_v56 = vld [vmem:[#allocation2 + $0x27] sm:$0xff] }
 0x612   : > { %v2765_v31 = vmul.f32 %v6410_v46, %v2751_v51  ;;  %v2752_v32 = vmul.f32 %v5246_v28, %v6384_v29  ;;  %v2949_v29 = vmul.f32 %v6450_v18, %v5753_v50  ;;  %v2856_v43 = vmul.f32 %v3054_v2, %v5739_v40  ;;  %4868 = vmatpush3.bf16.msra.mxu0 %v5172_v35 }
 0x613   : > { %v3069_v10 = vpack.c.bf16 %v3062_v33, %v3061_v30  ;;  %2810 = vst.msk [vmem:[#allocation3 + $0x18] sm:$0xff] %vm770_vm0, %v2806_v58  ;;  %2938 = vst.msk [vmem:[#allocation3 + $0x20] sm:$0xff] %vm770_vm0, %v2934_v11  ;;  %4869 = vmatprep.subr.bf16.mxu0 %v5173_v49  ;;  %v2855_v13 = vmul.f32 %v2942_v17, %v5717_v24  ;;  %v2951_v59 = vmul.f32 %v3054_v2, %v5717_v24 }
 0x614   : > { %v2779_v38 = vadd.f32 %v6416_v14, %v2765_v31  ;;  %v2766_v39 = vmul.f32 %v6410_v46, %v2752_v32  ;;  %3005 = vrot.lane.b32.xlu1 %v2997_v1, %s7105_s30  ;;  %v2801_v17 = vmul.f32 %v2888_v56, %v5846_v19  ;;  %v2896_v2 = vmul.f32 %v2888_v56, %v5784_v3 }
 0x615   : > { %2831 = vrot.lane.b32.xlu0 %v3029_v26, %s7104_s24  ;;  %v3024_v52 = vld [vmem:[#allocation2 + $0x30] sm:$0xff]  ;;  %3073 = vst.msk [vmem:[#allocation3 + $0x10] sm:$0xff] %vm770_vm0, %v3069_v10  ;;  %v2957_v26 = vpack.c.bf16 %v2950_v54, %v2949_v29  ;;  %v2862_v4 = vpack.c.bf16 %v2856_v43, %v2855_v13  ;;  %v2895_v32 = vmul.f32 %v6475_v12, %v5759_v55 }
 0x616   : > { %v6518_v46 = vld [vmem:[#allocation2 + $0x29] sm:$0xff]  ;;  %2787 = vst.msk [vmem:[#allocation2 + $0x40] sm:$0xff] %vm770_vm0, %v2779_v38  ;;  %v2780_v18 = vadd.f32 %v6416_v14, %v2766_v39  ;;  %v3030_v15 = vpack.c.bf16 %v3024_v52, %v3023_v21  ;;  %4870 = vmatpush3.bf16.msra.mxu0 %v5174_v23  ;;  %v2991_v1 = vmul.f32 %v2888_v56, %v5759_v55  ;;  %v3060_v38 = vld [vmem:[#allocation2 + $0x51] sm:$0xff] }
 0x617   : > { %v6520_v6 = vld [vmem:[#allocation2 + $0x2f] sm:$0xff]  ;;  %v2952_v42 = vmul.f32 %v6518_v46, %v5739_v40  ;;  %v3025_v51 = vld [vmem:[#allocation2 + $0x38] sm:$0xff]  ;;  %v3063_v14 = vmul.f32 %v6518_v46, %v5717_v24  ;;  %v2902_v10 = vpack.c.bf16 %v2896_v2, %v2895_v32 }
 0x618   : > { %v3056_v41 = vld [vmem:[#allocation2 + $0x31] sm:$0xff]  ;;  %v2802_v36 = vmul.f32 %v6520_v6, %v5838_v45  ;;  %2788 = vst.msk [vmem:[#allocation2 + $0x48] sm:$0xff] %vm770_vm0, %v2780_v18  ;;  %3039 = vrot.lane.b32.xlu1 %v3030_v15, %s7106_s28  ;;  %v2992_v28 = vmul.f32 %v6520_v6, %v5784_v3  ;;  %v2935_v35 = vpack.c.bf16 %v3025_v51, %v3024_v52 }
 0x619   : > { %2965 = vrot.lane.b32.xlu0 %v2957_v26, %s7104_s24  ;;  %v3064_v21 = vmul.f32 %v3056_v41, %v5739_v40  ;;  %v2958_v54 = vpack.c.bf16 %v2952_v42, %v2951_v59  ;;  %v2890_v39 = vld [vmem:[#allocation2 + $0x37] sm:$0xff]  ;;  %v3068_v42 = vmul.f32 %v3060_v38, %v5908_v57  ;;  %v2858_v13 = vmul.f32 %v3056_v41, %v5786_v25 }
 0x61a   : > { %v2807_v33 = vpack.c.bf16 %v2802_v36, %v2801_v17  ;;  %2939 = vst.msk [vmem:[#allocation3 + $0x38] sm:$0xff] %vm770_vm0, %v2935_v35  ;;  %v2998_v11 = vpack.c.bf16 %v2992_v28, %v2991_v1  ;;  %v2803_v36 = vmul.f32 %v2890_v39, %v5914_v0  ;;  %v2857_v28 = vmul.f32 %v6518_v46, %v5815_v27 }
 0x61b   : > { %v3070_v30 = vpack.c.bf16 %v3064_v21, %v3063_v14  ;;  %v2897_v35 = vmul.f32 %v6520_v6, %v5846_v19 }
 0x61c   : > { %v3079_v31 = vld [vmem:[#allocation3 + $0x10] sm:$0xff]  ;;  %2967 = vrot.lane.b32.xlu1 %v2958_v54, %s7104_s24  ;;  %2811 = vst.msk [vmem:[#allocation3 + $0x30] sm:$0xff] %vm770_vm0, %v2807_v33  ;;  %v2898_v33 = vmul.f32 %v2890_v39, %v5838_v45 }
 0x61d   : > { %2871 = vrot.lane.b32.xlu0 %v2862_v4, %s7105_s30  ;;  %3074 = vst.msk [vmem:[#allocation3 + $0x28] sm:$0xff] %vm770_vm0, %v3070_v30  ;;  %4993 = vmatprep.mubr.msk.bf16.mxu1 %vm770_vm0, %v3079_v31  ;;  %v2946_v58 = vld [vmem:[#allocation2 + $0x39] sm:$0xff]  ;;  %v2953_v30 = vmul.f32 %v3056_v41, %v5815_v27  ;;  %v2993_v41 = vmul.f32 %v2890_v39, %v5846_v19 }
 0x61e   : > { %v6550_v49 = vld [vmem:[#allocation2 + $0x3f] sm:$0xff]  ;;  %v3065_v56 = vmul.f32 %v2946_v58, %v5815_v27  ;;  %v2954_v17 = vmul.f32 %v2946_v58, %v5786_v25  ;;  %v2903_v31 = vpack.c.bf16 %v2898_v33, %v2897_v35 }
 0x61f   : > { %v3058_v29 = vld [vmem:[#allocation2 + $0x41] sm:$0xff]  ;;  %v3059_v23 = vld [vmem:[#allocation2 + $0x49] sm:$0xff]  ;;  %v2804_v18 = vmul.f32 %v6550_v49, %v5912_v62  ;;  %v2994_v46 = vmul.f32 %v6550_v49, %v5838_v45 }
 0x620   : > { %3007 = vrot.lane.b32.xlu1 %v2998_v11, %s7105_s30  ;;  %v3026_v12 = vld [vmem:[#allocation2 + $0x40] sm:$0xff]  ;;  %v3066_v52 = vmul.f32 %v3058_v29, %v5786_v25  ;;  %v3027_v43 = vld [vmem:[#allocation2 + $0x48] sm:$0xff]  ;;  %v3067_v26 = vmul.f32 %v3059_v23, %v5910_v60  ;;  %v2956_v11 = vmul.f32 %v3059_v23, %v5908_v57  ;;  %v2860_v6 = vmul.f32 %v3058_v29, %v5908_v57 }
 0x621   : > { %2911 = vrot.lane.b32.xlu0 %v2902_v10, %s7106_s28  ;;  %v3031_v21 = vpack.c.bf16 %v3026_v12, %v3025_v51  ;;  %v2936_v2 = vpack.c.bf16 %v3027_v43, %v3026_v12  ;;  %v2808_v54 = vpack.c.bf16 %v2804_v18, %v2803_v36  ;;  %v2863_v51 = vpack.c.bf16 %v2858_v13, %v2857_v28  ;;  %v2987_v12 = vld [vmem:[#allocation2 + $0x47] sm:$0xff] }
 0x622   : > { %v3071_v59 = vpack.c.bf16 %v3066_v52, %v3065_v56  ;;  %v3072_v4 = vpack.c.bf16 %v3068_v42, %v3067_v26  ;;  %v2999_v1 = vpack.c.bf16 %v2994_v46, %v2993_v41  ;;  %v2955_v10 = vmul.f32 %v3058_v29, %v5910_v60  ;;  %v2988_v56 = vld [vmem:[#allocation2 + $0x4f] sm:$0xff] }
 0x623   : > { %2940 = vst.msk [vmem:[#allocation3 + $0x50] sm:$0xff] %vm770_vm0, %v2936_v2  ;;  %2812 = vst.msk [vmem:[#allocation3 + $0x48] sm:$0xff] %vm770_vm0, %v2808_v54  ;;  %v2995_v52 = vmul.f32 %v2987_v12, %v5914_v0  ;;  %v2996_v18 = vmul.f32 %v2988_v56, %v5912_v62  ;;  %v2859_v23 = vmul.f32 %v2946_v58, %v5910_v60 }
 0x624   : > { %v3082_v14 = vld [vmem:[#allocation3 + $0x28] sm:$0xff]  ;;  %3075 = vst.msk [vmem:[#allocation3 + $0x40] sm:$0xff] %vm770_vm0, %v3071_v59  ;;  %3041 = vrot.lane.b32.xlu1 %v3031_v21, %s7106_s28  ;;  %3076 = vst.msk [vmem:[#allocation3 + $0x58] sm:$0xff] %vm770_vm0, %v3072_v4  ;;  %v2960_v39 = vpack.c.bf16 %v2956_v11, %v2955_v10  ;;  %v2900_v42 = vmul.f32 %v2987_v12, %v5912_v62  ;;  %v3028_v59 = vld [vmem:[#allocation2 + $0x50] sm:$0xff]  ;;  %v2899_v29 = vmul.f32 %v6550_v49, %v5914_v0 }
 0x625   : > { %4994 = vmatmul.mubr.msk.bf16.vlgmr.msra.gmra.mrb[40].mxu1 %vm770_vm0, %v3082_v14  ;;  %2833 = vrot.lane.b32.xlu0 %v3030_v15, %s7104_s24  ;;  %v2959_v15 = vpack.c.bf16 %v2954_v17, %v2953_v30  ;;  %v2864_v26 = vpack.c.bf16 %v2860_v6, %v2859_v23  ;;  %v3000_v13 = vpack.c.bf16 %v2996_v18, %v2995_v52 }
 0x626   : > { %v2904_v36 = vpack.c.bf16 %v2900_v42, %v2899_v29  ;;  %v3032_v14 = vpack.c.bf16 %v3028_v59, %v3027_v43 }
 0x628   : > { %2969 = vrot.lane.b32.xlu1 %v2959_v15, %s7104_s24 }
 0x629   : > { %2873 = vrot.lane.b32.xlu0 %v2863_v51, %s7105_s30 }
 0x62b   : > { %v3085_v32 = vld [vmem:[#allocation3 + $0x40] sm:$0xff]  ;;  %v3088_v38 = vld [vmem:[#allocation3 + $0x58] sm:$0xff] }
 0x62c   : > { %4997 = vmatprep.mubr.msk.bf16.mxu1 %vm770_vm0, %v3085_v32  ;;  %3009 = vrot.lane.b32.xlu1 %v2999_v1, %s7105_s30 }
 0x62d   : > { %2913 = vrot.lane.b32.xlu0 %v2903_v31, %s7106_s28  ;;  %4998 = vmatmul.mubr.msk.bf16.gmra.mrb[44].mxu1 %vm770_vm0, %v3088_v38 }
 0x630   : > { %2971 = vrot.lane.b32.xlu1 %v2960_v39, %s7104_s24 }
 0x631   : > { %2835 = vrot.lane.b32.xlu0 %v3031_v21, %s7104_s24 }
 0x634   : > { %3011 = vrot.lane.b32.xlu1 %v3000_v13, %s7105_s30 }
 0x635   : > { %2875 = vrot.lane.b32.xlu0 %v2864_v26, %s7105_s30 }
 0x638   : > { %3043 = vrot.lane.b32.xlu1 %v3032_v14, %s7106_s28 }
 0x639   : > { %2915 = vrot.lane.b32.xlu0 %v2904_v36, %s7106_s28 }
 0x67a   : > { %v2830_v58 = vpop.permute.xlu1 %2829 }
 0x67b   : > { %2841 = vst.msk [vmem:[#allocation3] sm:$0xff] %vm1045_vm3, %v2830_v58 }
 0x67f   : > { %v2870_v21 = vpop.permute.xlu0 %2869 }
 0x680   : > { %2881 = vst.msk [vmem:[#allocation3] sm:$0xff] %vm1126_vm4, %v2870_v21 }
 0x682   : > { %v3038_v17 = vpop.permute.xlu1 %3037 }
 0x683   : > { %v2910_v4 = vpop.permute.xlu0 %2909 }
 0x684   : > { %2921 = vst.msk [vmem:[#allocation3] sm:$0xff] %vm1167_vm5, %v2910_v4 }
 0x686   : > { %v3006_v2 = vpop.permute.xlu1 %3005 }
 0x687   : > { %v2832_v49 = vpop.permute.xlu0 %2831 }
 0x688   : > { %2842 = vst.msk [vmem:[#allocation3 + $0x18] sm:$0xff] %vm1045_vm3, %v2832_v49  ;;  %v5176_v49 = vld [vmem:[%s7043_s16 + $0x88] sm:$0xff]  }
 0x68a   : > { %v3040_v28 = vpop.permute.xlu1 %3039 }
 0x68b   : > { %v2966_v43 = vpop.permute.xlu0 %2965  ;;  %v3077_v46 = vld [vmem:[#allocation3] sm:$0xff] }
 0x68c   : > { %2977 = vst.msk [vmem:[#allocation3 + $0x8] sm:$0xff] %vm1045_vm3, %v2966_v43  ;;  %v5178_v43 = vld [vmem:[%s7043_s16] sm:$0xff]  }
 0x68d   : > { %3017 = vst.msk [vmem:[#allocation3 + $0x8] sm:$0xff] %vm1126_vm4, %v3006_v2  ;;  %v5175_v2 = vld [vmem:[%s7043_s16 + $0x80] sm:$0xff]  }
 0x68e   : > { %3049 = vst.msk [vmem:[#allocation3 + $0x8] sm:$0xff] %vm1167_vm5, %v3038_v17  ;;  %v2968_v54 = vpop.permute.xlu1 %2967  ;;  %5001 = vmatprep.subr.bf16.mxu1 %v5175_v2 }
 0x68f   : > { %v2872_v30 = vpop.permute.xlu0 %2871  ;;  %2978 = vst.msk [vmem:[#allocation3 + $0x20] sm:$0xff] %vm1045_vm3, %v2968_v54  ;;  %5002 = vmatpush3.bf16.msra.mxu1 %v5175_v2  ;;  %v5179_v54 = vld [vmem:[%s7043_s16 + $0x48] sm:$0xff]  }
 0x690   : > { %2882 = vst.msk [vmem:[#allocation3 + $0x18] sm:$0xff] %vm1126_vm4, %v2872_v30  ;;  %5003 = vmatprep.subr.bf16.mxu1 %v5176_v49  ;;  %v5180_v30 = vld [vmem:[%s7043_s16 + $0x8] sm:$0xff]  }
 0x692   : > { %v3008_v51 = vpop.permute.xlu1 %3007 }
 0x693   : > { %v2912_v33 = vpop.permute.xlu0 %2911  ;;  %3018 = vst.msk [vmem:[#allocation3 + $0x20] sm:$0xff] %vm1126_vm4, %v3008_v51  ;;  %5004 = vmatpush3.bf16.msra.mxu1 %v5176_v49 }
 0x694   : > { %2922 = vst.msk [vmem:[#allocation3 + $0x18] sm:$0xff] %vm1167_vm5, %v2912_v33  ;;  %3050 = vst.msk [vmem:[#allocation3 + $0x20] sm:$0xff] %vm1167_vm5, %v3040_v28  ;;  %v5177_v28 = vld [vmem:[%s7043_s16 + $0x40] sm:$0xff]  }
 0x695   : > { %v3078_v15 = vld [vmem:[#allocation3 + $0x8] sm:$0xff]  ;;  %4901 = vmatprep.subr.bf16.mxu0 %v5177_v28  ;;  %v6653_v33 = vld [vmem:[%s7042_s15] ss:$0 sm:$0xff] }
 0x696   : > { %3284 = vmatprep.mubr.bf16.mxu0 %v3078_v15  ;;  %v3042_v41 = vpop.permute.xlu1 %3041 }
 0x697   : > { %3285 = vmatmul.mubr.bf16.vlgmr.msra.gmra.mrb[24].mxu0 %v3077_v46  ;;  %v2834_v35 = vpop.permute.xlu0 %2833 }
 0x698   : > { %2843 = vst.msk [vmem:[#allocation3 + $0x30] sm:$0xff] %vm1045_vm3, %v2834_v35  ;;  %4902 = vmatpush3.bf16.msra.mxu0 %v5178_v43 }
 0x699   : > { %4903 = vmatprep.subr.bf16.mxu0 %v5179_v54 }
 0x69a   : > { %v2970_v32 = vpop.permute.xlu1 %2969 }
 0x69b   : > { %v2874_v31 = vpop.permute.xlu0 %2873  ;;  %v3081_v1 = vld [vmem:[#allocation3 + $0x20] sm:$0xff]  ;;  %2979 = vst.msk [vmem:[#allocation3 + $0x38] sm:$0xff] %vm1045_vm3, %v2970_v32  ;;  %v3080_v10 = vld [vmem:[#allocation3 + $0x18] sm:$0xff] }
 0x69c   : > { %2883 = vst.msk [vmem:[#allocation3 + $0x30] sm:$0xff] %vm1126_vm4, %v2874_v31  ;;  %3292 = vmatprep.mubr.bf16.mxu0 %v3081_v1  ;;  %4904 = vmatpush3.bf16.msra.mxu0 %v5180_v30 }
 0x69e   : > { %v3010_v38 = vpop.permute.xlu1 %3009 }
 0x69f   : > { %3293 = vmatmul.mubr.bf16.gmra.mrb[28].mxu0 %v3080_v10  ;;  %v2914_v11 = vpop.permute.xlu0 %2913  ;;  %3019 = vst.msk [vmem:[#allocation3 + $0x38] sm:$0xff] %vm1126_vm4, %v3010_v38 }
 0x6a0   : > { %2923 = vst.msk [vmem:[#allocation3 + $0x30] sm:$0xff] %vm1167_vm5, %v2914_v11  ;;  %3051 = vst.msk [vmem:[#allocation3 + $0x38] sm:$0xff] %vm1167_vm5, %v3042_v41 }
 0x6a2   : > { %v2972_v56 = vpop.permute.xlu1 %2971 }
 0x6a3   : > { %v2836_v12 = vpop.permute.xlu0 %2835  ;;  %2980 = vst.msk [vmem:[#allocation3 + $0x50] sm:$0xff] %vm1045_vm3, %v2972_v56 }
 0x6a4   : > { %2844 = vst.msk [vmem:[#allocation3 + $0x48] sm:$0xff] %vm1045_vm3, %v2836_v12 }
 0x6a6   : > { %v3012_v39 = vpop.permute.xlu1 %3011 }
 0x6a7   : > { %v2876_v6 = vpop.permute.xlu0 %2875  ;;  %3020 = vst.msk [vmem:[#allocation3 + $0x50] sm:$0xff] %vm1126_vm4, %v3012_v39  ;;  %v3084_v52 = vld [vmem:[#allocation3 + $0x38] sm:$0xff]  ;;  %v3083_v18 = vld [vmem:[#allocation3 + $0x30] sm:$0xff] }
 0x6a8   : > { %2884 = vst.msk [vmem:[#allocation3 + $0x48] sm:$0xff] %vm1126_vm4, %v2876_v6  ;;  %3300 = vmatprep.mubr.bf16.mxu0 %v3084_v52 }
 0x6a9   : > { %3301 = vmatmul.mubr.bf16.gmra.mrb[32].mxu0 %v3083_v18 }
 0x6aa   : > { %v3044_v26 = vpop.permute.xlu1 %3043 }
 0x6ab   : > { %v2916_v23 = vpop.permute.xlu0 %2915  ;;  %3052 = vst.msk [vmem:[#allocation3 + $0x50] sm:$0xff] %vm1167_vm5, %v3044_v26 }
 0x6ac   : > { %2924 = vst.msk [vmem:[#allocation3 + $0x48] sm:$0xff] %vm1167_vm5, %v2916_v23 }
 0x6b2   : > { %v3087_v13 = vld [vmem:[#allocation3 + $0x50] sm:$0xff] }
 0x6b3   : > { %v3086_v42 = vld [vmem:[#allocation3 + $0x48] sm:$0xff]  ;;  %3308 = vmatprep.mubr.bf16.mxu0 %v3087_v13 }
 0x6b4   : > { %3309 = vmatmul.mubr.bf16.gmra.mrb[36].mxu0 %v3086_v42 }
 0x6f8   : > { %v4995_v59 = vpop.f32.mrb[40].mxu1 }
 0x6f9   : > { %v3351_v29 = vpop.f32.mrb[41].mxu1 }
 0x6fa   : > { %v4996_v36 = vpop.f32.mrb[42].mxu1 }
 0x6fb   : > { %v3354_v14 = vpop.f32.mrb[43].mxu1 }
 0x700   : > { %v6624_v58 = vpop.f32.mrb[44].mxu1 }
 0x701   : > { %v6626_v21 = vpop.f32.mrb[45].mxu1 }
 0x702   : > { %v6628_v17 = vpop.f32.mrb[46].mxu1 }
 0x703   : > { %v6630_v4 = vpop.f32.mrb[47].mxu1 }
 0x76a   : > { %v4871_v51 = vpop.f32.mrb[24].mxu0 }
 0x76b   : > { %v4872_v15 = vpop.f32.mrb[25].mxu0 }
 0x76c   : > { %v4873_v46 = vadd.f32 %v4872_v15, %v4871_v51  ;;  %v4874_v35 = vpop.f32.mrb[26].mxu0 }
 0x76d   : > { %v4875_v41 = vpop.f32.mrb[27].mxu0 }
 0x76e   : > { %v3287_v31 = vadd.f32 %v4873_v46, %v6653_v33  ;;  %v4876_v32 = vadd.f32 %v4875_v41, %v4874_v35 }
 0x770   : > { %v3352_v1 = vadd.f32 %v3351_v29, %v3287_v31  ;;  %v3290_v10 = vadd.f32 %v4876_v32, %v6653_v33 }
 0x772   : > { %v3390_v11 = vmul.f32 0.044715, %v3352_v1  ;;  %v3355_v38 = vadd.f32 %v3354_v14, %v3290_v10  ;;  %v4877_v12 = vpop.f32.mrb[28].mxu0 }
 0x773   : > { %v4878_v56 = vpop.f32.mrb[29].mxu0 }
 0x774   : > { %v3398_v6 = vmul.f32 %v3390_v11, %v3352_v1  ;;  %v3391_v39 = vmul.f32 0.044715, %v3355_v38  ;;  %v4879_v52 = vadd.f32 %v4878_v56, %v4877_v12  ;;  %v4880_v18 = vpop.f32.mrb[30].mxu0 }
 0x775   : > { %v4881_v23 = vpop.f32.mrb[31].mxu0 }
 0x776   : > { %v3406_v26 = vmul.f32 %v3398_v6, %v3352_v1  ;;  %v3399_v42 = vmul.f32 %v3391_v39, %v3355_v38  ;;  %v3295_v13 = vadd.f32 %v4879_v52, %v6653_v33  ;;  %v4882_v2 = vadd.f32 %v4881_v23, %v4880_v18 }
 0x778   : > { %v3414_v49 = vadd.f32 %v3406_v26, %v3352_v1  ;;  %v3407_v28 = vmul.f32 %v3399_v42, %v3355_v38  ;;  %v6658_v43 = vadd.f32 %v4995_v59, %v3295_v13  ;;  %v3298_v29 = vadd.f32 %v4882_v2, %v6653_v33 }
 0x77a   : > { %v3422_v54 = vmul.f32 0.7978846, %v3414_v49  ;;  %v3415_v14 = vadd.f32 %v3407_v28, %v3355_v38  ;;  %v3392_v30 = vmul.f32 0.044715, %v6658_v43  ;;  %v6662_v51 = vadd.f32 %v4996_v36, %v3298_v29 }
 0x77b   : > { %v3382_v28 = vmul.f32 0.5, %v3352_v1 }
 0x77c   : > { %5247 = vtanh.f32 %v3422_v54  ;;  %v3423_v15 = vmul.f32 0.7978846, %v3415_v14  ;;  %v3400_v46 = vmul.f32 %v3392_v30, %v6658_v43  ;;  %v3393_v35 = vmul.f32 0.044715, %v6662_v51  ;;  %v4883_v31 = vpop.f32.mrb[32].mxu0 }
 0x77d   : > { %v4884_v32 = vpop.f32.mrb[33].mxu0 }
 0x77e   : > { %5249 = vtanh.f32 %v3423_v15  ;;  %v3408_v41 = vmul.f32 %v3400_v46, %v6658_v43  ;;  %v3401_v59 = vmul.f32 %v3393_v35, %v6662_v51  ;;  %v4885_v11 = vadd.f32 %v4884_v32, %v4883_v31  ;;  %v4886_v12 = vpop.f32.mrb[34].mxu0  ;;  %v5182_v15 = vld [vmem:[%s7043_s16 + $0x10] sm:$0xff]  }
 0x77f   : > { %v4887_v56 = vpop.f32.mrb[35].mxu0  ;;  %v3383_v35 = vmul.f32 0.5, %v3355_v38  ;;  %v5183_v38 = vld [vmem:[%s7043_s16 + $0x58] sm:$0xff]  }
 0x780   : > { %v3416_v10 = vadd.f32 %v3408_v41, %v6658_v43  ;;  %v3409_v36 = vmul.f32 %v3401_v59, %v6662_v51  ;;  %v3303_v39 = vadd.f32 %v4885_v11, %v6653_v33  ;;  %v4888_v52 = vadd.f32 %v4887_v56, %v4886_v12 }
 0x782   : > { %v3424_v6 = vmul.f32 0.7978846, %v3416_v10  ;;  %v3417_v18 = vadd.f32 %v3409_v36, %v6662_v51  ;;  %v6673_v23 = vadd.f32 %v6626_v21, %v3303_v39  ;;  %v3306_v26 = vadd.f32 %v4888_v52, %v6653_v33  ;;  %v5181_v21 = vld [vmem:[%s7043_s16 + $0x50] sm:$0xff]  }
 0x783   : > { %4905 = vmatprep.subr.bf16.mxu0 %v5181_v21  ;;  %v5186_v21 = vld [vmem:[%s7043_s16 + $0x20] sm:$0xff]  }
 0x784   : > { %5251 = vtanh.f32 %v3424_v6  ;;  %v3425_v42 = vmul.f32 0.7978846, %v3417_v18  ;;  %v3394_v2 = vmul.f32 0.044715, %v6673_v23  ;;  %v6678_v49 = vadd.f32 %v6630_v4, %v3306_v26  ;;  %4906 = vmatpush3.bf16.msra.mxu0 %v5182_v15  ;;  %v5184_v6 = vld [vmem:[%s7043_s16 + $0x18] sm:$0xff]  }
 0x785   : > { %4907 = vmatprep.subr.bf16.mxu0 %v5183_v38 }
 0x786   : > { %v5248_v13 = vpop.eup %5247  ;;  %5253 = vtanh.f32 %v3425_v42  ;;  %v3402_v14 = vmul.f32 %v3394_v2, %v6673_v23  ;;  %v3395_v30 = vmul.f32 0.044715, %v6678_v49 }
 0x787   : > { %v3438_v29 = vadd.f32 1.0, %v5248_v13  ;;  %v4889_v41 = vpop.f32.mrb[36].mxu0  ;;  %v3384_v13 = vmul.f32 0.5, %v6658_v43 }
 0x788   : > { %v5250_v54 = vpop.eup %5249  ;;  %v3410_v1 = vmul.f32 %v3402_v14, %v6673_v23  ;;  %v3403_v31 = vmul.f32 %v3395_v30, %v6678_v49  ;;  %v4890_v59 = vpop.f32.mrb[37].mxu0  ;;  %4908 = vmatpush3.bf16.msra.mxu0 %v5184_v6  ;;  %v3486_v14 = vld [vmem:[#allocation4 + $0x8] sm:$0xff]  ;;  %v5185_v30 = vld [vmem:[%s7043_s16 + $0x60] sm:$0xff]  }
 0x789   : > { %v3446_v46 = vmul.f32 %v3438_v29, %v3382_v28  ;;  %v3439_v4 = vadd.f32 1.0, %v5250_v54  ;;  %v4891_v10 = vadd.f32 %v4890_v59, %v4889_v41  ;;  %v4892_v11 = vpop.f32.mrb[38].mxu0  ;;  %4909 = vmatprep.subr.bf16.mxu0 %v5185_v30 }
 0x78a   : > { %v3418_v12 = vadd.f32 %v3410_v1, %v6673_v23  ;;  %v3411_v36 = vmul.f32 %v3403_v31, %v6678_v49  ;;  %v4893_v56 = vpop.f32.mrb[39].mxu0 }
 0x78b   : > { %3454 = vst.msk [vmem:[#allocation4 + $0x10] sm:$0xff] %vm770_vm0, %v3446_v46  ;;  %v3447_v32 = vmul.f32 %v3439_v4, %v3383_v35  ;;  %v3311_v39 = vadd.f32 %v4891_v10, %v6653_v33  ;;  %v4894_v52 = vadd.f32 %v4893_v56, %v4892_v11  ;;  %v3385_v35 = vmul.f32 0.5, %v6662_v51 }
 0x78c   : > { %v3426_v26 = vmul.f32 0.7978846, %v3418_v12  ;;  %v3419_v42 = vadd.f32 %v3411_v36, %v6678_v49  ;;  %4910 = vmatpush3.bf16.msra.mxu0 %v5186_v21 }
 0x78d   : > { %3455 = vst.msk [vmem:[#allocation4 + $0x18] sm:$0xff] %vm770_vm0, %v3447_v32  ;;  %v6704_v28 = vadd.f32 %v6624_v58, %v3311_v39  ;;  %v3314_v29 = vadd.f32 %v4894_v52, %v6653_v33  ;;  %v3462_v33 = vld [vmem:[#allocation4 + $0x7] sm:$0xff] }
 0x78e   : > { %v5252_v18 = vpop.eup %5251  ;;  %5255 = vtanh.f32 %v3426_v26  ;;  %v3427_v54 = vmul.f32 0.7978846, %v3419_v42  ;;  %v3470_v51 = vmul.f32 %v3462_v33, %v5686_v61  ;;  %v5188_v26 = vld [vmem:[%s7043_s16 + $0x28] sm:$0xff]  }
 0x78f   : > { %v3440_v2 = vadd.f32 1.0, %v5252_v18  ;;  %v3396_v46 = vmul.f32 0.044715, %v6704_v28  ;;  %v6715_v58 = vadd.f32 %v6628_v17, %v3314_v29  ;;  %v5187_v18 = vld [vmem:[%s7043_s16 + $0x68] sm:$0xff]  }
 0x790   : > { %v5254_v15 = vpop.eup %5253  ;;  %5257 = vtanh.f32 %v3427_v54  ;;  %4911 = vmatprep.subr.bf16.mxu0 %v5187_v18 }
 0x791   : > { %v3448_v43 = vmul.f32 %v3440_v2, %v3384_v13  ;;  %v3441_v4 = vadd.f32 1.0, %v5254_v15  ;;  %v3404_v59 = vmul.f32 %v3396_v46, %v6704_v28  ;;  %v3397_v32 = vmul.f32 0.044715, %v6715_v58  ;;  %4912 = vmatpush3.bf16.msra.mxu0 %v5188_v26  ;;  %v5190_v46 = vld [vmem:[%s7043_s16 + $0x30] sm:$0xff]  }
 0x792   : > { %v3487_v41 = vld [vmem:[#allocation4 + $0x10] sm:$0xff] }
 0x793   : > { %v3518_v1 = vld [vmem:[#allocation4 + $0x9] sm:$0xff]  ;;  %3456 = vst.msk [vmem:[#allocation4 + $0x20] sm:$0xff] %vm770_vm0, %v3448_v43  ;;  %v3494_v10 = vpack.c.bf16 %v3487_v41, %v3486_v14  ;;  %v3449_v11 = vmul.f32 %v3441_v4, %v3385_v35  ;;  %v3412_v38 = vmul.f32 %v3404_v59, %v6704_v28  ;;  %v3405_v6 = vmul.f32 %v3397_v32, %v6715_v58 }
 0x794   : > { %v3558_v31 = vld [vmem:[#allocation4 + $0xf] sm:$0xff]  ;;  %v6721_v12 = vld [vmem:[#allocation4 + $0x17] sm:$0xff]  ;;  %v3526_v39 = vmul.f32 %v3518_v1, %v5753_v50  ;;  %v3386_v35 = vmul.f32 0.5, %v6673_v23 }
 0x795   : > { %v3519_v17 = vld [vmem:[#allocation4 + $0x11] sm:$0xff]  ;;  %v3471_v56 = vmul.f32 %v3558_v31, %v5696_v7  ;;  %3502 = vrot.lane.b32.xlu0 %v3494_v10, %s7104_s24  ;;  %3457 = vst.msk [vmem:[#allocation4 + $0x28] sm:$0xff] %vm770_vm0, %v3449_v11  ;;  %v3567_v42 = vmul.f32 %v6721_v12, %v5696_v7  ;;  %v3420_v29 = vadd.f32 %v3412_v38, %v6704_v28  ;;  %v3387_v11 = vmul.f32 0.5, %v6678_v49 }
 0x796   : > { %v3694_v36 = vld [vmem:[#allocation4 + $0x18] sm:$0xff]  ;;  %v3527_v52 = vmul.f32 %v3519_v17, %v5670_v53  ;;  %v3413_v54 = vmul.f32 %v3405_v6, %v6715_v58  ;;  %v3566_v30 = vmul.f32 %v3558_v31, %v5686_v61  ;;  %v5189_v43 = vld [vmem:[%s7043_s16 + $0x70] sm:$0xff]   ;;  %v3622_v49 = vmul.f32 %v3519_v17, %v5753_v50 }
 0x797   : > { %v3478_v13 = vpack.c.bf16 %v3471_v56, %v3470_v51  ;;  %v3606_v2 = vpack.c.bf16 %v3694_v36, %v3487_v41  ;;  %v3428_v21 = vmul.f32 0.7978846, %v3420_v29  ;;  %4913 = vmatprep.subr.bf16.mxu0 %v5189_v43  ;;  %v5191_v38 = vld [vmem:[%s7043_s16 + $0x78] sm:$0xff]   ;;  %v3472_v17 = vmul.f32 %v6721_v12, %v5759_v55 }
 0x798   : > { %v3534_v14 = vpack.c.bf16 %v3527_v52, %v3526_v39  ;;  %v3421_v15 = vadd.f32 %v3413_v54, %v6715_v58  ;;  %v5256_v33 = vpop.eup %5255  ;;  %v3574_v4 = vpack.c.bf16 %v3567_v42, %v3566_v30  ;;  %4914 = vmatpush3.bf16.msra.mxu0 %v5190_v46  ;;  %v5192_v23 = vld [vmem:[%s7043_s16 + $0x38] sm:$0xff]  }
 0x799   : > { %3482 = vst.msk [vmem:[#allocation5] sm:$0xff] %vm770_vm0, %v3478_v13  ;;  %3610 = vst.msk [vmem:[#allocation5 + $0x8] sm:$0xff] %vm770_vm0, %v3606_v2  ;;  %v3442_v31 = vadd.f32 1.0, %v5256_v33  ;;  %5259 = vtanh.f32 %v3428_v21  ;;  %4915 = vmatprep.subr.bf16.mxu0 %v5191_v38 }
 0x79a   : > { %3542 = vrot.lane.b32.xlu0 %v3534_v14, %s7105_s30  ;;  %v3695_v41 = vld [vmem:[#allocation4 + $0x20] sm:$0xff]  ;;  %v3429_v59 = vmul.f32 0.7978846, %v3421_v15  ;;  %v5258_v10 = vpop.eup %5257 }
 0x79b   : > { %v3615_v1 = vld [vmem:[#allocation4 + $0x19] sm:$0xff]  ;;  %v3702_v32 = vpack.c.bf16 %v3695_v41, %v3694_v36  ;;  %v3450_v6 = vmul.f32 %v3442_v31, %v3386_v35  ;;  %v3443_v39 = vadd.f32 1.0, %v5258_v10 }
 0x79c   : > { %v3623_v51 = vmul.f32 %v3615_v1, %v5670_v53  ;;  %v3655_v56 = vld [vmem:[#allocation4 + $0x1f] sm:$0xff]  ;;  %5261 = vtanh.f32 %v3429_v59  ;;  %v3696_v52 = vld [vmem:[#allocation4 + $0x28] sm:$0xff]  ;;  %v3734_v18 = vmul.f32 %v3615_v1, %v5753_v50  ;;  %4916 = vmatpush3.bf16.msra.mxu0 %v5192_v23 }
 0x79d   : > { %3710 = vrot.lane.b32.xlu1 %v3702_v32, %s7106_s28  ;;  %v3521_v36 = vld [vmem:[#allocation4 + $0x21] sm:$0xff]  ;;  %3458 = vst.msk [vmem:[#allocation4 + $0x30] sm:$0xff] %vm770_vm0, %v3450_v6  ;;  %v3451_v42 = vmul.f32 %v3443_v39, %v3387_v11  ;;  %v3663_v2 = vmul.f32 %v3655_v56, %v5696_v7  ;;  %v3473_v30 = vmul.f32 %v3655_v56, %v5784_v3 }
 0x79e   : > { %3582 = vrot.lane.b32.xlu0 %v3574_v4, %s7106_s28  ;;  %v3735_v26 = vmul.f32 %v3521_v36, %v5670_v53  ;;  %v3630_v13 = vpack.c.bf16 %v3623_v51, %v3622_v49  ;;  %v3529_v29 = vmul.f32 %v3521_v36, %v5739_v40  ;;  %v3561_v14 = vld [vmem:[#allocation4 + $0x27] sm:$0xff]  ;;  %v3607_v50 = vpack.c.bf16 %v3696_v52, %v3695_v41 }
 0x79f   : > { %3459 = vst.msk [vmem:[#allocation4 + $0x38] sm:$0xff] %vm770_vm0, %v3451_v42  ;;  %v3662_v53 = vmul.f32 %v6721_v12, %v5686_v61  ;;  %v3528_v7 = vmul.f32 %v3615_v1, %v5717_v24  ;;  %v3479_v21 = vpack.c.bf16 %v3473_v30, %v3472_v17  ;;  %v3569_v46 = vmul.f32 %v3561_v14, %v5784_v3 }
 0x7a0   : > { %v3742_v54 = vpack.c.bf16 %v3735_v26, %v3734_v18  ;;  %3611 = vst.msk [vmem:[#allocation5 + $0x20] sm:$0xff] %vm770_vm0, %v3607_v50  ;;  %v3568_v61 = vmul.f32 %v3655_v56, %v5759_v55  ;;  %v3388_v12 = vmul.f32 0.5, %v6704_v28  ;;  %v3389_v51 = vmul.f32 0.5, %v6715_v58  ;;  %5037 = vmatprep.subr.bf16.mxu0 %v5197_v37 }
 0x7a1   : > { %3638 = vrot.lane.b32.xlu1 %v3630_v13, %s7104_s24  ;;  %v3670_v15 = vpack.c.bf16 %v3663_v2, %v3662_v53  ;;  %v3535_v43 = vpack.c.bf16 %v3529_v29, %v3528_v7  ;;  %3483 = vst.msk [vmem:[#allocation5 + $0x18] sm:$0xff] %vm770_vm0, %v3479_v21  ;;  %v3624_v28 = vmul.f32 %v3521_v36, %v5717_v24  ;;  %v3733_v7 = vld [vmem:[#allocation4 + $0x51] sm:$0xff] }
 0x7a2   : > { %3504 = vrot.lane.b32.xlu0 %v3702_v32, %s7104_s24  ;;  %3746 = vst.msk [vmem:[#allocation5 + $0x10] sm:$0xff] %vm770_vm0, %v3742_v54  ;;  %v3575_v31 = vpack.c.bf16 %v3569_v46, %v3568_v61  ;;  %v3474_v56 = vmul.f32 %v3561_v14, %v5846_v19 }
 0x7a3   : > { %v5260_v33 = vpop.eup %5259 }
 0x7a4   : > { %v3444_v35 = vadd.f32 1.0, %v5260_v33  ;;  %v3697_v4 = vld [vmem:[#allocation4 + $0x30] sm:$0xff] }
 0x7a5   : > { %3678 = vrot.lane.b32.xlu1 %v3670_v15, %s7105_s30  ;;  %v3617_v41 = vld [vmem:[#allocation4 + $0x29] sm:$0xff]  ;;  %v3703_v59 = vpack.c.bf16 %v3697_v4, %v3696_v52 }
 0x7a6   : > { %3544 = vrot.lane.b32.xlu0 %v3535_v43, %s7105_s30  ;;  %v5262_v1 = vpop.eup %5261  ;;  %v3625_v32 = vmul.f32 %v3617_v41, %v5739_v40  ;;  %v3657_v10 = vld [vmem:[#allocation4 + $0x2f] sm:$0xff]  ;;  %v3452_v11 = vmul.f32 %v3444_v35, %v3388_v12  ;;  %v3698_v6 = vld [vmem:[#allocation4 + $0x38] sm:$0xff]  ;;  %v3736_v58 = vmul.f32 %v3617_v41, %v5717_v24  ;;  %v3530_v24 = vmul.f32 %v3617_v41, %v5815_v27 }
 0x7a7   : > { %v3445_v38 = vadd.f32 1.0, %v5262_v1  ;;  %v3523_v23 = vld [vmem:[#allocation4 + $0x31] sm:$0xff]  ;;  %v3665_v52 = vmul.f32 %v3657_v10, %v5784_v3  ;;  %v3475_v13 = vmul.f32 %v3657_v10, %v5838_v45  ;;  %v3608_v2 = vpack.c.bf16 %v3698_v6, %v3697_v4 }
 0x7a8   : > { %3460 = vst.msk [vmem:[#allocation4 + $0x40] sm:$0xff] %vm770_vm0, %v3452_v11  ;;  %v3737_v18 = vmul.f32 %v3523_v23, %v5739_v40  ;;  %v3631_v26 = vpack.c.bf16 %v3625_v32, %v3624_v28  ;;  %v3531_v42 = vmul.f32 %v3523_v23, %v5786_v25  ;;  %v3563_v29 = vld [vmem:[#allocation4 + $0x37] sm:$0xff]  ;;  %v3664_v3 = vmul.f32 %v3561_v14, %v5759_v55 }
 0x7a9   : > { %v3752_v39 = vld [vmem:[#allocation5 + $0x10] sm:$0xff]  ;;  %3712 = vrot.lane.b32.xlu1 %v3703_v59, %s7106_s28  ;;  %v3453_v49 = vmul.f32 %v3445_v38, %v3389_v51  ;;  %v3480_v54 = vpack.c.bf16 %v3475_v13, %v3474_v56  ;;  %3612 = vst.msk [vmem:[#allocation5 + $0x38] sm:$0xff] %vm770_vm0, %v3608_v2  ;;  %v3571_v30 = vmul.f32 %v3563_v29, %v5838_v45 }
 0x7aa   : > { %3584 = vrot.lane.b32.xlu0 %v3575_v31, %s7106_s28  ;;  %5005 = vmatprep.mubr.msk.bf16.mxu1 %vm770_vm0, %v3752_v39  ;;  %v3743_v36 = vpack.c.bf16 %v3737_v18, %v3736_v58  ;;  %v3671_v40 = vpack.c.bf16 %v3665_v52, %v3664_v3  ;;  %v3536_v17 = vpack.c.bf16 %v3531_v42, %v3530_v24 }
 0x7ab   : > { %3461 = vst.msk [vmem:[#allocation4 + $0x48] sm:$0xff] %vm770_vm0, %v3453_v49  ;;  %3484 = vst.msk [vmem:[#allocation5 + $0x30] sm:$0xff] %vm770_vm0, %v3480_v54  ;;  %v3570_v50 = vmul.f32 %v3657_v10, %v5846_v19  ;;  %v3626_v41 = vmul.f32 %v3523_v23, %v5815_v27  ;;  %v3741_v31 = vmul.f32 %v3733_v7, %v5908_v57 }
 0x7ac   : > { %3747 = vst.msk [vmem:[#allocation5 + $0x28] sm:$0xff] %vm770_vm0, %v3743_v36  ;;  %v3476_v10 = vmul.f32 %v3563_v29, %v5914_v0  ;;  %v3666_v23 = vmul.f32 %v3563_v29, %v5846_v19  ;;  %v3701_v29 = vld [vmem:[#allocation4 + $0x50] sm:$0xff] }
 0x7ad   : > { %3640 = vrot.lane.b32.xlu1 %v3631_v26, %s7104_s24  ;;  %v3576_v21 = vpack.c.bf16 %v3571_v30, %v3570_v50 }
 0x7ae   : > { %3506 = vrot.lane.b32.xlu0 %v3703_v59, %s7104_s24 }
 0x7af   : > { %v3699_v55 = vld [vmem:[#allocation4 + $0x40] sm:$0xff] }
 0x7b0   : > { %v3619_v14 = vld [vmem:[#allocation4 + $0x39] sm:$0xff]  ;;  %v3704_v15 = vpack.c.bf16 %v3699_v55, %v3698_v6 }
 0x7b1   : > { %3680 = vrot.lane.b32.xlu1 %v3671_v40, %s7105_s30  ;;  %v3659_v53 = vld [vmem:[#allocation4 + $0x3f] sm:$0xff]  ;;  %v3627_v43 = vmul.f32 %v3619_v14, %v5786_v25  ;;  %v3738_v61 = vmul.f32 %v3619_v14, %v5815_v27  ;;  %v3532_v39 = vmul.f32 %v3619_v14, %v5910_v60 }
 0x7b2   : > { %3546 = vrot.lane.b32.xlu0 %v3536_v17, %s7105_s30  ;;  %v3525_v46 = vld [vmem:[#allocation4 + $0x41] sm:$0xff]  ;;  %v3732_v33 = vld [vmem:[#allocation4 + $0x49] sm:$0xff]  ;;  %v3477_v35 = vmul.f32 %v3659_v53, %v5912_v62  ;;  %v3667_v11 = vmul.f32 %v3659_v53, %v5838_v45  ;;  %v3572_v19 = vmul.f32 %v3659_v53, %v5914_v0 }
 0x7b3   : > { %v3739_v12 = vmul.f32 %v3525_v46, %v5786_v25  ;;  %v3755_v4 = vld [vmem:[#allocation5 + $0x28] sm:$0xff]  ;;  %v3740_v1 = vmul.f32 %v3732_v33, %v5910_v60  ;;  %v3632_v25 = vpack.c.bf16 %v3627_v43, %v3626_v41  ;;  %v3533_v51 = vmul.f32 %v3525_v46, %v5908_v57 }
 0x7b4   : > { %v3700_v59 = vld [vmem:[#allocation4 + $0x48] sm:$0xff]  ;;  %5006 = vmatmul.mubr.msk.bf16.vlgmr.msra.gmra.mrb[48].mxu1 %vm770_vm0, %v3755_v4  ;;  %v3481_v6 = vpack.c.bf16 %v3477_v35, %v3476_v10  ;;  %v3672_v45 = vpack.c.bf16 %v3667_v11, %v3666_v23  ;;  %v3628_v49 = vmul.f32 %v3525_v46, %v5910_v60  ;;  %v3629_v52 = vmul.f32 %v3732_v33, %v5908_v57 }
 0x7b5   : > { %3714 = vrot.lane.b32.xlu1 %v3704_v15, %s7106_s28  ;;  %v3744_v32 = vpack.c.bf16 %v3739_v12, %v3738_v61  ;;  %v3745_v38 = vpack.c.bf16 %v3741_v31, %v3740_v1  ;;  %v3609_v27 = vpack.c.bf16 %v3700_v59, %v3699_v55  ;;  %v3565_v28 = vld [vmem:[#allocation4 + $0x47] sm:$0xff]  ;;  %v3537_v56 = vpack.c.bf16 %v3533_v51, %v3532_v39  ;;  %v3661_v18 = vld [vmem:[#allocation4 + $0x4f] sm:$0xff] }
 0x7b6   : > { %3586 = vrot.lane.b32.xlu0 %v3576_v21, %s7106_s28  ;;  %3485 = vst.msk [vmem:[#allocation5 + $0x48] sm:$0xff] %vm770_vm0, %v3481_v6  ;;  %v3573_v58 = vmul.f32 %v3565_v28, %v5912_v62  ;;  %v3633_v42 = vpack.c.bf16 %v3629_v52, %v3628_v49  ;;  %v3668_v13 = vmul.f32 %v3565_v28, %v5914_v0  ;;  %v5193_v28 = vld [vmem:[%s7046_s19] sm:$0xff]  }
 0x7b7   : > { %3748 = vst.msk [vmem:[#allocation5 + $0x40] sm:$0xff] %vm770_vm0, %v3744_v32  ;;  %3749 = vst.msk [vmem:[#allocation5 + $0x58] sm:$0xff] %vm770_vm0, %v3745_v38  ;;  %v3669_v2 = vmul.f32 %v3661_v18, %v5912_v62  ;;  %v3705_v3 = vpack.c.bf16 %v3701_v29, %v3700_v59  ;;  %5013 = vmatprep.subr.bf16.mxu1 %v5193_v28 }
 0x7b8   : > { %3613 = vst.msk [vmem:[#allocation5 + $0x50] sm:$0xff] %vm770_vm0, %v3609_v27  ;;  %v3577_v36 = vpack.c.bf16 %v3573_v58, %v3572_v19  ;;  %5014 = vmatpush3.bf16.msra.mxu1 %v5193_v28  ;;  %v5195_v19 = vld [vmem:[%s7045_s18] sm:$0xff]  }
 0x7b9   : > { %3642 = vrot.lane.b32.xlu1 %v3632_v25, %s7104_s24  ;;  %v3673_v57 = vpack.c.bf16 %v3669_v2, %v3668_v13 }
 0x7ba   : > { %3508 = vrot.lane.b32.xlu0 %v3704_v15, %s7104_s24 }
 0x7bd   : > { %3682 = vrot.lane.b32.xlu1 %v3672_v45, %s7105_s30  ;;  %v5194_v45 = vld [vmem:[%s7046_s19 + $0x8] sm:$0xff]  }
 0x7be   : > { %3548 = vrot.lane.b32.xlu0 %v3537_v56, %s7105_s30  ;;  %v3758_v26 = vld [vmem:[#allocation5 + $0x40] sm:$0xff]  ;;  %v3761_v60 = vld [vmem:[#allocation5 + $0x58] sm:$0xff]  ;;  %5015 = vmatprep.subr.bf16.mxu1 %v5194_v45 }
 0x7bf   : > { %5009 = vmatprep.mubr.msk.bf16.mxu1 %vm770_vm0, %v3758_v26  ;;  %5016 = vmatpush3.bf16.msra.mxu1 %v5194_v45 }
 0x7c0   : > { %5010 = vmatmul.mubr.msk.bf16.gmra.mrb[52].mxu1 %vm770_vm0, %v3761_v60  ;;  %5025 = vmatprep.subr.bf16.mxu1 %v5195_v19 }
 0x7c1   : > { %3644 = vrot.lane.b32.xlu1 %v3633_v42, %s7104_s24  ;;  %v4671_v42 = vld [vmem:[%s7044_s17] ss:$0 sm:$0xff] }
 0x7c2   : > { %3588 = vrot.lane.b32.xlu0 %v3577_v36, %s7106_s28 }
 0x7c5   : > { %3684 = vrot.lane.b32.xlu1 %v3673_v57, %s7105_s30 }
 0x7c9   : > { %3716 = vrot.lane.b32.xlu1 %v3705_v3, %s7106_s28 }
 0x807   : > { %v3503_v0 = vpop.permute.xlu0 %3502 }
 0x808   : > { %3514 = vst.msk [vmem:[#allocation5] sm:$0xff] %vm1045_vm3, %v3503_v0 }
 0x80c   : > { %v3543_v62 = vpop.permute.xlu0 %3542 }
 0x80d   : > { %3554 = vst.msk [vmem:[#allocation5] sm:$0xff] %vm1126_vm4, %v3543_v62 }
 0x80f   : > { %v3711_v24 = vpop.permute.xlu1 %3710 }
 0x810   : > { %v3583_v54 = vpop.permute.xlu0 %3582 }
 0x811   : > { %3594 = vst.msk [vmem:[#allocation5] sm:$0xff] %vm1167_vm5, %v3583_v54 }
 0x813   : > { %v3639_v40 = vpop.permute.xlu1 %3638 }
 0x814   : > { %v3505_v17 = vpop.permute.xlu0 %3504  ;;  %3650 = vst.msk [vmem:[#allocation5 + $0x8] sm:$0xff] %vm1045_vm3, %v3639_v40 }
 0x815   : > { %3515 = vst.msk [vmem:[#allocation5 + $0x18] sm:$0xff] %vm1045_vm3, %v3505_v17 }
 0x817   : > { %v3679_v30 = vpop.permute.xlu1 %3678 }
 0x818   : > { %v3545_v50 = vpop.permute.xlu0 %3544  ;;  %3690 = vst.msk [vmem:[#allocation5 + $0x8] sm:$0xff] %vm1126_vm4, %v3679_v30  ;;  %v3750_v15 = vld [vmem:[#allocation5] sm:$0xff] }
 0x819   : > { %3555 = vst.msk [vmem:[#allocation5 + $0x18] sm:$0xff] %vm1126_vm4, %v3545_v50 }
 0x81a   : > { %3722 = vst.msk [vmem:[#allocation5 + $0x8] sm:$0xff] %vm1167_vm5, %v3711_v24 }
 0x81b   : > { %v3713_v55 = vpop.permute.xlu1 %3712 }
 0x81c   : > { %v3585_v14 = vpop.permute.xlu0 %3584 }
 0x81d   : > { %3595 = vst.msk [vmem:[#allocation5 + $0x18] sm:$0xff] %vm1167_vm5, %v3585_v14 }
 0x81f   : > { %v3641_v53 = vpop.permute.xlu1 %3640 }
 0x820   : > { %v3507_v7 = vpop.permute.xlu0 %3506  ;;  %3651 = vst.msk [vmem:[#allocation5 + $0x20] sm:$0xff] %vm1045_vm3, %v3641_v53 }
 0x821   : > { %3516 = vst.msk [vmem:[#allocation5 + $0x30] sm:$0xff] %vm1045_vm3, %v3507_v7  ;;  %v3751_v21 = vld [vmem:[#allocation5 + $0x8] sm:$0xff] }
 0x822   : > { %3957 = vmatprep.mubr.bf16.mxu0 %v3751_v21 }
 0x823   : > { %3958 = vmatmul.mubr.bf16.vlgmr.msra.gmra.mrb[40].mxu0 %v3750_v15  ;;  %v3681_v43 = vpop.permute.xlu1 %3680 }
 0x824   : > { %v3547_v46 = vpop.permute.xlu0 %3546  ;;  %3691 = vst.msk [vmem:[#allocation5 + $0x20] sm:$0xff] %vm1126_vm4, %v3681_v43  ;;  %v3753_v41 = vld [vmem:[#allocation5 + $0x18] sm:$0xff]  ;;  %v5196_v43 = vld [vmem:[%s7045_s18 + $0x8] sm:$0xff]   ;;  %5038 = vmatpush3.bf16.msra.mxu0 %v5197_v37 }
 0x825   : > { %3556 = vst.msk [vmem:[#allocation5 + $0x30] sm:$0xff] %vm1126_vm4, %v3547_v46  ;;  %5039 = vmatprep.subr.bf16.mxu0 %v5198_v47 }
 0x826   : > { %3723 = vst.msk [vmem:[#allocation5 + $0x20] sm:$0xff] %vm1167_vm5, %v3713_v55 }
 0x827   : > { %v3715_v33 = vpop.permute.xlu1 %3714 }
 0x828   : > { %v3587_v61 = vpop.permute.xlu0 %3586  ;;  %5040 = vmatpush3.bf16.msra.mxu0 %v5198_v47 }
 0x829   : > { %3596 = vst.msk [vmem:[#allocation5 + $0x30] sm:$0xff] %vm1167_vm5, %v3587_v61 }
 0x82b   : > { %v3643_v12 = vpop.permute.xlu1 %3642 }
 0x82c   : > { %v3509_v35 = vpop.permute.xlu0 %3508  ;;  %3652 = vst.msk [vmem:[#allocation5 + $0x38] sm:$0xff] %vm1045_vm3, %v3643_v12 }
 0x82d   : > { %3517 = vst.msk [vmem:[#allocation5 + $0x48] sm:$0xff] %vm1045_vm3, %v3509_v35  ;;  %v3754_v4 = vld [vmem:[#allocation5 + $0x20] sm:$0xff] }
 0x82e   : > { %3965 = vmatprep.mubr.bf16.mxu0 %v3754_v4 }
 0x82f   : > { %3966 = vmatmul.mubr.bf16.gmra.mrb[44].mxu0 %v3753_v41  ;;  %v3683_v1 = vpop.permute.xlu1 %3682 }
 0x830   : > { %v3549_v31 = vpop.permute.xlu0 %3548  ;;  %3692 = vst.msk [vmem:[#allocation5 + $0x38] sm:$0xff] %vm1126_vm4, %v3683_v1  ;;  %v3756_v11 = vld [vmem:[#allocation5 + $0x30] sm:$0xff] }
 0x831   : > { %3557 = vst.msk [vmem:[#allocation5 + $0x48] sm:$0xff] %vm1126_vm4, %v3549_v31 }
 0x832   : > { %3724 = vst.msk [vmem:[#allocation5 + $0x38] sm:$0xff] %vm1167_vm5, %v3715_v33 }
 0x833   : > { %v3645_v59 = vpop.permute.xlu1 %3644 }
 0x834   : > { %3653 = vst.msk [vmem:[#allocation5 + $0x50] sm:$0xff] %vm1045_vm3, %v3645_v59  ;;  %v3589_v32 = vpop.permute.xlu0 %3588 }
 0x835   : > { %3597 = vst.msk [vmem:[#allocation5 + $0x48] sm:$0xff] %vm1167_vm5, %v3589_v32 }
 0x837   : > { %v3685_v10 = vpop.permute.xlu1 %3684 }
 0x838   : > { %3693 = vst.msk [vmem:[#allocation5 + $0x50] sm:$0xff] %vm1126_vm4, %v3685_v10 }
 0x839   : > { %v3757_v25 = vld [vmem:[#allocation5 + $0x38] sm:$0xff] }
 0x83a   : > { %3973 = vmatprep.mubr.bf16.mxu0 %v3757_v25 }
 0x83b   : > { %3974 = vmatmul.mubr.bf16.gmra.mrb[48].mxu0 %v3756_v11  ;;  %v3717_v51 = vpop.permute.xlu1 %3716 }
 0x83c   : > { %3725 = vst.msk [vmem:[#allocation5 + $0x50] sm:$0xff] %vm1167_vm5, %v3717_v51  ;;  %v3759_v6 = vld [vmem:[#allocation5 + $0x48] sm:$0xff] }
 0x843   : > { %v3760_v38 = vld [vmem:[#allocation5 + $0x50] sm:$0xff] }
 0x844   : > { %3981 = vmatprep.mubr.bf16.mxu0 %v3760_v38 }
 0x845   : > { %3982 = vmatmul.mubr.bf16.gmra.mrb[52].mxu0 %v3759_v6 }
 0x887   : > { %v5007_v27 = vpop.f32.mrb[48].mxu1 }
 0x888   : > { %v4024_v23 = vpop.f32.mrb[49].mxu1 }
 0x889   : > { %v5008_v39 = vpop.f32.mrb[50].mxu1 }
 0x88a   : > { %v4027_v56 = vpop.f32.mrb[51].mxu1 }
 0x893   : > { %v5011_v49 = vpop.f32.mrb[52].mxu1 }
 0x894   : > { %v4040_v52 = vpop.f32.mrb[53].mxu1 }
 0x895   : > { %v5012_v58 = vpop.f32.mrb[54].mxu1 }
 0x896   : > { %v4043_v18 = vpop.f32.mrb[55].mxu1 }
 0x8f6   : > { %v4917_v26 = vpop.f32.mrb[40].mxu0 }
 0x8f7   : > { %v4918_v13 = vpop.f32.mrb[41].mxu0 }
 0x8f8   : > { %v4919_v2 = vadd.f32 %v4918_v13, %v4917_v26  ;;  %v4920_v60 = vpop.f32.mrb[42].mxu0 }
 0x8f9   : > { %v4921_v36 = vpop.f32.mrb[43].mxu0 }
 0x8fa   : > { %v3960_v57 = vadd.f32 %v4919_v2, %v4671_v42  ;;  %v4922_v29 = vadd.f32 %v4921_v36, %v4920_v60 }
 0x8fc   : > { %v4025_v3 = vadd.f32 %v4024_v23, %v3960_v57  ;;  %v3963_v0 = vadd.f32 %v4922_v29, %v4671_v42 }
 0x8fe   : > { %v4028_v62 = vadd.f32 %v4027_v56, %v3963_v0 }
 0x900   : > { %v4063_v24 = vpack.c.bf16 %v4028_v62, %v4025_v3 }
 0x902   : > { %v4923_v54 = vpop.f32.mrb[44].mxu0  ;;  %5017 = vmatprep.mubr.msk.bf16.mxu1 %vm770_vm0, %v4063_v24 }
 0x903   : > { %v4924_v40 = vpop.f32.mrb[45].mxu0 }
 0x904   : > { %v4925_v17 = vadd.f32 %v4924_v40, %v4923_v54  ;;  %v4926_v30 = vpop.f32.mrb[46].mxu0 }
 0x905   : > { %v4927_v50 = vpop.f32.mrb[47].mxu0 }
 0x906   : > { %v3968_v55 = vadd.f32 %v4925_v17, %v4671_v42  ;;  %v4928_v14 = vadd.f32 %v4927_v50, %v4926_v30 }
 0x908   : > { %v4033_v53 = vadd.f32 %v5007_v27, %v3968_v55  ;;  %v3971_v7 = vadd.f32 %v4928_v14, %v4671_v42 }
 0x90a   : > { %v4036_v21 = vadd.f32 %v5008_v39, %v3971_v7 }
 0x90c   : > { %v4064_v15 = vpack.c.bf16 %v4036_v21, %v4033_v53 }
 0x90e   : > { %v4929_v46 = vpop.f32.mrb[48].mxu0  ;;  %5018 = vmatmul.mubr.msk.bf16.vlgmr.msra.gmra.mrb[56].mxu1 %vm770_vm0, %v4064_v15 }
 0x90f   : > { %v4930_v33 = vpop.f32.mrb[49].mxu0  ;;  %5026 = vmatpush3.bf16.msra.mxu1 %v5195_v19 }
 0x910   : > { %v4931_v61 = vadd.f32 %v4930_v33, %v4929_v46  ;;  %v4932_v12 = vpop.f32.mrb[50].mxu0  ;;  %5027 = vmatprep.subr.bf16.mxu1 %v5196_v43 }
 0x911   : > { %v4933_v35 = vpop.f32.mrb[51].mxu0 }
 0x912   : > { %v3976_v4 = vadd.f32 %v4931_v61, %v4671_v42  ;;  %v4934_v41 = vadd.f32 %v4933_v35, %v4932_v12 }
 0x913   : > { %5028 = vmatpush3.bf16.msra.mxu1 %v5196_v43 }
 0x914   : > { %v4041_v1 = vadd.f32 %v4040_v52, %v3976_v4  ;;  %v3979_v31 = vadd.f32 %v4934_v41, %v4671_v42 }
 0x916   : > { %v4044_v59 = vadd.f32 %v4043_v18, %v3979_v31 }
 0x918   : > { %v4065_v32 = vpack.c.bf16 %v4044_v59, %v4041_v1  ;;  %v4935_v10 = vpop.f32.mrb[52].mxu0 }
 0x919   : > { %v4936_v25 = vpop.f32.mrb[53].mxu0 }
 0x91a   : > { %5021 = vmatprep.mubr.msk.bf16.mxu1 %vm770_vm0, %v4065_v32  ;;  %v4937_v11 = vadd.f32 %v4936_v25, %v4935_v10  ;;  %v4938_v51 = vpop.f32.mrb[54].mxu0 }
 0x91b   : > { %v4939_v38 = vpop.f32.mrb[55].mxu0 }
 0x91c   : > { %v3984_v6 = vadd.f32 %v4937_v11, %v4671_v42  ;;  %v4940_v27 = vadd.f32 %v4939_v38, %v4938_v51 }
 0x91e   : > { %v4049_v23 = vadd.f32 %v5011_v49, %v3984_v6  ;;  %v3987_v39 = vadd.f32 %v4940_v27, %v4671_v42 }
 0x920   : > { %v4052_v28 = vadd.f32 %v5012_v58, %v3987_v39 }
 0x922   : > { %v4066_v45 = vpack.c.bf16 %v4052_v28, %v4049_v23 }
 0x924   : > { %5022 = vmatmul.mubr.msk.bf16.gmra.mrb[60].mxu1 %vm770_vm0, %v4066_v45 }
 0x925   : > { %5029 = vmatprep.mubr.msk.bf16.mxu1 %vm770_vm0, %v4055_v20  ;;  %v4706_v20 = vld [vmem:[%s7047_s20] ss:$0 sm:$0xff] }
 0x92c   : > { %5030 = vmatmul.mubr.msk.bf16.vlgmr.msra.gmra.mrb[56].mxu1 %vm770_vm0, %v4056_v63 }
 0x92d   : > { %5033 = vmatprep.mubr.msk.bf16.mxu1 %vm770_vm0, %v4057_v44 }
 0x934   : > { %5034 = vmatmul.mubr.msk.bf16.gmra.mrb[60].mxu1 %vm770_vm0, %v4058_v8 }
 0x9ff   : > { %v5031_v22 = vpop.f32.mrb[56].mxu1 }
 0xa00   : > { %v6914_v16 = vadd.f32 %v5031_v22, %v4706_v20  ;;  %v4218_v63 = vpop.f32.mrb[57].mxu1 }
 0xa01   : > { %v6916_v34 = vadd.f32 %v4706_v20, %v4218_v63  ;;  %v5032_v9 = vpop.f32.mrb[58].mxu1 }
 0xa02   : > { %v4274_v44 = vmul.f32 0.044715, %v6914_v16  ;;  %v6919_v48 = vadd.f32 %v5032_v9, %v4706_v20  ;;  %v4221_v5 = vpop.f32.mrb[59].mxu1  ;;  %v4266_v47 = vmul.f32 0.5, %v6914_v16 }
 0xa03   : > { %v4272_v8 = vmul.f32 0.044715, %v6916_v34  ;;  %v6922_v56 = vadd.f32 %v4706_v20, %v4221_v5  ;;  %v4264_v63 = vmul.f32 0.5, %v6916_v34 }
 0xa04   : > { %v4282_v49 = vmul.f32 %v4274_v44, %v6914_v16  ;;  %v4275_v52 = vmul.f32 0.044715, %v6919_v48 }
 0xa05   : > { %v4280_v58 = vmul.f32 %v4272_v8, %v6916_v34  ;;  %v4273_v18 = vmul.f32 0.044715, %v6922_v56  ;;  %v4265_v9 = vmul.f32 0.5, %v6922_v56 }
 0xa06   : > { %v4290_v19 = vmul.f32 %v4282_v49, %v6914_v16  ;;  %v4283_v26 = vmul.f32 %v4275_v52, %v6919_v48 }
 0xa07   : > { %v4288_v42 = vmul.f32 %v4280_v58, %v6916_v34  ;;  %v4281_v13 = vmul.f32 %v4273_v18, %v6922_v56  ;;  %v5035_v2 = vpop.f32.mrb[60].mxu1 }
 0xa08   : > { %v4298_v60 = vadd.f32 %v4290_v19, %v6914_v16  ;;  %v4291_v36 = vmul.f32 %v4283_v26, %v6919_v48  ;;  %v6934_v57 = vadd.f32 %v5035_v2, %v4706_v20  ;;  %v4234_v29 = vpop.f32.mrb[61].mxu1 }
 0xa09   : > { %v4296_v3 = vadd.f32 %v4288_v42, %v6916_v34  ;;  %v4289_v0 = vmul.f32 %v4281_v13, %v6922_v56  ;;  %v6938_v62 = vadd.f32 %v4706_v20, %v4234_v29  ;;  %v5036_v24 = vpop.f32.mrb[62].mxu1 }
 0xa0a   : > { %v4306_v54 = vmul.f32 0.7978846, %v4298_v60  ;;  %v4299_v40 = vadd.f32 %v4291_v36, %v6919_v48  ;;  %v4278_v17 = vmul.f32 0.044715, %v6934_v57  ;;  %v4263_v30 = vadd.f32 %v5036_v24, %v4706_v20  ;;  %v4237_v50 = vpop.f32.mrb[63].mxu1 }
 0xa0b   : > { %v4304_v55 = vmul.f32 0.7978846, %v4296_v3  ;;  %v4297_v14 = vadd.f32 %v4289_v0, %v6922_v56  ;;  %v4276_v53 = vmul.f32 0.044715, %v6938_v62  ;;  %v4261_v7 = vadd.f32 %v4706_v20, %v4237_v50 }
 0xa0c   : > { %5263 = vtanh.f32 %v4306_v54  ;;  %v4307_v21 = vmul.f32 0.7978846, %v4299_v40  ;;  %v4286_v15 = vmul.f32 %v4278_v17, %v6934_v57  ;;  %v4279_v43 = vmul.f32 0.044715, %v4263_v30 }
 0xa0d   : > { %5265 = vtanh.f32 %v4304_v55  ;;  %v4305_v46 = vmul.f32 0.7978846, %v4297_v14  ;;  %v4284_v33 = vmul.f32 %v4276_v53, %v6938_v62  ;;  %v4277_v61 = vmul.f32 0.044715, %v4261_v7 }
 0xa0e   : > { %5267 = vtanh.f32 %v4307_v21  ;;  %v4294_v12 = vmul.f32 %v4286_v15, %v6934_v57  ;;  %v4287_v35 = vmul.f32 %v4279_v43, %v4263_v30  ;;  %v4267_v20 = vmul.f32 0.5, %v6919_v48 }
 0xa0f   : > { %5269 = vtanh.f32 %v4305_v46  ;;  %v4292_v4 = vmul.f32 %v4284_v33, %v6938_v62  ;;  %v4285_v41 = vmul.f32 %v4277_v61, %v4261_v7  ;;  %v4270_v34 = vmul.f32 0.5, %v6934_v57 }
 0xa10   : > { %v4302_v1 = vadd.f32 %v4294_v12, %v6934_v57  ;;  %v4295_v31 = vmul.f32 %v4287_v35, %v4263_v30  ;;  %v4271_v56 = vmul.f32 0.5, %v4263_v30  ;;  %v4268_v60 = vmul.f32 0.5, %v6938_v62 }
 0xa11   : > { %v4300_v59 = vadd.f32 %v4292_v4, %v6938_v62  ;;  %v4293_v32 = vmul.f32 %v4285_v41, %v4261_v7  ;;  %v4269_v36 = vmul.f32 0.5, %v4261_v7 }
 0xa12   : > { %v4310_v10 = vmul.f32 0.7978846, %v4302_v1  ;;  %v4303_v25 = vadd.f32 %v4295_v31, %v4263_v30 }
 0xa13   : > { %v4308_v11 = vmul.f32 0.7978846, %v4300_v59  ;;  %v4301_v51 = vadd.f32 %v4293_v32, %v4261_v7 }
 0xa14   : > { %5271 = vtanh.f32 %v4310_v10  ;;  %v4311_v38 = vmul.f32 0.7978846, %v4303_v25 }
 0xa15   : > { %5273 = vtanh.f32 %v4308_v11  ;;  %v4309_v6 = vmul.f32 0.7978846, %v4301_v51 }
 0xa16   : > { %v5264_v27 = vpop.eup %5263  ;;  %5275 = vtanh.f32 %v4311_v38 }
 0xa17   : > { %v5266_v23 = vpop.eup %5265  ;;  %v4322_v39 = vadd.f32 1.0, %v5264_v27  ;;  %5277 = vtanh.f32 %v4309_v6 }
 0xa18   : > { %v5268_v28 = vpop.eup %5267  ;;  %v4320_v45 = vadd.f32 1.0, %v5266_v23 }
 0xa19   : > { %v5270_v37 = vpop.eup %5269  ;;  %v4323_v22 = vadd.f32 1.0, %v5268_v28  ;;  %v4330_v5 = vmul.f32 %v4322_v39, %v4266_v47 }
 0xa1a   : > { %v4321_v44 = vadd.f32 1.0, %v5270_v37  ;;  %v4328_v49 = vmul.f32 %v4320_v45, %v4264_v63 }
 0xa1b   : > { %v4331_v8 = vmul.f32 %v4323_v22, %v4267_v20 }
 0xa1c   : > { %v4329_v52 = vmul.f32 %v4321_v44, %v4265_v9 }
 0xa1d   : > { %v4337_v58 = vpack.c.bf16 %v4331_v8, %v4330_v5 }
 0xa1e   : > { %v5272_v18 = vpop.eup %5271  ;;  %v4336_v19 = vpack.c.bf16 %v4329_v52, %v4328_v49 }
 0xa1f   : > { %v5274_v26 = vpop.eup %5273  ;;  %v4326_v42 = vadd.f32 1.0, %v5272_v18 }
 0xa20   : > { %v5276_v13 = vpop.eup %5275  ;;  %5041 = vmatprep.mubr.msk.bf16.mxu0 %vm770_vm0, %v4336_v19  ;;  %v4324_v16 = vadd.f32 1.0, %v5274_v26 }
 0xa21   : > { %v5278_v48 = vpop.eup %5277  ;;  %5042 = vmatmul.mubr.msk.bf16.vlgmr.msra.gmra.mrb[56].mxu0 %vm770_vm0, %v4337_v58  ;;  %v4327_v2 = vadd.f32 1.0, %v5276_v13  ;;  %v4334_v3 = vmul.f32 %v4326_v42, %v4270_v34 }
 0xa22   : > { %v4325_v29 = vadd.f32 1.0, %v5278_v48  ;;  %v4332_v24 = vmul.f32 %v4324_v16, %v4268_v60 }
 0xa23   : > { %v4335_v0 = vmul.f32 %v4327_v2, %v4271_v56 }
 0xa24   : > { %v4333_v54 = vmul.f32 %v4325_v29, %v4269_v36 }
 0xa25   : > { %v4339_v40 = vpack.c.bf16 %v4335_v0, %v4334_v3 }
 0xa26   : > { %v4338_v17 = vpack.c.bf16 %v4333_v54, %v4332_v24 }
 0xa28   : > { %5045 = vmatprep.mubr.msk.bf16.mxu0 %vm770_vm0, %v4338_v17 }
 0xa29   : > { %5046 = vmatmul.mubr.msk.bf16.gmra.mrb[60].mxu0 %vm770_vm0, %v4339_v40 }
 0xa2a   : > { %5292 = shalt.err (!%p5289_p3)
}
 0xa2b   : > { %s5293_s1 = scalar_lea.hbm %s6965_s2, 1024  ;;  %s5297_s28 = scalar_lea.hbm %s7050_s23, 2048 }
 0xa2c   : > { %p5294_p4 = scmp.ne.s32.totalorder %s6965_s2, %s5293_s1  ;;  %p5298_p9 = scmp.lt.u32.totalorder %s6965_s2, %s7050_s23 }
 0xa2d   : > { %p5299_p10 = scmp.lt.u32.totalorder %s5297_s28, %s5293_s1  ;;  %p5301_p12 = scmp.lt.u32.totalorder %s5293_s1, %s6965_s2 }
 0xa2e   : > { %p5295_p7 = pnand %p5294_p4, %p5514_p5 }
 0xa2f   : > { %p5300_p11 = por %p5299_p10, %p5298_p9 }
 0xa30   : > { %p5296_p8 = pneg %p5295_p7 }
 0xa31   : > { %p5302_p13 = por %p5301_p12, %p5300_p11 }
 0xa33   : > { %p5303_p0 = pnand %p5302_p13, %p5296_p8 }
 0xa35   : > { %5306 = shalt.err (!%p5303_p0)
}
 0xa36   : > { %s5349_s27 = smov 128   ;;  %s5350_s8 = smov 8   ;;  %v4707_v57 = vld [vmem:[%s7049_s22] ss:$0 sm:$0xff]  ;;  %vm4440_vm7 = vcmask 64512  }
 0xa37   : > { %5057 = dma.vmem_to_hbm [thread:$0]  (%p5514_p5), %s6967_s7, 1024, %s6965_s2, %s6971_s9, %s5349_s27, %s5349_s27, %s5350_s8  }
 0xa38   : > { %s7108_s24 = sld [smem:[#allocation29_spill]] }
 0xa3e   : > { %s768_s1 = scalar_lea.vmem %s7108_s24, %s5526_s4 }
 0xaf4   : > { %v5043_v62 = vpop.f32.mrb[56].mxu0 }
 0xaf5   : > { %v4418_v30 = vadd.f32 %v5043_v62, %v4707_v57  ;;  %v4409_v50 = vpop.f32.mrb[57].mxu0 }
 0xaf6   : > { %v4410_v55 = vadd.f32 %v4707_v57, %v4409_v50  ;;  %v5044_v14 = vpop.f32.mrb[58].mxu0 }
 0xaf7   : > { %4443 = vst.msk [vmem:[%s768_s1 + $0x10] sm:$0xff] %vm4440_vm7, %v4418_v30  ;;  %v4421_v53 = vadd.f32 %v5044_v14, %v4707_v57  ;;  %v4412_v7 = vpop.f32.mrb[59].mxu0 }
 0xaf8   : > { %4441 = vst.msk [vmem:[%s768_s1] sm:$0xff] %vm4440_vm7, %v4410_v55  ;;  %v4413_v21 = vadd.f32 %v4707_v57, %v4412_v7 }
 0xaf9   : > { %4444 = vst.msk [vmem:[%s768_s1 + $0x18] sm:$0xff] %vm4440_vm7, %v4421_v53 }
 0xafa   : > { %4442 = vst.msk [vmem:[%s768_s1 + $0x8] sm:$0xff] %vm4440_vm7, %v4413_v21 }
 0xafc   : > { %v5047_v15 = vpop.f32.mrb[60].mxu0 }
 0xafd   : > { %v4434_v43 = vadd.f32 %v5047_v15, %v4707_v57  ;;  %v4425_v46 = vpop.f32.mrb[61].mxu0 }
 0xafe   : > { %v4426_v33 = vadd.f32 %v4707_v57, %v4425_v46  ;;  %v5048_v61 = vpop.f32.mrb[62].mxu0 }
 0xaff   : > { %4447 = vst.msk [vmem:[%s768_s1 + $0x30] sm:$0xff] %vm4440_vm7, %v4434_v43  ;;  %v4437_v12 = vadd.f32 %v5048_v61, %v4707_v57  ;;  %v4428_v35 = vpop.f32.mrb[63].mxu0 }
 0xb00   : > { %4445 = vst.msk [vmem:[%s768_s1 + $0x20] sm:$0xff] %vm4440_vm7, %v4426_v33  ;;  %v4429_v4 = vadd.f32 %v4707_v57, %v4428_v35 }
 0xb01   : > { %4448 = vst.msk [vmem:[%s768_s1 + $0x38] sm:$0xff] %vm4440_vm7, %v4437_v12 }
 0xb02   : > { %4446 = vst.msk [vmem:[%s768_s1 + $0x28] sm:$0xff] %vm4440_vm7, %v4429_v4 }
 0xb03 PF: > { %s7109_s3 = sld [smem:[#allocation13_spill]]  ;;  %s7110_s4 = sld [smem:[#allocation11_spill]] }
 0xb09   : > { %p5063_p5 = scmp.ge.s32.totalorder %s7109_s3, 2  ;;  %s4486_s2 = sand.u32 1, %s7110_s4  }
 0xb0a   : > { %s4487_s9 = scalar_lea.sflag [#allocation9], %s4486_s2 }
 0xb0b   : > { %p5060_p1 = pnand %p5063_p5, %p5518_p6 }
 0xb0d   : > { %5324 = dma.done.wait (!%p5060_p1), %s4487_s9, 1024  }
 0xb0e   : > { %5326 = vsyncadd (!%p5060_p1), %s4487_s9, 4294966272  ;;  %s7112_s28 = sld [smem:[#allocation14_spill]]  ;;  %s7113_s30 = sld [smem:[#allocation12_spill]] }
 0xb0f   : > { %s7114_s27 = sld [smem:[#allocation15_spill]]  ;;  %s7115_s5 = smov %s5333_s26 }
 0xb14   : > { %p35_p2 = scmp.ge.s32.totalorder %s7112_s28, 4   ;;  %s7116_s26 = smov %s7113_s30 }
 0xb16   :  { %37 = sbr.rel (!%p35_p2) target bundleno = 17 (0x11), region = 162 }
 0xb1d   :  { %4500 = vsyncpa [#allocation9], 1 }
 0xb1e   :  { %4502 = vsyncpa [#allocation9 + $0x1], 1 }

</bundles_post_ra>
